<compile_context>
chip_gen: v7x
topology: tpu7x:2x2x1
jax: 0.10.0
libtpu: 0.0.40
codegen_flags: <defaults>
</compile_context>

<pallas_src>
import jax
import jax.numpy as jnp
from jax import lax
from jax.experimental import pallas as pl
from jax.experimental.pallas import tpu as pltpu

R_PAD = 128  # lane-dense padded relation axis


def sumnn_kernel(ltok_ref, rtok_ref, llen_ref, rlen_ref,          # blocked int32 inputs
                 emb_ref, wcat_ref, bc_ref, wsm_ref, bsm_ref,     # resident params
                 out_ref):                                        # (b_tile, R_PAD) f32
    b_tile, seq_len = ltok_ref.shape
    voc = emb_ref.shape[0]

    lane_v = lax.broadcasted_iota(jnp.int32, (b_tile, voc), 1)      # vocab id per lane
    pos = lax.broadcasted_iota(jnp.int32, (b_tile, seq_len), 1)     # position per lane

    def token_counts(tok_ref, len_ref):
        # counts[b, v] = number of valid (within-length) occurrences of token v in row b.
        tok = tok_ref[...]                                          # (b_tile, L) int32
        tok = jnp.where(pos < len_ref[...], tok, voc)               # sentinel id == no match
        counts = jnp.zeros((b_tile, voc), jnp.float32)
        for l in range(seq_len):                                    # static, small L: lane-dense VPU compares
            counts = counts + (tok[:, l:l + 1] == lane_v).astype(jnp.float32)
        return counts

    emb = emb_ref[...]                                              # (V, D) bf16, VMEM-resident
    # masked embedding-sums via MXU: (b_tile, V) @ (V, D), f32 accumulation
    lsum = jnp.dot(token_counts(ltok_ref, llen_ref).astype(jnp.bfloat16), emb,
                   preferred_element_type=jnp.float32)
    rsum = jnp.dot(token_counts(rtok_ref, rlen_ref).astype(jnp.bfloat16), emb,
                   preferred_element_type=jnp.float32)
    concat = jnp.concatenate([lsum, rsum], axis=-1)                 # (b_tile, 2D) f32, in vregs

    # cpr: fused (b_tile, 2D) @ (2D, C) matmul, bf16 operands, f32 accumulation.
    h = jnp.dot(concat.astype(jnp.bfloat16), wcat_ref[...],
                preferred_element_type=jnp.float32) + bc_ref[...]
    h = jnp.where(h > 0, h, 0.01 * h)                               # LeakyReLU (default slope 0.01)

    # sm into a lane-dense 128-wide logit slab; pad lanes carry bias -1e30 (f32) so they
    # drop out of the log-softmax normalizer.
    logits = jnp.dot(h.astype(jnp.bfloat16), wsm_ref[...],
                     preferred_element_type=jnp.float32) + bsm_ref[...]
    m = jnp.max(logits, axis=-1, keepdims=True)
    lse = m + jnp.log(jnp.sum(jnp.exp(logits - m), axis=-1, keepdims=True))
    out_ref[...] = (logits - lse).astype(out_ref.dtype)


def sumnn_forward(left_tok, right_tok, left_len, right_len,
                  emb, w_cpr, b_cpr, w_sm, b_sm, *, b_tile=128):
    """left/right_tok: (B, L) int32 token ids; left/right_len: (B,) int32 lengths;
    emb: (V, D); w_cpr: (C, 2D); b_cpr: (C,); w_sm: (R, C); b_sm: (R,)."""
    B, L = left_tok.shape
    V, D = emb.shape
    C = w_cpr.shape[0]
    R = w_sm.shape[0]
    assert B % b_tile == 0 and b_tile % 8 == 0, (B, b_tile)
    assert R <= R_PAD

    # Parameter prep (glue, done once): bf16 weights (MXU-native), f32 biases,
    # lane-dense padded softmax layer with -1e30 pad bias kept in f32.
    emb_bf = jnp.asarray(emb, jnp.bfloat16)                            # (V, D)
    wcat_bf = jnp.asarray(w_cpr.T, jnp.bfloat16)                       # (2D, C)
    bc = jnp.asarray(b_cpr, jnp.float32)[None, :]                      # (1, C)
    wsm_pad = jnp.zeros((C, R_PAD), jnp.bfloat16).at[:, :R].set(jnp.asarray(w_sm.T, jnp.bfloat16))
    bsm_pad = jnp.full((1, R_PAD), -1e30, jnp.float32).at[0, :R].set(jnp.asarray(b_sm, jnp.float32))

    ltok = left_tok.astype(jnp.int32)
    rtok = right_tok.astype(jnp.int32)
    llen = left_len.astype(jnp.int32).reshape(B, 1)
    rlen = right_len.astype(jnp.int32).reshape(B, 1)

    tile_map = lambda i: (i, 0)
    const = lambda i: (0, 0)      # grid-invariant blocks: DMA'd once, stay resident
    grid_spec = pltpu.PrefetchScalarGridSpec(
        num_scalar_prefetch=0,
        grid=(B // b_tile,),
        in_specs=[
            pl.BlockSpec((b_tile, L), tile_map),    # left token ids
            pl.BlockSpec((b_tile, L), tile_map),    # right token ids
            pl.BlockSpec((b_tile, 1), tile_map),    # left lengths
            pl.BlockSpec((b_tile, 1), tile_map),    # right lengths
            pl.BlockSpec((V, D), const),            # embedding table (bf16)
            pl.BlockSpec((2 * D, C), const),        # fused cpr weight (bf16)
            pl.BlockSpec((1, C), const),            # cpr bias (f32)
            pl.BlockSpec((C, R_PAD), const),        # padded sm weight (bf16)
            pl.BlockSpec((1, R_PAD), const),        # padded sm bias (f32, -1e30 pads)
        ],
        out_specs=pl.BlockSpec((b_tile, R_PAD), tile_map),
    )

    flops = (2 * 2 * B * V * D          # two counts @ emb matmuls
             + 2 * B * (2 * D) * C      # cpr
             + 2 * B * C * R_PAD)       # sm
    bytes_accessed = ((ltok.size + rtok.size + llen.size + rlen.size) * 4
                      + emb_bf.size * 2 + wcat_bf.size * 2 + wsm_pad.size * 2
                      + bc.size * 4 + bsm_pad.size * 4
                      + B * R_PAD * 4)

    out_pad = pl.pallas_call(
        sumnn_kernel,
        out_shape=jax.ShapeDtypeStruct((B, R_PAD), jnp.float32),
        grid_spec=grid_spec,
        compiler_params=pltpu.CompilerParams(
            dimension_semantics=("parallel",),
            vmem_limit_bytes=32 * 1024 * 1024),
        cost_estimate=pl.CostEstimate(flops=flops,
                                      transcendentals=B * (R_PAD + 1),
                                      bytes_accessed=bytes_accessed),
    )(ltok, rtok, llen, rlen, emb_bf, wcat_bf, bc, wsm_pad, bsm_pad)

    return out_pad[:, :R]


if __name__ == "__main__":
    # small, deterministic configuration
    VOC_SIZE = 16     # len(vocab)
    WORD_DIM = 8
    CPR_DIM = 32
    NUM_RELS = 3      # len(rels)
    BATCH = 512
    MAX_LEN = 6
    B_TILE = 128      # -> grid of 4 "parallel" batch tiles (>=2 per core on v7x megacore)

    key = jax.random.PRNGKey(0)
    k_emb, k_cpr, k_sm, k_ltok, k_rtok, k_llen, k_rlen = jax.random.split(key, 7)

    # deterministic parameter init (biases zero, like sumNN.initialize)
    emb = jax.random.normal(k_emb, (VOC_SIZE, WORD_DIM), jnp.float32) * 0.1
    w_cpr = jax.random.normal(k_cpr, (CPR_DIM, 2 * WORD_DIM), jnp.float32) * 0.1
    b_cpr = jnp.zeros((CPR_DIM,), jnp.float32)
    w_sm = jax.random.normal(k_sm, (NUM_RELS, CPR_DIM), jnp.float32) * 0.1
    b_sm = jnp.zeros((NUM_RELS,), jnp.float32)

    # synthetic "sentences": padded token ids + lengths (stand-in for the word lists;
    # host-side word->id lookup replaces sumNN.word_dict)
    left_tok = jax.random.randint(k_ltok, (BATCH, MAX_LEN), 0, VOC_SIZE, dtype=jnp.int32)
    right_tok = jax.random.randint(k_rtok, (BATCH, MAX_LEN), 0, VOC_SIZE, dtype=jnp.int32)
    left_len = jax.random.randint(k_llen, (BATCH,), 2, MAX_LEN + 1, dtype=jnp.int32)
    right_len = jax.random.randint(k_rlen, (BATCH,), 2, MAX_LEN + 1, dtype=jnp.int32)

    out = sumnn_forward(left_tok, right_tok, left_len, right_len,
                        emb, w_cpr, b_cpr, w_sm, b_sm, b_tile=B_TILE)
    out = jax.block_until_ready(out)

    # pure-JAX reference (same intentional bf16 parameter rounding, f32 accumulation)
    emb_q = emb.astype(jnp.bfloat16).astype(jnp.float32)

    def masked_sum(tok, ln):
        mask = (jnp.arange(MAX_LEN)[None, :] < ln[:, None]).astype(jnp.float32)
        return jnp.einsum('bl,bld->bd', mask, emb_q[tok])

    l_sum = masked_sum(left_tok, left_len)
    r_sum = masked_sum(right_tok, right_len)
    concat = jnp.concatenate([l_sum, r_sum], axis=-1)
    h_ref = jnp.dot(concat.astype(jnp.bfloat16), w_cpr.T.astype(jnp.bfloat16),
                    preferred_element_type=jnp.float32) + b_cpr
    h_ref = jnp.where(h_ref > 0, h_ref, 0.01 * h_ref)
    logits_ref = jnp.dot(h_ref.astype(jnp.bfloat16), w_sm.T.astype(jnp.bfloat16),
                         preferred_element_type=jnp.float32) + b_sm
    ref = jax.nn.log_softmax(logits_ref, axis=-1)

    assert out.shape == (BATCH, NUM_RELS)
    max_err = float(jnp.max(jnp.abs(out - ref)))
    assert jnp.allclose(out, ref, atol=1e-4, rtol=1e-4), max_err
    print("KERNEL_OK")
</pallas_src>

<mosaic_0001>
module attributes {stable_mosaic.version = 11 : i64} {
  func.func @sumnn_kernel(%arg0: i32, %arg1: memref<128x6xi32, #tpu.memory_space<vmem>>, %arg2: memref<128x6xi32, #tpu.memory_space<vmem>>, %arg3: memref<128x1xi32, #tpu.memory_space<vmem>>, %arg4: memref<128x1xi32, #tpu.memory_space<vmem>>, %arg5: memref<16x8xbf16, #tpu.memory_space<vmem>>, %arg6: memref<16x32xbf16, #tpu.memory_space<vmem>>, %arg7: memref<1x32xf32, #tpu.memory_space<vmem>>, %arg8: memref<32x128xbf16, #tpu.memory_space<vmem>>, %arg9: memref<1x128xf32, #tpu.memory_space<vmem>>, %arg10: memref<128x128xf32, #tpu.memory_space<vmem>>) attributes {dimension_semantics = [#tpu.dimension_semantics<parallel>], iteration_bounds = array<i64: 4>, scalar_prefetch = 0 : i64, scratch_operands = 0 : i64, tpu.core_type = #tpu.core_type<tc>, window_params = [{transform_indices = @transform_0, window_bounds = array<i64: 128, 6>}, {transform_indices = @transform_1, window_bounds = array<i64: 128, 6>}, {transform_indices = @transform_2, window_bounds = array<i64: 128, 1>}, {transform_indices = @transform_3, window_bounds = array<i64: 128, 1>}, {pipeline_mode = #tpu.pipeline_mode<synchronous>, transform_indices = @transform_4, window_bounds = array<i64: 16, 8>}, {pipeline_mode = #tpu.pipeline_mode<synchronous>, transform_indices = @transform_5, window_bounds = array<i64: 16, 32>}, {pipeline_mode = #tpu.pipeline_mode<synchronous>, transform_indices = @transform_6, window_bounds = array<i64: 1, 32>}, {pipeline_mode = #tpu.pipeline_mode<synchronous>, transform_indices = @transform_7, window_bounds = array<i64: 32, 128>}, {pipeline_mode = #tpu.pipeline_mode<synchronous>, transform_indices = @transform_8, window_bounds = array<i64: 1, 128>}, {transform_indices = @transform_9, window_bounds = array<i64: 128, 128>}]} {
    %0 = tpu.iota {dimensions = array<i32: 1>} : vector<128x16xi32>
    %1 = tpu.iota {dimensions = array<i32: 1>} : vector<128x6xi32>
    %c0 = arith.constant 0 : index
    %c0_0 = arith.constant 0 : index
    %2 = vector.load %arg5[%c0, %c0_0] : memref<16x8xbf16, #tpu.memory_space<vmem>>, vector<16x8xbf16>
    %c0_1 = arith.constant 0 : index
    %c0_2 = arith.constant 0 : index
    %3 = vector.load %arg1[%c0_1, %c0_2] : memref<128x6xi32, #tpu.memory_space<vmem>>, vector<128x6xi32>
    %c0_3 = arith.constant 0 : index
    %c0_4 = arith.constant 0 : index
    %4 = vector.load %arg3[%c0_3, %c0_4] : memref<128x1xi32, #tpu.memory_space<vmem>>, vector<128x1xi32>
    %5 = vector.broadcast %4 : vector<128x1xi32> to vector<128x6xi32>
    %6 = arith.cmpi slt, %1, %5 : vector<128x6xi32>
    %c16_i32 = arith.constant 16 : i32
    %7 = vector.broadcast %c16_i32 : i32 to vector<128x6xi32>
    %8 = arith.select %6, %3, %7 : vector<128x6xi1>, vector<128x6xi32>
    %cst = arith.constant 0.000000e+00 : f32
    %9 = vector.broadcast %cst : f32 to vector<128x16xf32>
    %10 = vector.extract_strided_slice %8 {offsets = [0, 0], sizes = [128, 1], strides = [1, 1]} : vector<128x6xi32> to vector<128x1xi32>
    %11 = vector.broadcast %10 : vector<128x1xi32> to vector<128x16xi32>
    %12 = arith.cmpi eq, %11, %0 : vector<128x16xi32>
    %13 = arith.extui %12 : vector<128x16xi1> to vector<128x16xi32>
    %14 = arith.sitofp %13 : vector<128x16xi32> to vector<128x16xf32>
    %15 = arith.addf %9, %14 : vector<128x16xf32>
    %16 = vector.extract_strided_slice %8 {offsets = [0, 1], sizes = [128, 1], strides = [1, 1]} : vector<128x6xi32> to vector<128x1xi32>
    %17 = vector.broadcast %16 : vector<128x1xi32> to vector<128x16xi32>
    %18 = arith.cmpi eq, %17, %0 : vector<128x16xi32>
    %19 = arith.extui %18 : vector<128x16xi1> to vector<128x16xi32>
    %20 = arith.sitofp %19 : vector<128x16xi32> to vector<128x16xf32>
    %21 = arith.addf %15, %20 : vector<128x16xf32>
    %22 = vector.extract_strided_slice %8 {offsets = [0, 2], sizes = [128, 1], strides = [1, 1]} : vector<128x6xi32> to vector<128x1xi32>
    %23 = vector.broadcast %22 : vector<128x1xi32> to vector<128x16xi32>
    %24 = arith.cmpi eq, %23, %0 : vector<128x16xi32>
    %25 = arith.extui %24 : vector<128x16xi1> to vector<128x16xi32>
    %26 = arith.sitofp %25 : vector<128x16xi32> to vector<128x16xf32>
    %27 = arith.addf %21, %26 : vector<128x16xf32>
    %28 = vector.extract_strided_slice %8 {offsets = [0, 3], sizes = [128, 1], strides = [1, 1]} : vector<128x6xi32> to vector<128x1xi32>
    %29 = vector.broadcast %28 : vector<128x1xi32> to vector<128x16xi32>
    %30 = arith.cmpi eq, %29, %0 : vector<128x16xi32>
    %31 = arith.extui %30 : vector<128x16xi1> to vector<128x16xi32>
    %32 = arith.sitofp %31 : vector<128x16xi32> to vector<128x16xf32>
    %33 = arith.addf %27, %32 : vector<128x16xf32>
    %34 = vector.extract_strided_slice %8 {offsets = [0, 4], sizes = [128, 1], strides = [1, 1]} : vector<128x6xi32> to vector<128x1xi32>
    %35 = vector.broadcast %34 : vector<128x1xi32> to vector<128x16xi32>
    %36 = arith.cmpi eq, %35, %0 : vector<128x16xi32>
    %37 = arith.extui %36 : vector<128x16xi1> to vector<128x16xi32>
    %38 = arith.sitofp %37 : vector<128x16xi32> to vector<128x16xf32>
    %39 = arith.addf %33, %38 : vector<128x16xf32>
    %40 = vector.extract_strided_slice %8 {offsets = [0, 5], sizes = [128, 1], strides = [1, 1]} : vector<128x6xi32> to vector<128x1xi32>
    %41 = vector.broadcast %40 : vector<128x1xi32> to vector<128x16xi32>
    %42 = arith.cmpi eq, %41, %0 : vector<128x16xi32>
    %43 = arith.extui %42 : vector<128x16xi1> to vector<128x16xi32>
    %44 = arith.sitofp %43 : vector<128x16xi32> to vector<128x16xf32>
    %45 = arith.addf %39, %44 : vector<128x16xf32>
    %46 = arith.truncf %45 : vector<128x16xf32> to vector<128x16xbf16>
    %cst_5 = arith.constant dense<0.000000e+00> : vector<128x8xf32>
    %47 = tpu.matmul %46, %2, %cst_5 {dimension_numbers = #tpu.dot_dimension_numbers<[1], [0], [0], [1], [0, 0, 1, 1], [], []>} : vector<128x16xbf16>, vector<16x8xbf16>, vector<128x8xf32> -> vector<128x8xf32>
    %c0_6 = arith.constant 0 : index
    %c0_7 = arith.constant 0 : index
    %48 = vector.load %arg2[%c0_6, %c0_7] : memref<128x6xi32, #tpu.memory_space<vmem>>, vector<128x6xi32>
    %c0_8 = arith.constant 0 : index
    %c0_9 = arith.constant 0 : index
    %49 = vector.load %arg4[%c0_8, %c0_9] : memref<128x1xi32, #tpu.memory_space<vmem>>, vector<128x1xi32>
    %50 = vector.broadcast %49 : vector<128x1xi32> to vector<128x6xi32>
    %51 = arith.cmpi slt, %1, %50 : vector<128x6xi32>
    %c16_i32_10 = arith.constant 16 : i32
    %52 = vector.broadcast %c16_i32_10 : i32 to vector<128x6xi32>
    %53 = arith.select %51, %48, %52 : vector<128x6xi1>, vector<128x6xi32>
    %cst_11 = arith.constant 0.000000e+00 : f32
    %54 = vector.broadcast %cst_11 : f32 to vector<128x16xf32>
    %55 = vector.extract_strided_slice %53 {offsets = [0, 0], sizes = [128, 1], strides = [1, 1]} : vector<128x6xi32> to vector<128x1xi32>
    %56 = vector.broadcast %55 : vector<128x1xi32> to vector<128x16xi32>
    %57 = arith.cmpi eq, %56, %0 : vector<128x16xi32>
    %58 = arith.extui %57 : vector<128x16xi1> to vector<128x16xi32>
    %59 = arith.sitofp %58 : vector<128x16xi32> to vector<128x16xf32>
    %60 = arith.addf %54, %59 : vector<128x16xf32>
    %61 = vector.extract_strided_slice %53 {offsets = [0, 1], sizes = [128, 1], strides = [1, 1]} : vector<128x6xi32> to vector<128x1xi32>
    %62 = vector.broadcast %61 : vector<128x1xi32> to vector<128x16xi32>
    %63 = arith.cmpi eq, %62, %0 : vector<128x16xi32>
    %64 = arith.extui %63 : vector<128x16xi1> to vector<128x16xi32>
    %65 = arith.sitofp %64 : vector<128x16xi32> to vector<128x16xf32>
    %66 = arith.addf %60, %65 : vector<128x16xf32>
    %67 = vector.extract_strided_slice %53 {offsets = [0, 2], sizes = [128, 1], strides = [1, 1]} : vector<128x6xi32> to vector<128x1xi32>
    %68 = vector.broadcast %67 : vector<128x1xi32> to vector<128x16xi32>
    %69 = arith.cmpi eq, %68, %0 : vector<128x16xi32>
    %70 = arith.extui %69 : vector<128x16xi1> to vector<128x16xi32>
    %71 = arith.sitofp %70 : vector<128x16xi32> to vector<128x16xf32>
    %72 = arith.addf %66, %71 : vector<128x16xf32>
    %73 = vector.extract_strided_slice %53 {offsets = [0, 3], sizes = [128, 1], strides = [1, 1]} : vector<128x6xi32> to vector<128x1xi32>
    %74 = vector.broadcast %73 : vector<128x1xi32> to vector<128x16xi32>
    %75 = arith.cmpi eq, %74, %0 : vector<128x16xi32>
    %76 = arith.extui %75 : vector<128x16xi1> to vector<128x16xi32>
    %77 = arith.sitofp %76 : vector<128x16xi32> to vector<128x16xf32>
    %78 = arith.addf %72, %77 : vector<128x16xf32>
    %79 = vector.extract_strided_slice %53 {offsets = [0, 4], sizes = [128, 1], strides = [1, 1]} : vector<128x6xi32> to vector<128x1xi32>
    %80 = vector.broadcast %79 : vector<128x1xi32> to vector<128x16xi32>
    %81 = arith.cmpi eq, %80, %0 : vector<128x16xi32>
    %82 = arith.extui %81 : vector<128x16xi1> to vector<128x16xi32>
    %83 = arith.sitofp %82 : vector<128x16xi32> to vector<128x16xf32>
    %84 = arith.addf %78, %83 : vector<128x16xf32>
    %85 = vector.extract_strided_slice %53 {offsets = [0, 5], sizes = [128, 1], strides = [1, 1]} : vector<128x6xi32> to vector<128x1xi32>
    %86 = vector.broadcast %85 : vector<128x1xi32> to vector<128x16xi32>
    %87 = arith.cmpi eq, %86, %0 : vector<128x16xi32>
    %88 = arith.extui %87 : vector<128x16xi1> to vector<128x16xi32>
    %89 = arith.sitofp %88 : vector<128x16xi32> to vector<128x16xf32>
    %90 = arith.addf %84, %89 : vector<128x16xf32>
    %91 = arith.truncf %90 : vector<128x16xf32> to vector<128x16xbf16>
    %cst_12 = arith.constant dense<0.000000e+00> : vector<128x8xf32>
    %92 = tpu.matmul %91, %2, %cst_12 {dimension_numbers = #tpu.dot_dimension_numbers<[1], [0], [0], [1], [0, 0, 1, 1], [], []>} : vector<128x16xbf16>, vector<16x8xbf16>, vector<128x8xf32> -> vector<128x8xf32>
    %93 = tpu.concatenate %47, %92 in 1 : vector<128x8xf32>, vector<128x8xf32> -> vector<128x16xf32>
    %94 = arith.truncf %93 : vector<128x16xf32> to vector<128x16xbf16>
    %c0_13 = arith.constant 0 : index
    %c0_14 = arith.constant 0 : index
    %95 = vector.load %arg6[%c0_13, %c0_14] : memref<16x32xbf16, #tpu.memory_space<vmem>>, vector<16x32xbf16>
    %cst_15 = arith.constant dense<0.000000e+00> : vector<128x32xf32>
    %96 = tpu.matmul %94, %95, %cst_15 {dimension_numbers = #tpu.dot_dimension_numbers<[1], [0], [0], [1], [0, 0, 1, 1], [], []>} : vector<128x16xbf16>, vector<16x32xbf16>, vector<128x32xf32> -> vector<128x32xf32>
    %c0_16 = arith.constant 0 : index
    %c0_17 = arith.constant 0 : index
    %97 = vector.load %arg7[%c0_16, %c0_17] : memref<1x32xf32, #tpu.memory_space<vmem>>, vector<1x32xf32>
    %98 = vector.broadcast %97 : vector<1x32xf32> to vector<128x32xf32>
    %99 = arith.addf %96, %98 : vector<128x32xf32>
    %cst_18 = arith.constant 0.000000e+00 : f32
    %100 = vector.broadcast %cst_18 : f32 to vector<128x32xf32>
    %101 = arith.cmpf ogt, %99, %100 : vector<128x32xf32>
    %cst_19 = arith.constant 0.00999999977 : f32
    %102 = vector.broadcast %cst_19 : f32 to vector<128x32xf32>
    %103 = arith.mulf %102, %99 : vector<128x32xf32>
    %104 = arith.select %101, %99, %103 : vector<128x32xi1>, vector<128x32xf32>
    %105 = arith.truncf %104 : vector<128x32xf32> to vector<128x32xbf16>
    %c0_20 = arith.constant 0 : index
    %c0_21 = arith.constant 0 : index
    %106 = vector.load %arg8[%c0_20, %c0_21] : memref<32x128xbf16, #tpu.memory_space<vmem>>, vector<32x128xbf16>
    %cst_22 = arith.constant dense<0.000000e+00> : vector<128x128xf32>
    %107 = tpu.matmul %105, %106, %cst_22 {dimension_numbers = #tpu.dot_dimension_numbers<[1], [0], [0], [1], [0, 0, 1, 1], [], []>} : vector<128x32xbf16>, vector<32x128xbf16>, vector<128x128xf32> -> vector<128x128xf32>
    %c0_23 = arith.constant 0 : index
    %c0_24 = arith.constant 0 : index
    %108 = vector.load %arg9[%c0_23, %c0_24] : memref<1x128xf32, #tpu.memory_space<vmem>>, vector<1x128xf32>
    %109 = vector.broadcast %108 : vector<1x128xf32> to vector<128x128xf32>
    %110 = arith.addf %107, %109 : vector<128x128xf32>
    %cst_25 = arith.constant dense<0xFF800000> : vector<128xf32>
    %111 = vector.multi_reduction <maximumf>, %110, %cst_25 [1] : vector<128x128xf32> to vector<128xf32>
    %112 = vector.shape_cast %111 : vector<128xf32> to vector<128x1xf32>
    %113 = vector.broadcast %112 : vector<128x1xf32> to vector<128x128xf32>
    %114 = arith.subf %110, %113 : vector<128x128xf32>
    %115 = math.exp %114 : vector<128x128xf32>
    %cst_26 = arith.constant dense<0.000000e+00> : vector<128xf32>
    %116 = vector.multi_reduction <add>, %115, %cst_26 [1] : vector<128x128xf32> to vector<128xf32>
    %117 = vector.shape_cast %116 : vector<128xf32> to vector<128x1xf32>
    %118 = math.log %117 : vector<128x1xf32>
    %119 = arith.addf %112, %118 : vector<128x1xf32>
    %120 = vector.broadcast %119 : vector<128x1xf32> to vector<128x128xf32>
    %121 = arith.subf %110, %120 : vector<128x128xf32>
    %c0_27 = arith.constant 0 : index
    %c0_28 = arith.constant 0 : index
    %122 = vector.load %arg10[%c0_27, %c0_28] : memref<128x128xf32, #tpu.memory_space<vmem>>, vector<128x128xf32>
    tpu.vector_store %arg10[%c0_27, %c0_28], %121 {strides = array<i32>} : memref<128x128xf32, #tpu.memory_space<vmem>>, vector<128x128xf32>,
    return
  }
  func.func @transform_0(%arg0: i32) -> (i32, i32) {
    %c0_i32 = arith.constant 0 : i32
    %c0_i32_0 = arith.constant 0 : i32
    return %arg0, %c0_i32 : i32, i32
  }
  func.func @transform_1(%arg0: i32) -> (i32, i32) {
    %c0_i32 = arith.constant 0 : i32
    %c0_i32_0 = arith.constant 0 : i32
    return %arg0, %c0_i32 : i32, i32
  }
  func.func @transform_2(%arg0: i32) -> (i32, i32) {
    %c0_i32 = arith.constant 0 : i32
    %c0_i32_0 = arith.constant 0 : i32
    return %arg0, %c0_i32 : i32, i32
  }
  func.func @transform_3(%arg0: i32) -> (i32, i32) {
    %c0_i32 = arith.constant 0 : i32
    %c0_i32_0 = arith.constant 0 : i32
    return %arg0, %c0_i32 : i32, i32
  }
  func.func @transform_4(%arg0: i32) -> (i32, i32) {
    %c0_i32 = arith.constant 0 : i32
    %c0_i32_0 = arith.constant 0 : i32
    %c0_i32_1 = arith.constant 0 : i32
    return %c0_i32, %c0_i32_0 : i32, i32
  }
  func.func @transform_5(%arg0: i32) -> (i32, i32) {
    %c0_i32 = arith.constant 0 : i32
    %c0_i32_0 = arith.constant 0 : i32
    %c0_i32_1 = arith.constant 0 : i32
    return %c0_i32, %c0_i32_0 : i32, i32
  }
  func.func @transform_6(%arg0: i32) -> (i32, i32) {
    %c0_i32 = arith.constant 0 : i32
    %c0_i32_0 = arith.constant 0 : i32
    %c0_i32_1 = arith.constant 0 : i32
    return %c0_i32, %c0_i32_0 : i32, i32
  }
  func.func @transform_7(%arg0: i32) -> (i32, i32) {
    %c0_i32 = arith.constant 0 : i32
    %c0_i32_0 = arith.constant 0 : i32
    %c0_i32_1 = arith.constant 0 : i32
    return %c0_i32, %c0_i32_0 : i32, i32
  }
  func.func @transform_8(%arg0: i32) -> (i32, i32) {
    %c0_i32 = arith.constant 0 : i32
    %c0_i32_0 = arith.constant 0 : i32
    %c0_i32_1 = arith.constant 0 : i32
    return %c0_i32, %c0_i32_0 : i32, i32
  }
  func.func @transform_9(%arg0: i32) -> (i32, i32) {
    %c0_i32 = arith.constant 0 : i32
    %c0_i32_0 = arith.constant 0 : i32
    return %arg0, %c0_i32 : i32, i32
  }
}

</mosaic_0001>

<bundles_post_ra>
// kernel: tpu_custom_call.1
= control target key start
LH: loop header
LB: loop body
LE: loop exit
PB: predicated region body
PF: predicated region fallthrough
CT: control target
= control target key end

     0   :  { %14 = vsyncpa [#allocation3], 0  ;;  %s5546_s0 = inlined_call_operand.vmem [shape: s32[512,6], index: 0, kind: input, shape index: {}]   ;;  %s5547_s1 = inlined_call_operand.vmem [shape: s32[512,6], index: 1, kind: input, shape index: {}]   ;;  %s5548_s2 = inlined_call_operand.vmem [shape: s32[512,1], index: 2, kind: input, shape index: {}]   ;;  %s5549_s3 = inlined_call_operand.vmem [shape: s32[512,1], index: 3, kind: input, shape index: {}]   ;;  %s5550_s4 = inlined_call_operand.vmem [shape: bf16[16,8], index: 4, kind: input, shape index: {}]   ;;  %s5551_s5 = inlined_call_operand.vmem [shape: bf16[16,32], index: 5, kind: input, shape index: {}]   ;;  %s5552_s6 = inlined_call_operand.vmem [shape: f32[1,32], index: 6, kind: input, shape index: {}]   ;;  %s5553_s7 = inlined_call_operand.vmem [shape: bf16[32,128], index: 7, kind: input, shape index: {}]   ;;  %s5554_s8 = inlined_call_operand.vmem [shape: f32[1,128], index: 8, kind: input, shape index: {}]   ;;  %s5555_s9 = inlined_call_operand.hbm [shape: f32[512,128], index: 9, kind: output, shape index: {}]  }
   0x1   :  { %16 = vsyncpa [#allocation3 + $0x1], 0  ;;  %s3696_s30 = smov 0   ;;  %s3698_s10 = smov 0  }
   0x2   :  { %s3700_s11 = smov 0   ;;  %s3702_s12 = smov 0  }
   0x3 LB: > { %s3717_s13 = sadd.s32 4294967295, %s3634_s12   ;;  %s2968_s14 = sadd.s32 4294967294, %s3634_s12   ;;  %s3634_s12 = sphi %s3702_s12, %s5737_s12   ;;  %s3630_s11 = sphi %s3700_s11, %s5736_s11   ;;  %s3626_s10 = sphi %s3698_s10, %s5735_s10   ;;  %s3622_s30 = sphi %s3696_s30, %s5734_s30  }
   0x4   : > { %s3721_s15 = sadd.s32 1, %s3634_s12   ;;  %s238_s16 = sadd.s32 1, %s3630_s11 }
   0x5   : > { %s235_s17 = ssub.s32 %s3634_s12, %s3721_s15  ;;  %p248_p0 = scmp.ne.s32.totalorder %s3630_s11, %s3626_s10 }
   0x6   : > { %p236_p1 = scmp.eq.s32.totalorder %s235_s17, 0  ;;  %p249_p2 = scmp.eq.s32.totalorder %s3717_s13, 3 }
   0x7   : > { %p254_p3 = scmp.ne.s32.totalorder %s3626_s10, %s3622_s30  ;;  %p255_p4 = scmp.eq.s32.totalorder %s2968_s14, 3 }
   0x8   : > { %s3732_s18 = scalar_select %p236_p1, %s3630_s11, %s238_s16  }
   0x9   : > { %p3734_p5 = por %p249_p2, %p248_p0  ;;  %p3738_p6 = por %p255_p4, %p254_p3 }
   0xa   : > { %p2971_p7 = scmp.ge.s32.totalorder %s3634_s12, 1  ;;  %p324_p8 = scmp.lt.s32.totalorder %s3634_s12, 5 }
   0xc   : > { %p325_p9 = pnand %p2971_p7, %p324_p8 }
   0xe   : > { %328 = sbr.rel (%p325_p9) target bundleno = 1861 (0x745), region = 56 }
  0x15   : > { %s2973_s21 = sshll.u32 %s3717_s13, 4  ;;  %v5567_v0 = vmov 0   ;;  %v401_v29 = vlaneseq  ;;  %v5562_v42 = vmov 1   ;;  %v5556_v43 = vmov 3   ;;  %s3643_s27 = smov 8  }
  0x16   : > { %3377 = vset.pattern.permute.xlu1 %v5567_v0  ;;  %3376 = vset.pattern.permute.xlu0 %v5567_v0  ;;  %p376_p10 = scmp.lt.s32.totalorder %s2973_s21, 63  ;;  %v5564_v47 = vmov 4   ;;  %v5558_v57 = vmov 2   ;;  %s372_s24 = sand.u32 1, %s3626_s10  }
  0x17   : > { %v3777_v30 = vand.u32 127, %v401_v29 }
  0x18   : > { %s5739_s21 = smov (!%p376_p10, %s2973_s21), 63 }
  0x19   : > { %s3747_s22 = sshll.u32 %s5739_s21, 3 }
  0x1a   : > { %s397_s25 = scalar_lea.vmem %s5549_s3, %s3747_s22  ;;  %s3757_s28 = scalar_lea.vmem %s5548_s2, %s3747_s22 }
  0x1b   : > { %v1343_v1 = vld [vmem:[%s397_s25 + $0x10] sm:$0xff]  ;;  %v1341_v2 = vld [vmem:[%s397_s25] sm:$0xff]  ;;  %v1344_v3 = vld [vmem:[%s397_s25 + $0x18] sm:$0xff]  ;;  %s3775_s16 = scalar_lea.vmem %s5547_s1, %s3747_s22  ;;  %s3909_s23 = scalar_lea.vmem %s5546_s0, %s3747_s22 }
  0x1c   : > { %1364 = vperm.xlu1 %3377, %v1343_v1   ;;  %1358 = vperm.xlu0 %3376, %v1341_v2   ;;  %v1342_v4 = vld [vmem:[%s397_s25 + $0x8] sm:$0xff]  ;;  %v1345_v6 = vld [vmem:[%s397_s25 + $0x20] sm:$0xff]  ;;  %v1348_v7 = vld [vmem:[%s397_s25 + $0x38] sm:$0xff] }
  0x1d   : > { %v1346_v5 = vld [vmem:[%s397_s25 + $0x28] sm:$0xff]  ;;  %v1347_v8 = vld [vmem:[%s397_s25 + $0x30] sm:$0xff]  ;;  %v1349_v10 = vld [vmem:[%s397_s25 + $0x40] sm:$0xff] }
  0x1e   : > { %v1350_v9 = vld [vmem:[%s397_s25 + $0x48] sm:$0xff]  ;;  %v1352_v11 = vld [vmem:[%s397_s25 + $0x58] sm:$0xff]  ;;  %v1351_v12 = vld [vmem:[%s397_s25 + $0x50] sm:$0xff] }
  0x1f   : > { %v1354_v13 = vld [vmem:[%s397_s25 + $0x68] sm:$0xff]  ;;  %v1353_v14 = vld [vmem:[%s397_s25 + $0x60] sm:$0xff]  ;;  %v1356_v15 = vld [vmem:[%s397_s25 + $0x78] sm:$0xff] }
  0x20   : > { %1367 = vperm.xlu1 %3377, %v1344_v3   ;;  %1361 = vperm.xlu0 %3376, %v1342_v4   ;;  %v1355_v16 = vld [vmem:[%s397_s25 + $0x70] sm:$0xff]  ;;  %v422_v17 = vld [vmem:[%s3757_s28 + $0x8] sm:$0xff]  ;;  %v421_v18 = vld [vmem:[%s3757_s28] sm:$0xff]  ;;  %s2972_s25 = sshll.u32 %s372_s24, 7 }
  0x21   : > { %v424_v19 = vld [vmem:[%s3757_s28 + $0x18] sm:$0xff]  ;;  %v423_v20 = vld [vmem:[%s3757_s28 + $0x10] sm:$0xff]  ;;  %v426_v21 = vld [vmem:[%s3757_s28 + $0x28] sm:$0xff]  ;;  %s5445_s26 = scalar_lea.vmem [#allocation2], %s2972_s25 }
  0x22   : > { %v425_v22 = vld [vmem:[%s3757_s28 + $0x20] sm:$0xff]  ;;  %v428_v23 = vld [vmem:[%s3757_s28 + $0x38] sm:$0xff]  ;;  %v427_v24 = vld [vmem:[%s3757_s28 + $0x30] sm:$0xff]  ;;  %s2870_s29 = sshll.u32 %s5445_s26, 4  ;;  %s5499_s29 = int_to_ptr.vmem [resolvable:$true] %s2870_s29 }
  0x23   : > { %v429_v25 = vld [vmem:[%s3757_s28 + $0x40] sm:$0xff]  ;;  %v430_v26 = vld [vmem:[%s3757_s28 + $0x48] sm:$0xff]  ;;  %v432_v27 = vld [vmem:[%s3757_s28 + $0x58] sm:$0xff]  ;;  %s3572_s21 = scalar_lea.vmem %s5499_s29, 2048 }
  0x24   : > { %1373 = vperm.xlu1 %3377, %v1346_v5   ;;  %1370 = vperm.xlu0 %3376, %v1345_v6   ;;  %v431_v28 = vld [vmem:[%s3757_s28 + $0x50] sm:$0xff]  ;;  %v1325_v31 = vld [vmem:[%s3775_s16] sm:$0xff]  ;;  %v1328_v35 = vld [vmem:[%s3775_s16 + $0x18] sm:$0xff]  ;;  %p3573_p11 = scmp.ne.s32.totalorder %s5499_s29, %s3572_s21 }
  0x25   : > { %v1326_v36 = vld [vmem:[%s3775_s16 + $0x8] sm:$0xff]  ;;  %v1327_v41 = vld [vmem:[%s3775_s16 + $0x10] sm:$0xff]  ;;  %v1329_v52 = vld [vmem:[%s3775_s16 + $0x20] sm:$0xff] }
  0x26   : > { %v1330_v48 = vld [vmem:[%s3775_s16 + $0x28] sm:$0xff]  ;;  %v1333_v60 = vld [vmem:[%s3775_s16 + $0x40] sm:$0xff]  ;;  %v1336_v63 = vld [vmem:[%s3775_s16 + $0x58] sm:$0xff]  ;;  %p3574_p12 = pnand %p3573_p11, %p3734_p5 }
  0x27   : > { %v1334_v56 = vld [vmem:[%s3775_s16 + $0x48] sm:$0xff]  ;;  %v1337_v4 = vld [vmem:[%s3775_s16 + $0x60] sm:$0xff] }
  0x28   : > { %1379 = vperm.xlu1 %3377, %v1348_v7   ;;  %1376 = vperm.xlu0 %3376, %v1347_v8   ;;  %v1340_v7 = vld [vmem:[%s3775_s16 + $0x78] sm:$0xff]  ;;  %p3575_p13 = pneg %p3574_p12 }
  0x2c   : > { %1385 = vperm.xlu1 %3377, %v1350_v9   ;;  %1382 = vperm.xlu0 %3376, %v1349_v10   ;;  %v1338_v9 = vld [vmem:[%s3775_s16 + $0x68] sm:$0xff] }
  0x30   : > { %1391 = vperm.xlu1 %3377, %v1352_v11   ;;  %1388 = vperm.xlu0 %3376, %v1351_v12   ;;  %v5560_v11 = vmov 5  }
  0x34   : > { %1397 = vperm.xlu1 %3377, %v1354_v13   ;;  %1394 = vperm.xlu0 %3376, %v1353_v14   ;;  %v1332_v13 = vld [vmem:[%s3775_s16 + $0x38] sm:$0xff] }
  0x38   : > { %1403 = vperm.xlu1 %3377, %v1356_v15   ;;  %1400 = vperm.xlu0 %3376, %v1355_v16   ;;  %v1335_v16 = vld [vmem:[%s3775_s16 + $0x50] sm:$0xff] }
  0x3c   : > { %441 = vperm.xlu1 %3377, %v422_v17   ;;  %438 = vperm.xlu0 %3376, %v421_v18   ;;  %v1331_v17 = vld [vmem:[%s3775_s16 + $0x30] sm:$0xff] }
  0x40   : > { %447 = vperm.xlu1 %3377, %v424_v19   ;;  %444 = vperm.xlu0 %3376, %v423_v20  }
  0x44   : > { %453 = vperm.xlu1 %3377, %v426_v21   ;;  %450 = vperm.xlu0 %3376, %v425_v22   ;;  %v409_v22 = vld [vmem:[%s3909_s23 + $0x20] sm:$0xff] }
  0x48   : > { %459 = vperm.xlu1 %3377, %v428_v23   ;;  %456 = vperm.xlu0 %3376, %v427_v24  }
  0x4c   : > { %462 = vperm.xlu1 %3377, %v429_v25   ;;  %465 = vperm.xlu0 %3376, %v430_v26   ;;  %v411_v25 = vld [vmem:[%s3909_s23 + $0x30] sm:$0xff] }
  0x50   : > { %471 = vperm.xlu1 %3377, %v432_v27   ;;  %468 = vperm.xlu0 %3376, %v431_v28   ;;  %v434_v28 = vld [vmem:[%s3757_s28 + $0x68] sm:$0xff] }
  0x9b   : > { %v1365_v32 = vpop.permute.xlu1 %1364  ;;  %v1359_v33 = vpop.permute.xlu0 %1358 }
  0x9c   : > { %vm1405_vm0 = vcmp.lt.s32.totalorder %v3777_v30, %v1359_v33  ;;  %vm1407_vm3 = vcmp.lt.s32.totalorder %v3777_v30, %v1365_v32 }
  0x9d   : > { %v3781_v34 = vsel %vm1405_vm0, %v1325_v31, 16  ;;  %v3800_v45 = vsel %vm1407_vm3, %v1327_v41, 16  ;;  %v435_v31 = vld [vmem:[%s3757_s28 + $0x70] sm:$0xff] }
  0x9e   : > { %1438 = vperm.xlu0 %3376, %v3781_v34  }
  0x9f   : > { %v1368_v37 = vpop.permute.xlu1 %1367  ;;  %v1362_v38 = vpop.permute.xlu0 %1361 }
  0xa0   : > { %vm1408_vm1 = vcmp.lt.s32.totalorder %v3777_v30, %v1368_v37  ;;  %vm1406_vm2 = vcmp.lt.s32.totalorder %v3777_v30, %v1362_v38 }
  0xa1   : > { %v3788_v39 = vsel %vm1408_vm1, %v1328_v35, 16  ;;  %v3790_v40 = vsel %vm1406_vm2, %v1326_v36, 16  ;;  %v406_v36 = vld [vmem:[%s3909_s23 + $0x8] sm:$0xff] }
  0xa2   : > { %1441 = vperm.xlu1 %3377, %v3790_v40   ;;  %1447 = vperm.xlu0 %3376, %v3788_v39  }
  0xa3   : > { %v1374_v44 = vpop.permute.xlu1 %1373  ;;  %v1371_v46 = vpop.permute.xlu0 %1370 }
  0xa4   : > { %vm1410_vm4 = vcmp.lt.s32.totalorder %v3777_v30, %v1374_v44  ;;  %vm1409_vm5 = vcmp.lt.s32.totalorder %v3777_v30, %v1371_v46 }
  0xa5   : > { %v3810_v50 = vsel %vm1410_vm4, %v1330_v48, 16  ;;  %v3820_v54 = vsel %vm1409_vm5, %v1329_v52, 16 }
  0xa6   : > { %3378 = vset.pattern.permute.xlu1 %v5562_v42  ;;  %3383 = vset.pattern.permute.xlu0 %v5556_v43 }
  0xa7   : > { %1553 = vperm.xlu1 %3378, %v3790_v40   ;;  %1777 = vperm.xlu0 %3383, %v3790_v40   ;;  %v3808_v49 = vpop.permute.xlu1 %1379  ;;  %v3812_v51 = vpop.permute.xlu0 %1376 }
  0xa8   : > { %vm1412_vm12 = vcmp.lt.s32.totalorder %v3777_v30, %v3808_v49  ;;  %vm1411_vm14 = vcmp.lt.s32.totalorder %v3777_v30, %v3812_v51 }
  0xa9   : > { %v3882_v14 = vsel %vm1412_vm12, %v1332_v13, 16  ;;  %v3898_v20 = vsel %vm1411_vm14, %v1331_v17, 16 }
  0xab   : > { %3379 = vset.pattern.permute.xlu1 %v5567_v0  ;;  %3384 = vset.pattern.permute.xlu0 %v5564_v47  ;;  %v1386_v53 = vpop.permute.xlu1 %1385  ;;  %v1383_v55 = vpop.permute.xlu0 %1382 }
  0xac   : > { %1444 = vperm.xlu1 %3379, %v3800_v45   ;;  %1886 = vperm.xlu0 %3384, %v3781_v34   ;;  %vm1414_vm6 = vcmp.lt.s32.totalorder %v3777_v30, %v1386_v53  ;;  %vm1413_vm7 = vcmp.lt.s32.totalorder %v3777_v30, %v1383_v55 }
  0xad   : > { %v3828_v58 = vsel %vm1414_vm6, %v1334_v56, 16  ;;  %v3836_v62 = vsel %vm1413_vm7, %v1333_v60, 16  ;;  %v416_v56 = vld [vmem:[%s3909_s23 + $0x58] sm:$0xff] }
  0xaf   : > { %v1392_v59 = vpop.permute.xlu1 %1391  ;;  %v1389_v61 = vpop.permute.xlu0 %1388 }
  0xb0   : > { %3380 = vset.pattern.permute.xlu1 %v5562_v42  ;;  %3394 = vset.pattern.permute.xlu0 %v5556_v43  ;;  %vm1416_vm8 = vcmp.lt.s32.totalorder %v3777_v30, %v1392_v59  ;;  %vm1415_vm13 = vcmp.lt.s32.totalorder %v3777_v30, %v1389_v61  ;;  %v436_v59 = vld [vmem:[%s3757_s28 + $0x78] sm:$0xff] }
  0xb1   : > { %1556 = vperm.xlu1 %3380, %v3800_v45   ;;  %1789 = vperm.xlu0 %3394, %v3810_v50   ;;  %v3843_v3 = vsel %vm1416_vm8, %v1336_v63, 16  ;;  %v3896_v19 = vsel %vm1415_vm13, %v1335_v16, 16 }
  0xb3   : > { %v1398_v1 = vpop.permute.xlu1 %1397  ;;  %v1395_v2 = vpop.permute.xlu0 %1394 }
  0xb4   : > { %vm1417_vm9 = vcmp.lt.s32.totalorder %v3777_v30, %v1395_v2  ;;  %vm1418_vm11 = vcmp.lt.s32.totalorder %v3777_v30, %v1398_v1 }
  0xb5   : > { %1559 = vperm.xlu1 %3380, %v3788_v39   ;;  %3395 = vset.pattern.permute.xlu0 %v5564_v47  ;;  %v3850_v6 = vsel %vm1417_vm9, %v1337_v4, 16  ;;  %v3864_v10 = vsel %vm1418_vm11, %v1338_v9, 16 }
  0xb6   : > { %1898 = vperm.xlu0 %3395, %v3820_v54  }
  0xb7   : > { %v1404_v5 = vpop.permute.xlu1 %1403  ;;  %v3873_v12 = vpop.permute.xlu0 %1400 }
  0xb8   : > { %vm1420_vm10 = vcmp.lt.s32.totalorder %v3777_v30, %v1404_v5  ;;  %vm1419_vm5 = vcmp.lt.s32.totalorder %v3777_v30, %v3873_v12 }
  0xb9   : > { %3381 = vset.pattern.permute.xlu1 %v5558_v57  ;;  %v3857_v8 = vsel %vm1420_vm10, %v1340_v7, 16 }
  0xba   : > { %1665 = vperm.xlu1 %3381, %v3790_v40   ;;  %3407 = vset.pattern.permute.xlu0 %v5556_v43 }
  0xbb   : > { %1801 = vperm.xlu0 %3407, %v3828_v58   ;;  %v3884_v15 = vpop.permute.xlu0 %438  ;;  %v442_v27 = vpop.permute.xlu1 %441 }
  0xbc   : > { %vm486_vm1 = vcmp.lt.s32.totalorder %v3777_v30, %v442_v27  ;;  %vm485_vm10 = vcmp.lt.s32.totalorder %v3777_v30, %v3884_v15 }
  0xbd   : > { %v3949_v37 = vsel %vm486_vm1, %v406_v36, 16 }
  0xbe   : > { %1668 = vperm.xlu1 %3381, %v3800_v45  }
  0xbf   : > { %3408 = vset.pattern.permute.xlu0 %v5564_v47  ;;  %v445_v18 = vpop.permute.xlu0 %444  ;;  %v3932_v29 = vpop.permute.xlu1 %447 }
  0xc0   : > { %1910 = vperm.xlu0 %3408, %v3836_v62   ;;  %vm487_vm2 = vcmp.lt.s32.totalorder %v3777_v30, %v445_v18  ;;  %vm488_vm13 = vcmp.lt.s32.totalorder %v3777_v30, %v3932_v29 }
  0xc2   : > { %3382 = vset.pattern.permute.xlu1 %v5556_v43 }
  0xc3   : > { %1774 = vperm.xlu1 %3382, %v3781_v34   ;;  %v451_v21 = vpop.permute.xlu0 %450  ;;  %v3936_v32 = vpop.permute.xlu1 %453 }
  0xc4   : > { %1919 = vperm.xlu0 %3408, %v3843_v3   ;;  %vm489_vm15 = vcmp.lt.s32.totalorder %v3777_v30, %v451_v21  ;;  %vm490_vm8 = vcmp.lt.s32.totalorder %v3777_v30, %v3936_v32  ;;  %v405_v32 = vld [vmem:[%s3909_s23] sm:$0xff] }
  0xc5   : > { %v3916_v24 = vsel %vm489_vm15, %v409_v22, 16 }
  0xc7   : > { %1780 = vperm.xlu1 %3382, %v3800_v45   ;;  %v457_v23 = vpop.permute.xlu0 %456  ;;  %v3943_v33 = vpop.permute.xlu1 %459 }
  0xc8   : > { %3417 = vset.pattern.permute.xlu0 %v5556_v43  ;;  %vm491_vm0 = vcmp.lt.s32.totalorder %v3777_v30, %v457_v23  ;;  %vm492_vm9 = vcmp.lt.s32.totalorder %v3777_v30, %v3943_v33 }
  0xc9   : > { %1810 = vperm.xlu0 %3417, %v3850_v6   ;;  %v3922_v26 = vsel %vm491_vm0, %v411_v25, 16 }
  0xcb   : > { %1783 = vperm.xlu1 %3382, %v3788_v39   ;;  %v466_v35 = vpop.permute.xlu0 %465  ;;  %v3951_v38 = vpop.permute.xlu1 %462 }
  0xcc   : > { %vm494_vm3 = vcmp.lt.s32.totalorder %v3777_v30, %v466_v35  ;;  %vm493_vm14 = vcmp.lt.s32.totalorder %v3777_v30, %v3951_v38 }
  0xcd   : > { %1819 = vperm.xlu0 %3417, %v3857_v8  }
  0xcf   : > { %3385 = vset.pattern.permute.xlu1 %v5564_v47  ;;  %v3957_v41 = vpop.permute.xlu0 %468  ;;  %v472_v46 = vpop.permute.xlu1 %471 }
  0xd0   : > { %1889 = vperm.xlu1 %3385, %v3790_v40   ;;  %vm496_vm4 = vcmp.lt.s32.totalorder %v3777_v30, %v472_v46  ;;  %vm495_vm1 = vcmp.lt.s32.totalorder %v3777_v30, %v3957_v41 }
  0xd1   : > { %3420 = vset.pattern.permute.xlu0 %v5564_v47  ;;  %v3988_v60 = vsel %vm496_vm4, %v416_v56, 16 }
  0xd2   : > { %1925 = vperm.xlu0 %3420, %v3864_v10   ;;  %5591 = vst [vmem:[#allocation5_spill] sm:$0xff] %v3988_v60 }
  0xd4   : > { %1892 = vperm.xlu1 %3385, %v3800_v45  }
  0xd6   : > { %3421 = vset.pattern.permute.xlu0 %v5560_v11 }
  0xd7   : > { %2001 = vperm.xlu0 %3421, %v3790_v40   ;;  %v407_v40 = vld [vmem:[%s3909_s23 + $0x10] sm:$0xff] }
  0xd8   : > { %1895 = vperm.xlu1 %3385, %v3788_v39   ;;  %v3960_v44 = vsel %vm487_vm2, %v407_v40, 16 }
  0xdb   : > { %2007 = vperm.xlu0 %3421, %v3788_v39  }
  0xdc   : > { %3386 = vset.pattern.permute.xlu1 %v5567_v0 }
  0xdd   : > { %1453 = vperm.xlu1 %3386, %v3810_v50  }
  0xdf   : > { %2013 = vperm.xlu0 %3421, %v3810_v50  }
  0xe1   : > { %3387 = vset.pattern.permute.xlu1 %v5562_v42 }
  0xe2   : > { %1565 = vperm.xlu1 %3387, %v3810_v50  }
  0xe3   : > { %2019 = vperm.xlu0 %3421, %v3882_v14  }
  0xe6   : > { %3388 = vset.pattern.permute.xlu1 %v5560_v11 }
  0xe7   : > { %1998 = vperm.xlu1 %3388, %v3781_v34   ;;  %2022 = vperm.xlu0 %3421, %v3836_v62  }
  0xeb   : > { %3389 = vset.pattern.permute.xlu1 %v5567_v0  ;;  %2028 = vperm.xlu0 %3421, %v3896_v19  }
  0xec   : > { %1456 = vperm.xlu1 %3389, %v3898_v20  }
  0xef   : > { %2034 = vperm.xlu0 %3421, %v3850_v6  }
  0xf0   : > { %1459 = vperm.xlu1 %3389, %v3882_v14  }
  0xf3   : > { %2043 = vperm.xlu0 %3421, %v3857_v8  }
  0xf4   : > { %3390 = vset.pattern.permute.xlu1 %v5562_v42 }
  0xf5   : > { %1571 = vperm.xlu1 %3390, %v3882_v14  }
  0xf7   : > { %1090 = vperm.xlu0 %3421, %v3916_v24  }
  0xf9   : > { %3391 = vset.pattern.permute.xlu1 %v5560_v11 }
  0xfa   : > { %2004 = vperm.xlu1 %3391, %v3800_v45   ;;  %v433_v45 = vld [vmem:[%s3757_s28 + $0x60] sm:$0xff]  ;;  %s3216_s28 = sshll.u32 %s3717_s13, 11  ;;  %s5504_s13 = scalar_lea.sflag [#allocation3], %s372_s24 }
  0xfb   : > { %1096 = vperm.xlu0 %3421, %v3922_v26   ;;  %s5495_s17 = scalar_lea.hbm %s5555_s9, %s3216_s28 }
  0xfe   : > { %3392 = vset.pattern.permute.xlu1 %v5558_v57 }
  0xff   : > { %1674 = vperm.xlu1 %3392, %v3820_v54   ;;  %3444 = vset.pattern.permute.xlu0 %v5567_v0 }
 0x100   : > { %1450 = vperm.xlu0 %3444, %v3820_v54  }
 0x103   : > { %1677 = vperm.xlu1 %3392, %v3810_v50  }
 0x104   : > { %477 = vperm.xlu0 %3444, %v434_v28  }
 0x107   : > { %1683 = vperm.xlu1 %3392, %v3882_v14  }
 0x108   : > { %480 = vperm.xlu0 %3444, %v435_v31  }
 0x10b   : > { %3393 = vset.pattern.permute.xlu1 %v5556_v43 }
 0x10c   : > { %1786 = vperm.xlu1 %3393, %v3820_v54   ;;  %1462 = vperm.xlu0 %3444, %v3836_v62  }
 0x110   : > { %1792 = vperm.xlu1 %3393, %v3898_v20   ;;  %1477 = vperm.xlu0 %3444, %v3864_v10  }
 0x114   : > { %1795 = vperm.xlu1 %3393, %v3882_v14   ;;  %1483 = vperm.xlu0 %3444, %v3857_v8  }
 0x118   : > { %3396 = vset.pattern.permute.xlu1 %v5564_v47  ;;  %521 = vperm.xlu0 %3444, %v3949_v37  }
 0x119   : > { %1901 = vperm.xlu1 %3396, %v3810_v50   ;;  %v414_v50 = vld [vmem:[%s3909_s23 + $0x48] sm:$0xff] }
 0x11a   : > { %v3981_v55 = vsel %vm494_vm3, %v414_v50, 16 }
 0x11c   : > { %524 = vperm.xlu0 %3444, %v3960_v44  }
 0x11d   : > { %3397 = vset.pattern.permute.xlu1 %v5567_v0  ;;  %v3965_v48 = vpop.permute.xlu0 %1438 }
 0x11e   : > { %474 = vperm.xlu1 %3397, %v433_v45   ;;  %vm1485_vm2 = vcmp.eq.s32.totalorder %v3965_v48, %v3777_v30 }
 0x120   : > { %530 = vperm.xlu0 %3444, %v3916_v24  }
 0x121   : > { %v3968_v49 = vpop.permute.xlu1 %1441  ;;  %v3970_v51 = vpop.permute.xlu0 %1447 }
 0x122   : > { %3398 = vset.pattern.permute.xlu1 %v5564_v47  ;;  %vm1486_vm0 = vcmp.eq.s32.totalorder %v3968_v49, %v3777_v30  ;;  %vm1488_vm4 = vcmp.eq.s32.totalorder %v3970_v51, %v3777_v30 }
 0x123   : > { %1904 = vperm.xlu1 %3398, %v3898_v20  }
 0x124   : > { %536 = vperm.xlu0 %3444, %v3922_v26  }
 0x126   : > { %v3977_v52 = vpop.permute.xlu1 %1553  ;;  %v3979_v53 = vpop.permute.xlu0 %1777 }
 0x127   : > { %1907 = vperm.xlu1 %3398, %v3882_v14   ;;  %vm1598_vm15 = vcmp.eq.s32.totalorder %v3977_v52, %v3777_v30 }
 0x128   : > { %545 = vperm.xlu0 %3444, %v3981_v55  }
 0x12b   : > { %v3990_v61 = vpop.permute.xlu1 %1444  ;;  %3399 = vset.pattern.permute.xlu1 %v5567_v0  ;;  %v3993_v63 = vpop.permute.xlu0 %1886 }
 0x12c   : > { %483 = vperm.xlu1 %3399, %v436_v59   ;;  %551 = vperm.xlu0 %3444, %v3988_v60  }
 0x130   : > { %v3996_v1 = vpop.permute.xlu1 %1556  ;;  %1465 = vperm.xlu1 %3399, %v3828_v58   ;;  %v3999_v2 = vpop.permute.xlu0 %1789 }
 0x134   : > { %v4001_v4 = vpop.permute.xlu1 %1559  ;;  %3400 = vset.pattern.permute.xlu1 %v5562_v42 }
 0x135   : > { %1577 = vperm.xlu1 %3400, %v3828_v58   ;;  %v4005_v5 = vpop.permute.xlu0 %1898 }
 0x139   : > { %v4007_v7 = vpop.permute.xlu1 %1665  ;;  %3401 = vset.pattern.permute.xlu1 %v5560_v11 }
 0x13a   : > { %2010 = vperm.xlu1 %3401, %v3820_v54   ;;  %v4011_v9 = vpop.permute.xlu0 %1801  ;;  %vm1710_vm3 = vcmp.eq.s32.totalorder %v4007_v7, %v3777_v30 }
 0x13d   : > { %v4013_v13 = vpop.permute.xlu1 %1668 }
 0x13e   : > { %3402 = vset.pattern.permute.xlu1 %v5567_v0 }
 0x13f   : > { %1468 = vperm.xlu1 %3402, %v3896_v19   ;;  %v4017_v14 = vpop.permute.xlu0 %1910 }
 0x142   : > { %v4019_v16 = vpop.permute.xlu1 %1774 }
 0x143   : > { %1471 = vperm.xlu1 %3402, %v3843_v3   ;;  %v4022_v17 = vpop.permute.xlu0 %1919 }
 0x146   : > { %v4024_v18 = vpop.permute.xlu1 %1780 }
 0x147   : > { %3403 = vset.pattern.permute.xlu1 %v5562_v42 }
 0x148   : > { %1583 = vperm.xlu1 %3403, %v3843_v3   ;;  %v4028_v21 = vpop.permute.xlu0 %1810 }
 0x14a   : > { %v4030_v22 = vpop.permute.xlu1 %1783 }
 0x14c   : > { %3404 = vset.pattern.permute.xlu1 %v5560_v11  ;;  %v4033_v23 = vpop.permute.xlu0 %1819 }
 0x14d   : > { %5592 = vst [vmem:[#allocation6_spill] sm:$0xff] %v4033_v23  ;;  %2016 = vperm.xlu1 %3404, %v3898_v20   ;;  %v5603_v23 = vmov 1  }
 0x14f   : > { %v4036_v25 = vpop.permute.xlu1 %1889 }
 0x151   : > { %3405 = vset.pattern.permute.xlu1 %v5558_v57  ;;  %v4039_v27 = vpop.permute.xlu0 %1925 }
 0x152   : > { %1686 = vperm.xlu1 %3405, %v3836_v62  }
 0x153   : > { %v4042_v28 = vpop.permute.xlu1 %1892 }
 0x156   : > { %1689 = vperm.xlu1 %3405, %v3828_v58   ;;  %v4045_v31 = vpop.permute.xlu0 %2001 }
 0x157   : > { %v4047_v35 = vpop.permute.xlu1 %1895 }
 0x15a   : > { %1695 = vperm.xlu1 %3405, %v3843_v3   ;;  %v4050_v36 = vpop.permute.xlu0 %2007 }
 0x15c   : > { %v4052_v40 = vpop.permute.xlu1 %1453 }
 0x15d   : > { %5593 = vst [vmem:[#allocation7_spill] sm:$0xff] %v4052_v40  ;;  %v5621_v40 = vmov 3  }
 0x15e   : > { %3406 = vset.pattern.permute.xlu1 %v5556_v43  ;;  %v4056_v45 = vpop.permute.xlu0 %2013 }
 0x15f   : > { %1798 = vperm.xlu1 %3406, %v3836_v62   ;;  %5594 = vst [vmem:[#allocation8_spill] sm:$0xff] %v4056_v45  ;;  %v419_v45 = vld [vmem:[%s3909_s23 + $0x70] sm:$0xff] }
 0x161   : > { %v4058_v46 = vpop.permute.xlu1 %1565 }
 0x162   : > { %v4063_v56 = vpop.permute.xlu0 %2019 }
 0x163   : > { %1804 = vperm.xlu1 %3406, %v3896_v19   ;;  %5596 = vst [vmem:[#allocation10_spill] sm:$0xff] %v4063_v56  ;;  %v5611_v56 = vmov 0  }
 0x166   : > { %v4061_v50 = vpop.permute.xlu1 %1998  ;;  %v4070_v43 = vpop.permute.xlu0 %2022 }
 0x167   : > { %5595 = vst [vmem:[#allocation9_spill] sm:$0xff] %v4061_v50  ;;  %1807 = vperm.xlu1 %3406, %v3843_v3   ;;  %5598 = vst [vmem:[#allocation12_spill] sm:$0xff] %v4070_v43  ;;  %v1339_v50 = vld [vmem:[%s3775_s16 + $0x70] sm:$0xff] }
 0x16a   : > { %v4075_v11 = vpop.permute.xlu0 %2028 }
 0x16b   : > { %3409 = vset.pattern.permute.xlu1 %v5564_v47  ;;  %v4067_v59 = vpop.permute.xlu1 %1456  ;;  %5600 = vst [vmem:[#allocation14_spill] sm:$0xff] %v4075_v11  ;;  %v5607_v11 = vmov 5  }
 0x16c   : > { %5597 = vst [vmem:[#allocation11_spill] sm:$0xff] %v4067_v59  ;;  %1913 = vperm.xlu1 %3409, %v3828_v58  }
 0x16e   : > { %v4081_v47 = vpop.permute.xlu0 %2034 }
 0x16f   : > { %v4072_v57 = vpop.permute.xlu1 %1459  ;;  %5602 = vst [vmem:[#allocation16_spill] sm:$0xff] %v4081_v47 }
 0x170   : > { %5599 = vst [vmem:[#allocation13_spill] sm:$0xff] %v4072_v57  ;;  %1916 = vperm.xlu1 %3409, %v3896_v19  }
 0x172   : > { %v4090_v43 = vpop.permute.xlu0 %2043 }
 0x173   : > { %5606 = vst [vmem:[#allocation19_spill] sm:$0xff] %v4090_v43 }
 0x174   : > { %3410 = vset.pattern.permute.xlu1 %v5567_v0  ;;  %v4078_v42 = vpop.permute.xlu1 %1571 }
 0x175   : > { %5601 = vst [vmem:[#allocation15_spill] sm:$0xff] %v4078_v42  ;;  %1474 = vperm.xlu1 %3410, %v3850_v6   ;;  %v1435_v42 = vsel %vm1419_vm5, %v1339_v50, 16  ;;  %vm1599_vm5 = vcmp.eq.s32.totalorder %v3996_v1, %v3777_v30 }
 0x176   : > { %v4099_v47 = vpop.permute.xlu0 %1090 }
 0x177   : > { %5609 = vst [vmem:[#allocation21_spill] sm:$0xff] %v4099_v47 }
 0x179   : > { %3411 = vset.pattern.permute.xlu1 %v5603_v23  ;;  %v4084_v59 = vpop.permute.xlu1 %2004 }
 0x17a   : > { %5604 = vst [vmem:[#allocation17_spill] sm:$0xff] %v4084_v59  ;;  %1586 = vperm.xlu1 %3411, %v3850_v6   ;;  %v4104_v43 = vpop.permute.xlu0 %1096 }
 0x17b   : > { %5612 = vst [vmem:[#allocation23_spill] sm:$0xff] %v4104_v43 }
 0x17e   : > { %1589 = vperm.xlu1 %3411, %v3864_v10   ;;  %v4088_v57 = vpop.permute.xlu1 %1674 }
 0x17f   : > { %5605 = vst [vmem:[#allocation18_spill] sm:$0xff] %v4088_v57  ;;  %v4111_v12 = vpop.permute.xlu0 %1450 }
 0x180   : > { %5615 = vst [vmem:[#allocation26_spill] sm:$0xff] %v4111_v12 }
 0x182   : > { %3412 = vset.pattern.permute.xlu1 %v5607_v11  ;;  %v4093_v0 = vpop.permute.xlu1 %1677 }
 0x183   : > { %5608 = vst [vmem:[#allocation20_spill] sm:$0xff] %v4093_v0  ;;  %2025 = vperm.xlu1 %3412, %v3828_v58   ;;  %v478_v50 = vpop.permute.xlu0 %477 }
 0x184   : > { %vm498_vm11 = vcmp.lt.s32.totalorder %v3777_v30, %v478_v50 }
 0x186   : > { %v4101_v59 = vpop.permute.xlu1 %1683 }
 0x187   : > { %5610 = vst [vmem:[#allocation22_spill] sm:$0xff] %v4101_v59  ;;  %3413 = vset.pattern.permute.xlu1 %v5611_v56  ;;  %v417_v59 = vld [vmem:[%s3909_s23 + $0x60] sm:$0xff]  ;;  %v481_v0 = vpop.permute.xlu0 %480 }
 0x188   : > { %1480 = vperm.xlu1 %3413, %v1435_v42   ;;  %vm499_vm6 = vcmp.lt.s32.totalorder %v3777_v30, %v481_v0 }
 0x18b   : > { %v4106_v57 = vpop.permute.xlu1 %1786 }
 0x18c   : > { %5613 = vst [vmem:[#allocation24_spill] sm:$0xff] %v4106_v57  ;;  %3414 = vset.pattern.permute.xlu1 %v5603_v23  ;;  %v5618_v57 = vmov 2  }
 0x18d   : > { %1592 = vperm.xlu1 %3414, %v1435_v42  }
 0x18f   : > { %v4109_v58 = vpop.permute.xlu1 %1792 }
 0x190   : > { %5614 = vst [vmem:[#allocation25_spill] sm:$0xff] %v4109_v58 }
 0x191   : > { %1595 = vperm.xlu1 %3414, %v3857_v8  }
 0x193   : > { %v4114_v47 = vpop.permute.xlu1 %1795 }
 0x194   : > { %5616 = vst [vmem:[#allocation27_spill] sm:$0xff] %v4114_v47 }
 0x195   : > { %3415 = vset.pattern.permute.xlu1 %v5607_v11 }
 0x196   : > { %2031 = vperm.xlu1 %3415, %v3843_v3   ;;  %v4129_v3 = vsel %vm499_vm6, %v419_v45, 16  ;;  %vm1822_vm6 = vcmp.eq.s32.totalorder %v3979_v53, %v3777_v30 }
 0x197   : > { %5620 = vst [vmem:[#allocation30_spill] sm:$0xff] %v4129_v3 }
 0x198   : > { %v4118_v43 = vpop.permute.xlu1 %1901 }
 0x199   : > { %5617 = vst [vmem:[#allocation28_spill] sm:$0xff] %v4118_v43 }
 0x19a   : > { %3416 = vset.pattern.permute.xlu1 %v5618_v57 }
 0x19b   : > { %1698 = vperm.xlu1 %3416, %v3850_v6  }
 0x19d   : > { %v475_v58 = vpop.permute.xlu1 %474 }
 0x19e   : > { %vm497_vm7 = vcmp.lt.s32.totalorder %v3777_v30, %v475_v58 }
 0x19f   : > { %v4126_v47 = vsel %vm497_vm7, %v417_v59, 16  ;;  %1704 = vperm.xlu1 %3416, %v1435_v42   ;;  %v5623_v59 = vmov 4   ;;  %vm1487_vm7 = vcmp.eq.s32.totalorder %v3990_v61, %v3777_v30 }
 0x1a0   : > { %5619 = vst [vmem:[#allocation29_spill] sm:$0xff] %v4126_v47  ;;  %554 = vperm.xlu0 %3444, %v4126_v47  }
 0x1a2   : > { %v4131_v12 = vpop.permute.xlu1 %1904 }
 0x1a3   : > { %1707 = vperm.xlu1 %3416, %v3857_v8  }
 0x1a4   : > { %560 = vperm.xlu0 %3444, %v4129_v3  }
 0x1a6   : > { %v4135_v43 = vpop.permute.xlu1 %1907 }
 0x1a7   : > { %3418 = vset.pattern.permute.xlu1 %v5621_v40 }
 0x1a8   : > { %1813 = vperm.xlu1 %3418, %v3864_v10   ;;  %3452 = vset.pattern.permute.xlu0 %v5603_v23 }
 0x1a9   : > { %1550 = vperm.xlu0 %3452, %v3781_v34  }
 0x1ab   : > { %v484_v0 = vpop.permute.xlu1 %483 }
 0x1ac   : > { %1816 = vperm.xlu1 %3418, %v1435_v42   ;;  %vm500_vm12 = vcmp.lt.s32.totalorder %v3777_v30, %v484_v0 }
 0x1ad   : > { %1562 = vperm.xlu0 %3452, %v3820_v54   ;;  %v410_v54 = vld [vmem:[%s3909_s23 + $0x28] sm:$0xff] }
 0x1af   : > { %v4142_v45 = vpop.permute.xlu1 %1465 }
 0x1b0   : > { %5622 = vst [vmem:[#allocation31_spill] sm:$0xff] %v4142_v45  ;;  %3419 = vset.pattern.permute.xlu1 %v5623_v59  ;;  %v418_v45 = vld [vmem:[%s3909_s23 + $0x68] sm:$0xff] }
 0x1b1   : > { %1922 = vperm.xlu1 %3419, %v3850_v6   ;;  %1568 = vperm.xlu0 %3452, %v3898_v20   ;;  %v4180_v33 = vsel %vm498_vm11, %v418_v45, 16  ;;  %v408_v45 = vld [vmem:[%s3909_s23 + $0x18] sm:$0xff]  ;;  %vm1711_vm11 = vcmp.eq.s32.totalorder %v4013_v13, %v3777_v30 }
 0x1b2   : > { %5627 = vst [vmem:[#allocation35_spill] sm:$0xff] %v4180_v33 }
 0x1b4   : > { %v4147_v58 = vpop.permute.xlu1 %1577 }
 0x1b5   : > { %1928 = vperm.xlu1 %3419, %v1435_v42   ;;  %1574 = vperm.xlu0 %3452, %v3836_v62   ;;  %v4162_v62 = vsel %vm490_vm8, %v410_v54, 16  ;;  %v4178_v54 = vsel %vm485_vm10, %v405_v32, 16  ;;  %vm1600_vm8 = vcmp.eq.s32.totalorder %v4001_v4, %v3777_v30  ;;  %vm1826_vm10 = vcmp.eq.s32.totalorder %v3999_v2, %v3777_v30 }
 0x1b9   : > { %1931 = vperm.xlu1 %3419, %v3857_v8   ;;  %v4151_v3 = vpop.permute.xlu1 %2010  ;;  %1580 = vperm.xlu0 %3452, %v3896_v19   ;;  %v412_v8 = vld [vmem:[%s3909_s23 + $0x38] sm:$0xff] }
 0x1ba   : > { %5624 = vst [vmem:[#allocation32_spill] sm:$0xff] %v4151_v3 }
 0x1bd   : > { %3422 = vset.pattern.permute.xlu1 %v5607_v11  ;;  %636 = vperm.xlu0 %3452, %v3960_v44  }
 0x1be   : > { %2037 = vperm.xlu1 %3422, %v3864_v10   ;;  %v4160_v6 = vpop.permute.xlu1 %1468 }
 0x1bf   : > { %5625 = vst [vmem:[#allocation33_spill] sm:$0xff] %v4160_v6  ;;  %v4175_v6 = vsel %vm492_vm9, %v412_v8, 16  ;;  %vm1933_vm9 = vcmp.eq.s32.totalorder %v3993_v63, %v3777_v30 }
 0x1c1   : > { %645 = vperm.xlu0 %3452, %v4162_v62  }
 0x1c2   : > { %2040 = vperm.xlu1 %3422, %v1435_v42   ;;  %v4168_v3 = vpop.permute.xlu1 %1471 }
 0x1c3   : > { %5626 = vst [vmem:[#allocation34_spill] sm:$0xff] %v4168_v3  ;;  %v420_v3 = vld [vmem:[%s3909_s23 + $0x78] sm:$0xff] }
 0x1c4   : > { %v4190_v15 = vsel %vm500_vm12, %v420_v3, 16  ;;  %v4204_v3 = vsel %vm488_vm13, %v408_v45, 16  ;;  %vm1937_vm12 = vcmp.eq.s32.totalorder %v4005_v5, %v3777_v30  ;;  %vm1830_vm13 = vcmp.eq.s32.totalorder %v4011_v9, %v3777_v30 }
 0x1c5   : > { %651 = vperm.xlu0 %3452, %v4175_v6   ;;  %5628 = vst [vmem:[#allocation36_spill] sm:$0xff] %v4190_v15 }
 0x1c6   : > { %3423 = vset.pattern.permute.xlu1 %v5611_v56 }
 0x1c7   : > { %v4183_v42 = vpop.permute.xlu1 %1583  ;;  %518 = vperm.xlu1 %3423, %v4178_v54  }
 0x1c9   : > { %669 = vperm.xlu0 %3452, %v4180_v33  }
 0x1cb   : > { %3424 = vset.pattern.permute.xlu1 %v5603_v23 }
 0x1cc   : > { %v4192_v50 = vpop.permute.xlu1 %2016  ;;  %630 = vperm.xlu1 %3424, %v4178_v54  }
 0x1cd   : > { %675 = vperm.xlu0 %3452, %v4190_v15  }
 0x1d0   : > { %633 = vperm.xlu1 %3424, %v3949_v37  }
 0x1d1   : > { %v4200_v8 = vpop.permute.xlu1 %1686  ;;  %3455 = vset.pattern.permute.xlu0 %v5618_v57 }
 0x1d2   : > { %5629 = vst [vmem:[#allocation37_spill] sm:$0xff] %v4200_v8  ;;  %1662 = vperm.xlu0 %3455, %v3781_v34   ;;  %v3504_v34 = vld [vmem:[%s5550_s4] sm:$0xff]  }
 0x1d3   : > { %3272 = vmatprep.subr.bf16.mxu1 %v3504_v34  ;;  %3254 = vmatprep.subr.bf16.mxu0 %v3504_v34 }
 0x1d4   : > { %3425 = vset.pattern.permute.xlu1 %v5611_v56  ;;  %3273 = vmatpush3.bf16.msra.mxu1 %v3504_v34 }
 0x1d5   : > { %v4207_v0 = vpop.permute.xlu1 %1689  ;;  %527 = vperm.xlu1 %3425, %v4204_v3   ;;  %3255 = vmatpush3.bf16.msra.mxu0 %v3504_v34 }
 0x1d6   : > { %1671 = vperm.xlu0 %3455, %v3788_v39  }
 0x1d9   : > { %v4211_v32 = vpop.permute.xlu1 %1695  ;;  %3426 = vset.pattern.permute.xlu1 %v5603_v23 }
 0x1da   : > { %5630 = vst [vmem:[#allocation38_spill] sm:$0xff] %v4211_v32  ;;  %1680 = vperm.xlu0 %3455, %v3898_v20   ;;  %639 = vperm.xlu1 %3426, %v4204_v3  }
 0x1de   : > { %v4219_v29 = vpop.permute.xlu1 %1798  ;;  %1692 = vperm.xlu0 %3455, %v3896_v19   ;;  %3427 = vset.pattern.permute.xlu1 %v5618_v57  ;;  %v4233_v19 = vpop.permute.xlu0 %1462 }
 0x1df   : > { %5631 = vst [vmem:[#allocation39_spill] sm:$0xff] %v4219_v29  ;;  %742 = vperm.xlu1 %3427, %v4178_v54  }
 0x1e2   : > { %v4224_v39 = vpop.permute.xlu1 %1804  ;;  %1701 = vperm.xlu0 %3455, %v3864_v10   ;;  %v4243_v34 = vpop.permute.xlu0 %1477 }
 0x1e3   : > { %5632 = vst [vmem:[#allocation40_spill] sm:$0xff] %v4224_v39  ;;  %748 = vperm.xlu1 %3427, %v3960_v44  }
 0x1e6   : > { %v4228_v20 = vpop.permute.xlu1 %1807  ;;  %745 = vperm.xlu0 %3455, %v3949_v37   ;;  %v4251_v29 = vpop.permute.xlu0 %1483 }
 0x1e7   : > { %5633 = vst [vmem:[#allocation41_spill] sm:$0xff] %v4228_v20  ;;  %751 = vperm.xlu1 %3427, %v4204_v3  }
 0x1ea   : > { %754 = vperm.xlu0 %3455, %v3916_v24  }
 0x1eb   : > { %v4235_v45 = vpop.permute.xlu1 %1913  ;;  %3428 = vset.pattern.permute.xlu1 %v5621_v40 }
 0x1ec   : > { %5634 = vst [vmem:[#allocation42_spill] sm:$0xff] %v4235_v45  ;;  %857 = vperm.xlu1 %3428, %v3949_v37  }
 0x1ee   : > { %763 = vperm.xlu0 %3455, %v4175_v6  }
 0x1ef   : > { %v4240_v10 = vpop.permute.xlu1 %1916 }
 0x1f0   : > { %5635 = vst [vmem:[#allocation43_spill] sm:$0xff] %v4240_v10  ;;  %860 = vperm.xlu1 %3428, %v3960_v44   ;;  %v4257_v10 = vpop.permute.xlu0 %521 }
 0x1f1   : > { %5638 = vst [vmem:[#allocation46_spill] sm:$0xff] %v4257_v10  ;;  %v413_v10 = vld [vmem:[%s3909_s23 + $0x40] sm:$0xff] }
 0x1f2   : > { %769 = vperm.xlu0 %3455, %v3981_v55  }
 0x1f4   : > { %v4246_v39 = vpop.permute.xlu1 %1474  ;;  %3429 = vset.pattern.permute.xlu1 %v5623_v59 }
 0x1f5   : > { %5636 = vst [vmem:[#allocation44_spill] sm:$0xff] %v4246_v39  ;;  %966 = vperm.xlu1 %3429, %v4178_v54  }
 0x1f6   : > { %778 = vperm.xlu0 %3455, %v4126_v47  }
 0x1f9   : > { %v4253_v45 = vpop.permute.xlu1 %1586  ;;  %972 = vperm.xlu1 %3429, %v3960_v44  }
 0x1fa   : > { %5637 = vst [vmem:[#allocation45_spill] sm:$0xff] %v4253_v45  ;;  %787 = vperm.xlu0 %3455, %v4190_v15   ;;  %v4268_v45 = vpop.permute.xlu0 %524 }
 0x1fb   : > { %5641 = vst [vmem:[#allocation49_spill] sm:$0xff] %v4268_v45 }
 0x1fd   : > { %v4259_v20 = vpop.permute.xlu1 %1589  ;;  %975 = vperm.xlu1 %3429, %v4204_v3  }
 0x1fe   : > { %5639 = vst [vmem:[#allocation47_spill] sm:$0xff] %v4259_v20  ;;  %3458 = vset.pattern.permute.xlu0 %v5621_v40  ;;  %v4279_v8 = vpop.permute.xlu0 %530 }
 0x1ff   : > { %854 = vperm.xlu0 %3458, %v4178_v54   ;;  %5642 = vst [vmem:[#allocation50_spill] sm:$0xff] %v4279_v8 }
 0x201   : > { %3430 = vset.pattern.permute.xlu1 %v5611_v56 }
 0x202   : > { %v4265_v39 = vpop.permute.xlu1 %2025  ;;  %533 = vperm.xlu1 %3430, %v4162_v62   ;;  %v4288_v32 = vpop.permute.xlu0 %536 }
 0x203   : > { %5640 = vst [vmem:[#allocation48_spill] sm:$0xff] %v4265_v39  ;;  %863 = vperm.xlu0 %3458, %v4204_v3   ;;  %v4281_v39 = vsel %vm493_vm14, %v413_v10, 16  ;;  %5643 = vst [vmem:[#allocation51_spill] sm:$0xff] %v4288_v32  ;;  %vm1823_vm14 = vcmp.eq.s32.totalorder %v4024_v18, %v3777_v30 }
 0x206   : > { %3431 = vset.pattern.permute.xlu1 %v5603_v23  ;;  %v4296_v10 = vpop.permute.xlu0 %545 }
 0x207   : > { %v4275_v20 = vpop.permute.xlu1 %1480  ;;  %869 = vperm.xlu0 %3458, %v4162_v62   ;;  %642 = vperm.xlu1 %3431, %v3916_v24   ;;  %5644 = vst [vmem:[#allocation52_spill] sm:$0xff] %v4296_v10 }
 0x20a   : > { %v4307_v32 = vpop.permute.xlu0 %551 }
 0x20b   : > { %878 = vperm.xlu0 %3458, %v4281_v39   ;;  %3432 = vset.pattern.permute.xlu1 %v5607_v11  ;;  %5646 = vst [vmem:[#allocation54_spill] sm:$0xff] %v4307_v32 }
 0x20c   : > { %v4285_v45 = vpop.permute.xlu1 %1592  ;;  %1078 = vperm.xlu1 %3432, %v4178_v54  }
 0x20f   : > { %887 = vperm.xlu0 %3458, %v3988_v60  }
 0x210   : > { %v4291_v38 = vpop.permute.xlu1 %1595  ;;  %1081 = vperm.xlu1 %3432, %v3949_v37  }
 0x213   : > { %893 = vperm.xlu0 %3458, %v4180_v33  }
 0x214   : > { %3433 = vset.pattern.permute.xlu1 %v5611_v56 }
 0x215   : > { %v4298_v8 = vpop.permute.xlu1 %2031  ;;  %539 = vperm.xlu1 %3433, %v4175_v6  }
 0x216   : > { %5645 = vst [vmem:[#allocation53_spill] sm:$0xff] %v4298_v8 }
 0x217   : > { %3460 = vset.pattern.permute.xlu0 %v5623_v59 }
 0x218   : > { %969 = vperm.xlu0 %3460, %v3949_v37  }
 0x219   : > { %3434 = vset.pattern.permute.xlu1 %v5603_v23 }
 0x21a   : > { %v4304_v54 = vpop.permute.xlu1 %1698  ;;  %648 = vperm.xlu1 %3434, %v3922_v26  }
 0x21c   : > { %978 = vperm.xlu0 %3460, %v3916_v24  }
 0x21e   : > { %v4310_v60 = vpop.permute.xlu1 %1704  ;;  %3435 = vset.pattern.permute.xlu1 %v5607_v11 }
 0x21f   : > { %5647 = vst [vmem:[#allocation55_spill] sm:$0xff] %v4310_v60  ;;  %v4313_v10 = vpop.permute.xlu0 %554  ;;  %1084 = vperm.xlu1 %3435, %v3960_v44  }
 0x220   : > { %5648 = vst [vmem:[#allocation56_spill] sm:$0xff] %v4313_v10  ;;  %987 = vperm.xlu0 %3460, %v4175_v6  }
 0x222   : > { %v4317_v37 = vpop.permute.xlu1 %1707 }
 0x223   : > { %v4319_v8 = vpop.permute.xlu0 %560  ;;  %1087 = vperm.xlu1 %3435, %v4204_v3   ;;  %v415_v3 = vld [vmem:[%s3909_s23 + $0x50] sm:$0xff]  ;;  %s3644_s23 = smov [#allocation2]  }
 0x224   : > { %5649 = vst [vmem:[#allocation57_spill] sm:$0xff] %v4319_v8  ;;  %993 = vperm.xlu0 %3460, %v3981_v55   ;;  %v3642_v8 = vmov 0.0   ;;  %v4359_v48 = vsel %vm495_vm1, %v415_v3, 16  ;;  %vm1934_vm1 = vcmp.eq.s32.totalorder %v4036_v25, %v3777_v30  ;;  %s3576_s22 = sshll.u32 %s3644_s23, 4  ;;  %s3577_s22 = int_to_ptr.vmem [resolvable:$false] %s3576_s22 }
 0x225   : > { %v3103_v10 = vsel %vm1598_vm15, 1.0, %v3642_v8  ;;  %v3087_v41 = vsel %vm1486_vm0, 1.0, %v3642_v8  ;;  %v4362_v49 = vsel %vm1485_vm2, 1.0, %v3642_v8  ;;  %v3119_v7 = vsel %vm1710_vm3, 1.0, %v3642_v8  ;;  %s3578_s25 = scalar_lea.vmem %s3577_s22, 4096  ;;  %p3579_p0 = scmp.lt.s32.totalorder %s5499_s29, %s3577_s22 }
 0x226   : > { %v1646_v52 = vadd.f32 %v3103_v10, %v3087_v41  ;;  %v3104_v1 = vsel %vm1599_vm5, 1.0, %v3642_v8  ;;  %v3089_v10 = vsel %vm1488_vm4, 1.0, %v3642_v8  ;;  %v3135_v41 = vsel %vm1822_vm6, 1.0, %v3642_v8  ;;  %p3580_p1 = scmp.lt.s32.totalorder %s3578_s25, %s3572_s21 }
 0x227   : > { %v4323_v32 = vpop.permute.xlu1 %1813  ;;  %3436 = vset.pattern.permute.xlu1 %v5618_v57  ;;  %v3088_v57 = vsel %vm1487_vm7, 1.0, %v3642_v8  ;;  %v4406_v53 = vsel %vm1933_vm9, 1.0, %v3642_v8  ;;  %v3120_v4 = vsel %vm1711_vm11, 1.0, %v3642_v8  ;;  %vm1941_vm15 = vcmp.eq.s32.totalorder %v4017_v14, %v3777_v30 }
 0x228   : > { %v4326_v60 = vpop.permute.xlu0 %1550  ;;  %1002 = vperm.xlu0 %3460, %v4126_v47   ;;  %757 = vperm.xlu1 %3436, %v4162_v62   ;;  %v1758_v51 = vadd.f32 %v3119_v7, %v1646_v52  ;;  %v1647_v61 = vadd.f32 %v3104_v1, %v3088_v57  ;;  %vm1821_vm0 = vcmp.eq.s32.totalorder %v4019_v16, %v3777_v30  ;;  %v4431_v2 = vsel %vm1937_vm12, 1.0, %v3642_v8  ;;  %v5654_v1 = vld [vmem:[#allocation7_spill] sm:$0xff]  ;;  %p3581_p2 = por %p3580_p1, %p3579_p0 }
 0x229   : > { %v4434_v9 = vsel %vm1830_vm13, 1.0, %v3642_v8  ;;  %vm1944_vm2 = vcmp.eq.s32.totalorder %v4022_v17, %v3777_v30  ;;  %v3136_v13 = vsel %vm1823_vm14, 1.0, %v3642_v8  ;;  %vm1935_vm3 = vcmp.eq.s32.totalorder %v4042_v28, %v3777_v30 }
 0x22a   : > { %v1759_v14 = vadd.f32 %v3120_v4, %v1647_v61  ;;  %v1870_v16 = vadd.f32 %v3135_v41, %v1758_v51  ;;  %vm2046_vm4 = vcmp.eq.s32.totalorder %v4045_v31, %v3777_v30  ;;  %v4445_v18 = vsel %vm1941_vm15, 1.0, %v3642_v8  ;;  %v5656_v41 = vld [vmem:[#allocation20_spill] sm:$0xff]  ;;  %p3582_p3 = pnand %p3581_p2, %p3575_p13 }
 0x22b   : > { %v4334_v44 = vpop.permute.xlu1 %1816  ;;  %v4448_v25 = vsel %vm1821_vm0, 1.0, %v3642_v8  ;;  %vm1833_vm5 = vcmp.eq.s32.totalorder %v4028_v21, %v3777_v30  ;;  %v3151_v17 = vsel %vm1934_vm1, 1.0, %v3642_v8  ;;  %vm1824_vm6 = vcmp.eq.s32.totalorder %v4030_v22, %v3777_v30 }
 0x22c   : > { %5650 = vst [vmem:[#allocation58_spill] sm:$0xff] %v4334_v44  ;;  %v4344_v47 = vpop.permute.xlu0 %1562  ;;  %1011 = vperm.xlu0 %3460, %v4190_v15   ;;  %760 = vperm.xlu1 %3436, %v3922_v26   ;;  %v1871_v52 = vadd.f32 %v3136_v13, %v1759_v14  ;;  %vm1602_vm7 = vcmp.eq.s32.totalorder %v4058_v46, %v3777_v30  ;;  %v3152_v21 = vsel %vm1935_vm3, 1.0, %v3642_v8  ;;  %v3167_v7 = vsel %vm2046_vm4, 1.0, %v3642_v8 }
 0x22d   : > { %vm1936_vm9 = vcmp.eq.s32.totalorder %v4047_v35, %v3777_v30  ;;  %v4472_v22 = vsel %vm1833_vm5, 1.0, %v3642_v8  ;;  %v1982_v46 = vadd.f32 %v3151_v17, %v1870_v16  ;;  %vm1490_vm11 = vcmp.eq.s32.totalorder %v5654_v1, %v3777_v30  ;;  %v5659_v17 = vld [vmem:[#allocation10_spill] sm:$0xff]  ;;  %v5660_v1 = vld [vmem:[#allocation15_spill] sm:$0xff] }
 0x22e   : > { %v3107_v35 = vsel %vm1602_vm7, 1.0, %v3642_v8  ;;  %vm1714_vm13 = vcmp.eq.s32.totalorder %v5656_v41, %v3777_v30  ;;  %v1983_v61 = vadd.f32 %v3152_v21, %v1871_v52  ;;  %v3091_v16 = vsel %vm1490_vm11, 1.0, %v3642_v8  ;;  %v5662_v41 = vld [vmem:[#allocation9_spill] sm:$0xff] }
 0x22f   : > { %v4494_v13 = vadd.f32 %v3167_v7, %v1982_v46  ;;  %vm2052_vm14 = vcmp.eq.s32.totalorder %v5659_v17, %v3777_v30  ;;  %vm1604_vm15 = vcmp.eq.s32.totalorder %v5660_v1, %v3777_v30  ;;  %v1650_v21 = vadd.f32 %v3107_v35, %v3091_v16  ;;  %v5661_v7 = vld [vmem:[#allocation17_spill] sm:$0xff]  ;;  %v5663_v17 = vld [vmem:[#allocation12_spill] sm:$0xff]  ;;  %v5664_v1 = vld [vmem:[#allocation14_spill] sm:$0xff] }
 0x230   : > { %v4372_v15 = vpop.permute.xlu1 %1922  ;;  %v4374_v3 = vpop.permute.xlu0 %1568  ;;  %3463 = vset.pattern.permute.xlu0 %v5607_v11  ;;  %3437 = vset.pattern.permute.xlu1 %v5621_v40  ;;  %v3105_v40 = vsel %vm1600_vm8, 1.0, %v3642_v8  ;;  %vm1946_vm8 = vcmp.eq.s32.totalorder %v4039_v27, %v3777_v30  ;;  %v4479_v27 = vsel %vm1824_vm6, 1.0, %v3642_v8  ;;  %vm2047_vm0 = vcmp.eq.s32.totalorder %v5661_v7, %v3777_v30  ;;  %v5666_v16 = vld [vmem:[#allocation13_spill] sm:$0xff] }
 0x231   : > { %1117 = vperm.xlu0 %3463, %v4180_v33   ;;  %866 = vperm.xlu1 %3437, %v3916_v24   ;;  %v4412_v24 = vsel %vm1826_vm10, 1.0, %v3642_v8  ;;  %v4418_v5 = vadd.f32 %v3105_v40, %v3089_v10  ;;  %v4454_v40 = vsel %vm1944_vm2, 1.0, %v3642_v8  ;;  %vm2048_vm10 = vcmp.eq.s32.totalorder %v4050_v36, %v3777_v30  ;;  %v5655_v10 = vld [vmem:[#allocation8_spill] sm:$0xff]  ;;  %v5665_v33 = vld [vmem:[#allocation11_spill] sm:$0xff] }
 0x232   : > { %5652 = vst [vmem:[#allocation60_spill] sm:$0xff] %v4454_v40  ;;  %vm2050_vm12 = vcmp.eq.s32.totalorder %v5655_v10, %v3777_v30  ;;  %v4487_v51 = vsel %vm1946_vm8, 1.0, %v3642_v8  ;;  %v4490_v36 = vsel %vm1936_vm9, 1.0, %v3642_v8  ;;  %v4497_v14 = vsel %vm2048_vm10, 1.0, %v3642_v8 }
 0x233   : > { %5657 = vst [vmem:[#allocation7_spill] sm:$0xff] %v4487_v51  ;;  %v3171_v52 = vsel %vm2050_vm12, 1.0, %v3642_v8  ;;  %v3123_v46 = vsel %vm1714_vm13, 1.0, %v3642_v8  ;;  %vm2045_vm1 = vcmp.eq.s32.totalorder %v5662_v41, %v3777_v30  ;;  %vm2053_vm2 = vcmp.eq.s32.totalorder %v5663_v17, %v3777_v30 }
 0x234   : > { %v4426_v57 = vpop.permute.xlu1 %1928  ;;  %v4428_v63 = vpop.permute.xlu0 %1574  ;;  %vm2055_vm3 = vcmp.eq.s32.totalorder %v5664_v1, %v3777_v30  ;;  %vm1491_vm4 = vcmp.eq.s32.totalorder %v5665_v33, %v3777_v30  ;;  %v4521_v35 = vsel %vm2052_vm14, 1.0, %v3642_v8  ;;  %vm1492_vm5 = vcmp.eq.s32.totalorder %v5666_v16, %v3777_v30  ;;  %v5669_v1 = vld [vmem:[#allocation18_spill] sm:$0xff]  ;;  %v5670_v33 = vld [vmem:[#allocation28_spill] sm:$0xff] }
 0x235   : > { %5651 = vst [vmem:[#allocation59_spill] sm:$0xff] %v4426_v57  ;;  %872 = vperm.xlu1 %3437, %v3922_v26   ;;  %v3109_v7 = vsel %vm1604_vm15, 1.0, %v3642_v8  ;;  %v3168_v17 = vsel %vm2047_vm0, 1.0, %v3642_v8  ;;  %vm1713_vm7 = vcmp.eq.s32.totalorder %v5669_v1, %v3777_v30  ;;  %vm1938_vm8 = vcmp.eq.s32.totalorder %v5670_v33, %v3777_v30  ;;  %v5674_v33 = vld [vmem:[#allocation27_spill] sm:$0xff] }
 0x236   : > { %v4538_v16 = vsel %vm2045_vm1, 1.0, %v3642_v8  ;;  %v4541_v57 = vsel %vm2053_vm2, 1.0, %v3642_v8  ;;  %vm1828_vm10 = vcmp.eq.s32.totalorder %v5674_v33, %v3777_v30  ;;  %v4556_v44 = vadd.f32 %v3168_v17, %v1983_v61  ;;  %v5677_v17 = vld [vmem:[#allocation25_spill] sm:$0xff] }
 0x237   : > { %v3155_v40 = vsel %vm1938_vm8, 1.0, %v3642_v8  ;;  %vm1493_vm12 = vcmp.eq.s32.totalorder %v4233_v19, %v3777_v30  ;;  %vm1940_vm13 = vcmp.eq.s32.totalorder %v4135_v43, %v3777_v30  ;;  %vm1827_vm14 = vcmp.eq.s32.totalorder %v5677_v17, %v3777_v30 }
 0x238   : > { %v4460_v28 = vpop.permute.xlu1 %1931  ;;  %v4462_v31 = vpop.permute.xlu0 %1580  ;;  %vm1498_vm15 = vcmp.eq.s32.totalorder %v4243_v34, %v3777_v30  ;;  %vm1500_vm0 = vcmp.eq.s32.totalorder %v4251_v29, %v3777_v30  ;;  %vm1601_vm1 = vcmp.eq.s32.totalorder %v4344_v47, %v3777_v30  ;;  %v4589_v19 = vsel %vm1493_vm12, 1.0, %v3642_v8  ;;  %v5680_v47 = vld [vmem:[#allocation31_spill] sm:$0xff] }
 0x239   : > { %5653 = vst [vmem:[#allocation61_spill] sm:$0xff] %v4460_v28  ;;  %875 = vperm.xlu1 %3437, %v4175_v6   ;;  %vm1606_vm2 = vcmp.eq.s32.totalorder %v4147_v58, %v3777_v30  ;;  %v4597_v29 = vsel %vm1827_vm14, 1.0, %v3642_v8  ;;  %v3106_v58 = vsel %vm1601_vm1, 1.0, %v3642_v8  ;;  %vm1597_vm8 = vcmp.eq.s32.totalorder %v4326_v60, %v3777_v30  ;;  %v5685_v60 = vld [vmem:[#allocation38_spill] sm:$0xff] }
 0x23a   : > { %vm1720_vm12 = vcmp.eq.s32.totalorder %v5685_v60, %v3777_v30 }
 0x23c   : > { %v4492_v4 = vpop.permute.xlu0 %636 }
 0x23d   : > { %5658 = vst [vmem:[#allocation8_spill] sm:$0xff] %v4492_v4  ;;  %v4504_v10 = vpop.permute.xlu1 %2037  ;;  %3438 = vset.pattern.permute.xlu1 %v5623_v59  ;;  %v5667_v4 = vld [vmem:[#allocation22_spill] sm:$0xff]  ;;  %v1762_v59 = vadd.f32 %v3123_v46, %v1650_v21  ;;  %v3093_v21 = vsel %vm1492_vm5, 1.0, %v3642_v8  ;;  %vm1718_vm5 = vcmp.eq.s32.totalorder %v4207_v0, %v3777_v30 }
 0x23e   : > { %981 = vperm.xlu1 %3438, %v4162_v62   ;;  %vm1716_vm6 = vcmp.eq.s32.totalorder %v5667_v4, %v3777_v30  ;;  %v4544_v4 = vsel %vm2055_vm3, 1.0, %v3642_v8  ;;  %v5673_v46 = vld [vmem:[#allocation26_spill] sm:$0xff]  ;;  %vm1939_vm3 = vcmp.eq.s32.totalorder %v4131_v12, %v3777_v30 }
 0x23f   : > { %5672 = vst [vmem:[#allocation15_spill] sm:$0xff] %v4544_v4  ;;  %vm1489_vm9 = vcmp.eq.s32.totalorder %v5673_v46, %v3777_v30  ;;  %v3125_v1 = vsel %vm1716_vm6, 1.0, %v3642_v8  ;;  %v4559_v4 = vsel %vm1713_vm7, 1.0, %v3642_v8  ;;  %v1874_v46 = vadd.f32 %v4412_v24, %v1762_v59 }
 0x240   : > { %v4528_v41 = vpop.permute.xlu0 %645  ;;  %v3090_v61 = vsel %vm1489_vm9, 1.0, %v3642_v8  ;;  %v3157_v24 = vsel %vm1940_vm13, 1.0, %v3642_v8  ;;  %vm1608_vm6 = vcmp.eq.s32.totalorder %v4183_v42, %v3777_v30  ;;  %v4621_v17 = vsel %vm1939_vm3, 1.0, %v3642_v8  ;;  %v5683_v42 = vld [vmem:[#allocation33_spill] sm:$0xff] }
 0x241   : > { %5668 = vst [vmem:[#allocation20_spill] sm:$0xff] %v4528_v41  ;;  %v4535_v28 = vpop.permute.xlu1 %2040  ;;  %v4547_v41 = vsel %vm1491_vm4, 1.0, %v3642_v8  ;;  %v1986_v59 = vadd.f32 %v3155_v40, %v1874_v46  ;;  %vm1494_vm4 = vcmp.eq.s32.totalorder %v5680_v47, %v3777_v30  ;;  %v5681_v47 = vld [vmem:[#allocation32_spill] sm:$0xff]  ;;  %vm1495_vm9 = vcmp.eq.s32.totalorder %v5683_v42, %v3777_v30 }
 0x242   : > { %5671 = vst [vmem:[#allocation10_spill] sm:$0xff] %v4535_v28  ;;  %984 = vperm.xlu1 %3438, %v3922_v26   ;;  %v1652_v28 = vadd.f32 %v3109_v7, %v3093_v21  ;;  %v5676_v26 = vld [vmem:[#allocation24_spill] sm:$0xff]  ;;  %v3141_v21 = vsel %vm1828_vm10, 1.0, %v3642_v8  ;;  %vm2049_vm7 = vcmp.eq.s32.totalorder %v5681_v47, %v3777_v30  ;;  %vm1605_vm13 = vcmp.eq.s32.totalorder %v4428_v63, %v3777_v30 }
 0x243   : > { %vm1825_vm11 = vcmp.eq.s32.totalorder %v5676_v26, %v3777_v30  ;;  %v4612_v26 = vadd.f32 %v3171_v52, %v1986_v59  ;;  %v5684_v59 = vld [vmem:[#allocation34_spill] sm:$0xff] }
 0x244   : > { %v4562_v51 = vpop.permute.xlu0 %651  ;;  %v1764_v7 = vadd.f32 %v3125_v1, %v1652_v28  ;;  %v4586_v43 = vsel %vm1825_vm11, 1.0, %v3642_v8  ;;  %v4604_v28 = vsel %vm1498_vm15, 1.0, %v3642_v8  ;;  %v4607_v1 = vsel %vm1500_vm0, 1.0, %v3642_v8 }
 0x245   : > { %5675 = vst [vmem:[#allocation17_spill] sm:$0xff] %v4562_v51  ;;  %vm1496_vm10 = vcmp.eq.s32.totalorder %v5684_v59, %v3777_v30  ;;  %vm2051_vm11 = vcmp.eq.s32.totalorder %v4192_v50, %v3777_v30  ;;  %v4648_v59 = vsel %vm2049_vm7, 1.0, %v3642_v8  ;;  %v5688_v51 = vld [vmem:[#allocation41_spill] sm:$0xff]  ;;  %vm1203_vm7 = vcmask 130048  }
 0x246   : > { %3439 = vset.pattern.permute.xlu1 %v5611_v56  ;;  %v4576_v33 = vpop.permute.xlu1 %518  ;;  %v1876_v40 = vadd.f32 %v3141_v21, %v1764_v7  ;;  %v3111_v7 = vsel %vm1606_vm2, 1.0, %v3642_v8  ;;  %v3095_v21 = vsel %vm1494_vm4, 1.0, %v3642_v8  ;;  %v3097_v50 = vsel %vm1496_vm10, 1.0, %v3642_v8 }
 0x247   : > { %5678 = vst [vmem:[#allocation9_spill] sm:$0xff] %v4576_v33  ;;  %542 = vperm.xlu1 %3439, %v4281_v39   ;;  %v1654_v47 = vadd.f32 %v3111_v7, %v3095_v21  ;;  %v4663_v7 = vsel %vm2051_vm11, 1.0, %v3642_v8  ;;  %v3129_v21 = vsel %vm1720_vm12, 1.0, %v3642_v8  ;;  %vm1832_vm15 = vcmp.eq.s32.totalorder %v5688_v51, %v3777_v30 }
 0x248   : > { %v4594_v34 = vpop.permute.xlu0 %669  ;;  %v1988_v46 = vadd.f32 %v3157_v24, %v1876_v40  ;;  %v3127_v24 = vsel %vm1718_vm5, 1.0, %v3642_v8  ;;  %v1649_v40 = vadd.f32 %v3106_v58, %v3090_v61  ;;  %v4656_v61 = vsel %vm1495_vm9, 1.0, %v3642_v8  ;;  %v5687_v58 = vld [vmem:[#allocation37_spill] sm:$0xff] }
 0x249   : > { %5679 = vst [vmem:[#allocation12_spill] sm:$0xff] %v4594_v34  ;;  %v3113_v34 = vsel %vm1608_vm6, 1.0, %v3642_v8  ;;  %vm1717_vm14 = vcmp.eq.s32.totalorder %v5687_v58, %v3777_v30  ;;  %vm1603_vm2 = vcmp.eq.s32.totalorder %v4374_v3, %v3777_v30  ;;  %v3145_v58 = vsel %vm1832_vm15, 1.0, %v3642_v8 }
 0x24a   : > { %v4645_v42 = vadd.f32 %v4521_v35, %v1988_v46  ;;  %v1766_v35 = vadd.f32 %v3127_v24, %v1654_v47  ;;  %v1656_v46 = vadd.f32 %v3113_v34, %v3097_v50  ;;  %v1761_v63 = vadd.f32 %v4559_v4, %v1649_v40  ;;  %v5689_v34 = vld [vmem:[#allocation42_spill] sm:$0xff]  ;;  %v5690_v47 = vld [vmem:[#allocation39_spill] sm:$0xff]  ;;  %v5691_v50 = vld [vmem:[#allocation40_spill] sm:$0xff] }
 0x24b   : > { %3440 = vset.pattern.permute.xlu1 %v5603_v23  ;;  %v4618_v12 = vpop.permute.xlu1 %630  ;;  %v3126_v24 = vsel %vm1717_vm14, 1.0, %v3642_v8  ;;  %vm1942_vm1 = vcmp.eq.s32.totalorder %v5689_v34, %v3777_v30  ;;  %vm1829_vm3 = vcmp.eq.s32.totalorder %v5690_v47, %v3777_v30  ;;  %vm1831_vm4 = vcmp.eq.s32.totalorder %v5691_v50, %v3777_v30 }
 0x24c   : > { %v4628_v52 = vpop.permute.xlu0 %675  ;;  %654 = vperm.xlu1 %3440, %v4281_v39   ;;  %v1768_v40 = vadd.f32 %v3129_v21, %v1656_v46  ;;  %v1873_v3 = vadd.f32 %v4586_v43, %v1761_v63  ;;  %v3159_v21 = vsel %vm1942_vm1, 1.0, %v3642_v8  ;;  %vm1607_vm6 = vcmp.eq.s32.totalorder %v4462_v31, %v3777_v30 }
 0x24d   : > { %5682 = vst [vmem:[#allocation14_spill] sm:$0xff] %v4628_v52  ;;  %v3102_v52 = vsel %vm1597_vm8, 1.0, %v3642_v8  ;;  %v3112_v50 = vsel %vm1607_vm6, 1.0, %v3642_v8  ;;  %vm1834_vm1 = vcmp.eq.s32.totalorder %v4323_v32, %v3777_v30  ;;  %vm1724_vm6 = vcmp.eq.s32.totalorder %v4317_v37, %v3777_v30 }
 0x24e   : > { %v1645_v33 = vadd.f32 %v3102_v52, %v4362_v49  ;;  %v1878_v49 = vadd.f32 %v4434_v9, %v1766_v35  ;;  %v3108_v9 = vsel %vm1603_vm2, 1.0, %v3642_v8  ;;  %v3142_v35 = vsel %vm1829_vm3, 1.0, %v3642_v8 }
 0x24f   : > { %v4653_v0 = vpop.permute.xlu1 %633  ;;  %v1985_v34 = vadd.f32 %v4431_v2, %v1873_v3  ;;  %v5693_v2 = vld [vmem:[#allocation44_spill] sm:$0xff]  ;;  %vm1499_vm3 = vcmp.eq.s32.totalorder %v4275_v20, %v3777_v30  ;;  %v3133_v20 = vsel %vm1724_vm6, 1.0, %v3642_v8 }
 0x250   : > { %5686 = vst [vmem:[#allocation11_spill] sm:$0xff] %v4653_v0  ;;  %657 = vperm.xlu1 %3440, %v3981_v55   ;;  %v3110_v0 = vsel %vm1605_vm13, 1.0, %v3642_v8  ;;  %vm1497_vm10 = vcmp.eq.s32.totalorder %v5693_v2, %v3777_v30  ;;  %vm1721_vm13 = vcmp.eq.s32.totalorder %v4304_v54, %v3777_v30  ;;  %v3100_v32 = vsel %vm1499_vm3, 1.0, %v3642_v8 }
 0x251   : > { %v1663_v60 = vpop.permute.xlu0 %1662 }
 0x252   : > { %vm1709_vm0 = vcmp.eq.s32.totalorder %v1663_v60, %v3777_v30  ;;  %v1653_v60 = vadd.f32 %v3110_v0, %v4589_v19  ;;  %v4699_v19 = vsel %vm1831_vm4, 1.0, %v3642_v8  ;;  %vm1611_vm4 = vcmp.eq.s32.totalorder %v4285_v45, %v3777_v30 }
 0x253   : > { %v3118_v4 = vsel %vm1709_vm0, 1.0, %v3642_v8  ;;  %vm1612_vm0 = vcmp.eq.s32.totalorder %v4291_v38, %v3777_v30  ;;  %v3147_v38 = vsel %vm1834_vm1, 1.0, %v3642_v8 }
 0x254   : > { %v1757_v51 = vadd.f32 %v3118_v4, %v1645_v33  ;;  %3441 = vset.pattern.permute.xlu1 %v5607_v11  ;;  %v4682_v52 = vpop.permute.xlu1 %527  ;;  %v1651_v4 = vadd.f32 %v3108_v9, %v4547_v41  ;;  %v1765_v47 = vadd.f32 %v3126_v24, %v1653_v60  ;;  %v5694_v41 = vld [vmem:[#allocation45_spill] sm:$0xff]  ;;  %v1655_v60 = vadd.f32 %v3112_v50, %v4656_v61 }
 0x255   : > { %v1672_v46 = vpop.permute.xlu0 %1671  ;;  %1093 = vperm.xlu1 %3441, %v4162_v62   ;;  %v4701_v62 = vadd.f32 %v3145_v58, %v1768_v40  ;;  %vm1609_vm11 = vcmp.eq.s32.totalorder %v5694_v41, %v3777_v30  ;;  %v3117_v54 = vsel %vm1612_vm0, 1.0, %v3642_v8 }
 0x256   : > { %v1869_v33 = vadd.f32 %v4448_v25, %v1757_v51  ;;  %vm1712_vm5 = vcmp.eq.s32.totalorder %v1672_v46, %v3777_v30  ;;  %v4705_v25 = vadd.f32 %v3159_v21, %v1878_v49  ;;  %v5695_v49 = vld [vmem:[#allocation47_spill] sm:$0xff]  ;;  %v2097_v21 = vadd.f32 %v4648_v59, %v1985_v34 }
 0x257   : > { %v3121_v43 = vsel %vm1712_vm5, 1.0, %v3642_v8  ;;  %vm1610_vm12 = vcmp.eq.s32.totalorder %v5695_v49, %v3777_v30  ;;  %v3114_v9 = vsel %vm1609_vm11, 1.0, %v3642_v8  ;;  %v3130_v34 = vsel %vm1721_vm13, 1.0, %v3642_v8 }
 0x258   : > { %v1760_v0 = vadd.f32 %v3121_v43, %v4418_v5  ;;  %v1981_v63 = vadd.f32 %v4406_v53, %v1869_v33  ;;  %v5692_v5 = vld [vmem:[#allocation43_spill] sm:$0xff]  ;;  %vm2058_vm11 = vcmp.eq.s32.totalorder %v4504_v10, %v3777_v30  ;;  %v5709_v10 = vld [vmem:[#allocation10_spill] sm:$0xff] }
 0x259   : > { %v1681_v31 = vpop.permute.xlu0 %1680  ;;  %3442 = vset.pattern.permute.xlu1 %v5611_v56  ;;  %v4710_v51 = vpop.permute.xlu1 %639  ;;  %vm1943_vm9 = vcmp.eq.s32.totalorder %v5692_v5, %v3777_v30  ;;  %v5699_v5 = vld [vmem:[#allocation53_spill] sm:$0xff]  ;;  %vm2059_vm0 = vcmp.eq.s32.totalorder %v5709_v10, %v3777_v30 }
 0x25a   : > { %v1872_v40 = vadd.f32 %v4479_v27, %v1760_v0  ;;  %vm1715_vm8 = vcmp.eq.s32.totalorder %v1681_v31, %v3777_v30  ;;  %548 = vperm.xlu1 %3442, %v4359_v48   ;;  %v2093_v53 = vadd.f32 %v4538_v16, %v1981_v63  ;;  %v1877_v16 = vadd.f32 %v3142_v35, %v1765_v47 }
 0x25b   : > { %v3124_v24 = vsel %vm1715_vm8, 1.0, %v3642_v8  ;;  %v2111_v31 = vpack.c.bf16 %v4612_v26, %v2097_v21  ;;  %v5698_v26 = vld [vmem:[#allocation6_spill] sm:$0xff]  ;;  %vm1945_vm8 = vcmp.eq.s32.totalorder %v4372_v15, %v3777_v30  ;;  %v3116_v15 = vsel %vm1611_vm4, 1.0, %v3642_v8 }
 0x25c   : > { %v1984_v27 = vadd.f32 %v4490_v36, %v1872_v40  ;;  %v1763_v58 = vadd.f32 %v3124_v24, %v1651_v4  ;;  %v2109_v3 = vpack.c.bf16 %v4494_v13, %v2093_v53  ;;  %v3098_v13 = vsel %vm1497_vm10, 1.0, %v3642_v8 }
 0x25d   : > { %v1693_v46 = vpop.permute.xlu0 %1692  ;;  %v1657_v63 = vadd.f32 %v3114_v9, %v3098_v13  ;;  %v1989_v4 = vadd.f32 %v4445_v18, %v1877_v16  ;;  %vm1836_vm5 = vcmp.eq.s32.totalorder %v5698_v26, %v3777_v30  ;;  %v5702_v9 = vld [vmem:[#allocation16_spill] sm:$0xff]  ;;  %v5710_v26 = vld [vmem:[#allocation19_spill] sm:$0xff] }
 0x25e   : > { %v2096_v33 = vadd.f32 %v4497_v14, %v1984_v27  ;;  %v1875_v43 = vadd.f32 %v4597_v29, %v1763_v58  ;;  %vm1719_vm14 = vcmp.eq.s32.totalorder %v1693_v46, %v3777_v30  ;;  %3274 = vmatprep.mubr.msk.bf16.mxu1 %vm1203_vm7, %v2109_v3  ;;  %3443 = vset.pattern.permute.xlu1 %v5603_v23  ;;  %v4738_v36 = vpop.permute.xlu1 %742  ;;  %v3115_v14 = vsel %vm1610_vm12, 1.0, %v3642_v8  ;;  %v5696_v29 = vld [vmem:[#allocation48_spill] sm:$0xff] }
 0x25f   : > { %vm2054_vm15 = vcmp.eq.s32.totalorder %v5696_v29, %v3777_v30  ;;  %v3128_v59 = vsel %vm1719_vm14, 1.0, %v3642_v8  ;;  %660 = vperm.xlu1 %3443, %v4359_v48   ;;  %v1658_v50 = vadd.f32 %v3115_v14, %v4604_v28  ;;  %v5697_v28 = vld [vmem:[#allocation5_spill] sm:$0xff]  ;;  %v2101_v49 = vadd.f32 %v4541_v57, %v1989_v4 }
 0x260   : > { %v1987_v61 = vadd.f32 %v4621_v17, %v1875_v43  ;;  %v1767_v35 = vadd.f32 %v3128_v59, %v1655_v60  ;;  %v2110_v0 = vpack.c.bf16 %v2096_v33, %v4556_v44  ;;  %v3175_v40 = vsel %vm2054_vm15, 1.0, %v3642_v8  ;;  %v5703_v43 = vld [vmem:[#allocation60_spill] sm:$0xff]  ;;  %v5705_v59 = vld [vmem:[#allocation59_spill] sm:$0xff] }
 0x261   : > { %v1702_v47 = vpop.permute.xlu0 %1701  ;;  %v1769_v17 = vadd.f32 %v3130_v34, %v1657_v63  ;;  %v1660_v57 = vadd.f32 %v3117_v54, %v4607_v1  ;;  %v3162_v58 = vsel %vm1945_vm8, 1.0, %v3642_v8  ;;  %v5701_v1 = vld [vmem:[#allocation7_spill] sm:$0xff]  ;;  %vm2057_vm12 = vcmp.eq.s32.totalorder %v5702_v9, %v3777_v30 }
 0x262   : > { %vm1722_vm2 = vcmp.eq.s32.totalorder %v1702_v47, %v3777_v30  ;;  %3275 = vmatmul.mubr.msk.bf16.vlgmr.msra.gmra.mrb[0].mxu1 %vm1203_vm7, %v2110_v0  ;;  %v4768_v44 = vpop.permute.xlu1 %748  ;;  %v2099_v53 = vadd.f32 %v4663_v7, %v1987_v61  ;;  %v1879_v2 = vadd.f32 %v4699_v19, %v1767_v35  ;;  %v3160_v7 = vsel %vm1943_vm9, 1.0, %v3642_v8  ;;  %v5706_v61 = vld [vmem:[#allocation61_spill] sm:$0xff]  ;;  %v5707_v0 = vld [vmem:[#allocation15_spill] sm:$0xff] }
 0x263   : > { %v3131_v18 = vsel %vm1722_vm2, 1.0, %v3642_v8  ;;  %3278 = vmatprep.mubr.msk.bf16.mxu1 %vm1203_vm7, %v2111_v31  ;;  %663 = vperm.xlu1 %3443, %v5697_v28   ;;  %v2102_v19 = vadd.f32 %v3175_v40, %v4705_v25  ;;  %vm2056_vm9 = vcmp.eq.s32.totalorder %v5699_v5, %v3777_v30  ;;  %v5700_v25 = vld [vmem:[#allocation55_spill] sm:$0xff]  ;;  %v1881_v16 = vadd.f32 %v4472_v22, %v1769_v17 }
 0x264   : > { %v1770_v41 = vadd.f32 %v3131_v18, %v1658_v50  ;;  %vm1723_vm10 = vcmp.eq.s32.totalorder %v5700_v25, %v3777_v30  ;;  %v1991_v3 = vadd.f32 %v3160_v7, %v1879_v2  ;;  %v2112_v45 = vpack.c.bf16 %v4645_v42, %v2099_v53 }
 0x265   : > { %v4793_v24 = vpop.permute.xlu0 %745  ;;  %v2113_v21 = vpack.c.bf16 %v2102_v19, %v2101_v49  ;;  %v1659_v33 = vadd.f32 %v3116_v15, %v3100_v32  ;;  %v1992_v13 = vadd.f32 %v5703_v43, %v4701_v62  ;;  %v3177_v22 = vsel %vm2056_vm9, 1.0, %v3642_v8 }
 0x266   : > { %v1882_v37 = vadd.f32 %v3147_v38, %v1770_v41  ;;  %v4805_v27 = vpop.permute.xlu1 %751  ;;  %v3132_v42 = vsel %vm1723_vm10, 1.0, %v3642_v8  ;;  %v1772_v14 = vadd.f32 %v3133_v20, %v1660_v57  ;;  %v1993_v29 = vadd.f32 %v3162_v58, %v1881_v16 }
 0x267   : > { %3445 = vset.pattern.permute.xlu1 %v5607_v11  ;;  %vm1947_vm14 = vcmp.eq.s32.totalorder %v5705_v59, %v3777_v30  ;;  %vm1948_vm15 = vcmp.eq.s32.totalorder %v5706_v61, %v3777_v30  ;;  %v3179_v35 = vsel %vm2058_vm11, 1.0, %v3642_v8  ;;  %v2103_v63 = vadd.f32 %v5707_v0, %v1991_v3  ;;  %v5714_v59 = vld [vmem:[#allocation9_spill] sm:$0xff] }
 0x268   : > { %1099 = vperm.xlu1 %3445, %v4175_v6   ;;  %v1994_v60 = vadd.f32 %v5701_v1, %v1882_v37  ;;  %v5704_v6 = vld [vmem:[#allocation58_spill] sm:$0xff]  ;;  %v5708_v34 = vmov 2   ;;  %v3178_v50 = vsel %vm2057_vm12, 1.0, %v3642_v8  ;;  %v2104_v40 = vadd.f32 %v3177_v22, %v1992_v13 }
 0x269   : > { %v4825_v46 = vpop.permute.xlu0 %754  ;;  %vm1835_vm13 = vcmp.eq.s32.totalorder %v5704_v6, %v3777_v30  ;;  %v1771_v54 = vadd.f32 %v3132_v42, %v1659_v33  ;;  %v3149_v18 = vsel %vm1836_vm5, 1.0, %v3642_v8  ;;  %v2105_v17 = vadd.f32 %v3178_v50, %v1993_v29  ;;  %v5713_v29 = vld [vmem:[#allocation11_spill] sm:$0xff] }
 0x26a   : > { %3279 = vmatmul.mubr.msk.bf16.gmra.mrb[4].mxu1 %vm1203_vm7, %v2112_v45  ;;  %v3148_v4 = vsel %vm1835_vm13, 1.0, %v3642_v8  ;;  %v2106_v47 = vadd.f32 %v3179_v35, %v1994_v60  ;;  %v3164_v53 = vsel %vm1947_vm14, 1.0, %v3642_v8  ;;  %v3165_v2 = vsel %vm1948_vm15, 1.0, %v3642_v8  ;;  %v5715_v35 = vld [vmem:[#allocation46_spill] sm:$0xff] }
 0x26b   : > { %3282 = vmatprep.mubr.msk.bf16.mxu1 %vm1203_vm7, %v2113_v21  ;;  %v4843_v62 = vpop.permute.xlu1 %857  ;;  %v1883_v38 = vadd.f32 %v3148_v4, %v1771_v54  ;;  %v1884_v49 = vadd.f32 %v3149_v18, %v1772_v14  ;;  %v2114_v7 = vpack.c.bf16 %v2104_v40, %v2103_v63  ;;  %v3180_v19 = vsel %vm2059_vm0, 1.0, %v3642_v8  ;;  %v5716_v63 = vld [vmem:[#allocation8_spill] sm:$0xff]  ;;  %v5719_v54 = vld [vmem:[#allocation49_spill] sm:$0xff] }
 0x26c   : > { %3446 = vset.pattern.permute.xlu1 %v5708_v34  ;;  %v2115_v37 = vpack.c.bf16 %v2106_v47, %v2105_v17  ;;  %vm2060_vm1 = vcmp.eq.s32.totalorder %v5710_v26, %v3777_v30  ;;  %v5711_v60 = vmov 3   ;;  %v5712_v13 = vmov 4   ;;  %v5718_v47 = vld [vmem:[#allocation17_spill] sm:$0xff] }
 0x26d   : > { %v4856_v31 = vpop.permute.xlu0 %763  ;;  %766 = vperm.xlu1 %3446, %v4281_v39   ;;  %v1995_v15 = vadd.f32 %v3164_v53, %v1883_v38  ;;  %v1996_v57 = vadd.f32 %v3165_v2, %v1884_v49  ;;  %v3181_v20 = vsel %vm2060_vm1, 1.0, %v3642_v8  ;;  %vm677_vm2 = vcmp.eq.s32.totalorder %v4618_v12, %v3777_v30 }
 0x26e   : > { %vm678_vm3 = vcmp.eq.s32.totalorder %v5713_v29, %v3777_v30  ;;  %vm565_vm4 = vcmp.eq.s32.totalorder %v5714_v59, %v3777_v30  ;;  %vm789_vm5 = vcmp.eq.s32.totalorder %v4738_v36, %v3777_v30  ;;  %vm566_vm6 = vcmp.eq.s32.totalorder %v5715_v35, %v3777_v30  ;;  %v5717_v36 = vld [vmem:[#allocation35_spill] sm:$0xff] }
 0x26f   : > { %v4871_v41 = vpop.permute.xlu1 %860  ;;  %v2107_v5 = vadd.f32 %v3180_v19, %v1995_v15  ;;  %v2108_v3 = vadd.f32 %v3181_v20, %v1996_v57  ;;  %v2997_v0 = vsel %vm677_vm2, 1.0, %v3642_v8  ;;  %vm790_vm8 = vcmp.eq.s32.totalorder %v4793_v24, %v3777_v30 }
 0x270   : > { %vm679_vm9 = vcmp.eq.s32.totalorder %v5716_v63, %v3777_v30  ;;  %v2998_v4 = vsel %vm678_vm3, 1.0, %v3642_v8  ;;  %vm684_vm11 = vcmp.eq.s32.totalorder %v5718_v47, %v3777_v30  ;;  %v2981_v50 = vsel %vm565_vm4, 1.0, %v3642_v8 }
 0x271   : > { %v4874_v32 = vpop.permute.xlu0 %769  ;;  %772 = vperm.xlu1 %3446, %v4359_v48   ;;  %v2116_v45 = vpack.c.bf16 %v2108_v3, %v2107_v5  ;;  %v3013_v40 = vsel %vm789_vm5, 1.0, %v3642_v8  ;;  %vm902_vm12 = vcmp.eq.s32.totalorder %v4843_v62, %v3777_v30  ;;  %v2982_v24 = vsel %vm566_vm6, 1.0, %v3642_v8 }
 0x272   : > { %3283 = vmatmul.mubr.msk.bf16.gmra.mrb[8].mxu1 %vm1203_vm7, %v2114_v7  ;;  %vm567_vm13 = vcmp.eq.s32.totalorder %v5719_v54, %v3777_v30  ;;  %v725_v10 = vadd.f32 %v2997_v0, %v2981_v50  ;;  %v3014_v18 = vsel %vm790_vm8, 1.0, %v3642_v8  ;;  %v2999_v53 = vsel %vm679_vm9, 1.0, %v3642_v8 }
 0x273   : > { %3286 = vmatprep.mubr.msk.bf16.mxu1 %vm1203_vm7, %v2115_v37  ;;  %v726_v2 = vadd.f32 %v2998_v4, %v2982_v24  ;;  %vm680_vm14 = vcmp.eq.s32.totalorder %v4710_v51, %v3777_v30  ;;  %v3004_v62 = vsel %vm684_vm11, 1.0, %v3642_v8  ;;  %vm568_vm15 = vcmp.eq.s32.totalorder %v4682_v52, %v3777_v30  ;;  %v5720_v51 = vld [vmem:[#allocation29_spill] sm:$0xff] }
 0x274   : > { %v4881_v25 = vpop.permute.xlu1 %966  ;;  %v837_v49 = vadd.f32 %v3013_v40, %v725_v10  ;;  %v3030_v7 = vsel %vm902_vm12, 1.0, %v3642_v8  ;;  %vm796_vm0 = vcmp.eq.s32.totalorder %v4856_v31, %v3777_v30  ;;  %v3000_v26 = vsel %vm680_vm14, 1.0, %v3642_v8 }
 0x275   : > { %v4884_v58 = vpop.permute.xlu0 %778  ;;  %775 = vperm.xlu1 %3446, %v5697_v28   ;;  %v838_v37 = vadd.f32 %v3014_v18, %v726_v2  ;;  %vm1013_vm1 = vcmp.eq.s32.totalorder %v4881_v25, %v3777_v30  ;;  %vm791_vm4 = vcmp.eq.s32.totalorder %v4768_v44, %v3777_v30  ;;  %vm792_vm5 = vcmp.eq.s32.totalorder %v4805_v27, %v3777_v30 }
 0x276   : > { %v3020_v20 = vsel %vm796_vm0, 1.0, %v3642_v8  ;;  %v3045_v3 = vsel %vm1013_vm1, 1.0, %v3642_v8  ;;  %v2984_v29 = vsel %vm568_vm15, 1.0, %v3642_v8  ;;  %v3016_v59 = vsel %vm792_vm5, 1.0, %v3642_v8 }
 0x277   : > { %v950_v31 = vadd.f32 %v3030_v7, %v838_v37  ;;  %v2983_v63 = vsel %vm567_vm13, 1.0, %v3642_v8  ;;  %v728_v4 = vadd.f32 %v3000_v26, %v2984_v29  ;;  %v3015_v47 = vsel %vm791_vm4, 1.0, %v3642_v8 }
 0x278   : > { %v4887_v16 = vpop.permute.xlu1 %972  ;;  %v727_v24 = vadd.f32 %v2999_v53, %v2983_v63  ;;  %vm793_vm5 = vcmp.eq.s32.totalorder %v4825_v46, %v3777_v30 }
 0x279   : > { %v4889_v1 = vpop.permute.xlu0 %787  ;;  %3447 = vset.pattern.permute.xlu1 %v5711_v60  ;;  %v840_v54 = vadd.f32 %v3016_v59, %v728_v4  ;;  %vm1015_vm11 = vcmp.eq.s32.totalorder %v4887_v16, %v3777_v30 }
 0x27a   : > { %3287 = vmatmul.mubr.msk.bf16.gmra.mrb[12].mxu1 %vm1203_vm7, %v2116_v45  ;;  %881 = vperm.xlu1 %3447, %v3981_v55   ;;  %v839_v44 = vadd.f32 %v3015_v47, %v727_v24 }
 0x27c   : > { %v4894_v21 = vpop.permute.xlu1 %975 }
 0x27d   : > { %vm1016_vm12 = vcmp.eq.s32.totalorder %v4894_v21, %v3777_v30 }
 0x27e   : > { %v855_v9 = vpop.permute.xlu0 %854  ;;  %884 = vperm.xlu1 %3447, %v4359_v48   ;;  %v3048_v16 = vsel %vm1016_vm12, 1.0, %v3642_v8 }
 0x27f   : > { %vm901_vm10 = vcmp.eq.s32.totalorder %v855_v9, %v3777_v30 }
 0x280   : > { %v3029_v38 = vsel %vm901_vm10, 1.0, %v3642_v8  ;;  %vm903_vm10 = vcmp.eq.s32.totalorder %v4871_v41, %v3777_v30 }
 0x281   : > { %v4897_v33 = vpop.permute.xlu1 %533  ;;  %v949_v15 = vadd.f32 %v3029_v38, %v837_v49  ;;  %v3031_v41 = vsel %vm903_vm10, 1.0, %v3642_v8  ;;  %v5722_v49 = vld [vmem:[#allocation20_spill] sm:$0xff] }
 0x282   : > { %v4899_v43 = vpop.permute.xlu0 %863  ;;  %3448 = vset.pattern.permute.xlu1 %v5712_v13  ;;  %v951_v53 = vadd.f32 %v3031_v41, %v839_v44  ;;  %vm570_vm14 = vcmp.eq.s32.totalorder %v4897_v33, %v3777_v30  ;;  %vm682_vm0 = vcmp.eq.s32.totalorder %v5722_v49, %v3777_v30 }
 0x283   : > { %990 = vperm.xlu1 %3448, %v4281_v39   ;;  %vm904_vm9 = vcmp.eq.s32.totalorder %v4899_v43, %v3777_v30  ;;  %v1061_v35 = vadd.f32 %v3045_v3, %v949_v15  ;;  %v3047_v43 = vsel %vm1015_vm11, 1.0, %v3642_v8  ;;  %v3002_v26 = vsel %vm682_vm0, 1.0, %v3642_v8 }
 0x284   : > { %v1063_v38 = vadd.f32 %v3047_v43, %v951_v53 }
 0x286   : > { %v4903_v6 = vpop.permute.xlu0 %869  ;;  %v4905_v22 = vpop.permute.xlu1 %642 }
 0x287   : > { %996 = vperm.xlu1 %3448, %v4359_v48   ;;  %vm906_vm1 = vcmp.eq.s32.totalorder %v4903_v6, %v3777_v30 }
 0x28a   : > { %v4908_v42 = vpop.permute.xlu0 %878 }
 0x28b   : > { %999 = vperm.xlu1 %3448, %v5697_v28   ;;  %v1079_v14 = vpop.permute.xlu1 %1078 }
 0x28c   : > { %vm1125_vm3 = vcmp.eq.s32.totalorder %v1079_v14, %v3777_v30 }
 0x28d   : > { %v3061_v45 = vsel %vm1125_vm3, 1.0, %v3642_v8  ;;  %vm681_vm3 = vcmp.eq.s32.totalorder %v4905_v22, %v3777_v30 }
 0x28e   : > { %v4919_v61 = vpop.permute.xlu0 %887  ;;  %v1173_v50 = vadd.f32 %v3061_v45, %v1061_v35 }
 0x28f   : > { %3449 = vset.pattern.permute.xlu1 %v5611_v56  ;;  %v1082_v12 = vpop.permute.xlu1 %1081 }
 0x290   : > { %557 = vperm.xlu1 %3449, %v5717_v36   ;;  %vm1126_vm6 = vcmp.eq.s32.totalorder %v1082_v12, %v3777_v30 }
 0x291   : > { %v3062_v52 = vsel %vm1126_vm6, 1.0, %v3642_v8 }
 0x292   : > { %v4942_v17 = vpop.permute.xlu0 %893 }
 0x294   : > { %3450 = vset.pattern.permute.xlu1 %v5603_v23  ;;  %v540_v19 = vpop.permute.xlu1 %539 }
 0x295   : > { %vm572_vm2 = vcmp.eq.s32.totalorder %v540_v19, %v3777_v30  ;;  %666 = vperm.xlu1 %3450, %v5720_v51   ;;  %v2986_v19 = vsel %vm570_vm14, 1.0, %v3642_v8 }
 0x296   : > { %v2988_v57 = vsel %vm572_vm2, 1.0, %v3642_v8 }
 0x297   : > { %v732_v5 = vadd.f32 %v3004_v62, %v2988_v57  ;;  %v970_v25 = vpop.permute.xlu0 %969  ;;  %v5721_v62 = vld [vmem:[#allocation36_spill] sm:$0xff]  ;;  %v730_v57 = vadd.f32 %v3002_v26, %v2986_v19 }
 0x298   : > { %vm1014_vm8 = vcmp.eq.s32.totalorder %v970_v25, %v3777_v30 }
 0x299   : > { %v3046_v9 = vsel %vm1014_vm8, 1.0, %v3642_v8  ;;  %3451 = vset.pattern.permute.xlu1 %v5607_v11  ;;  %v4975_v27 = vpop.permute.xlu1 %648  ;;  %v4977_v14 = vadd.f32 %v3020_v20, %v732_v5  ;;  %v3034_v20 = vsel %vm906_vm1, 1.0, %v3642_v8 }
 0x29a   : > { %v1062_v0 = vadd.f32 %v3046_v9, %v950_v31  ;;  %1102 = vperm.xlu1 %3451, %v4281_v39   ;;  %v3032_v39 = vsel %vm904_vm9, 1.0, %v3642_v8  ;;  %v5723_v31 = vld [vmem:[#allocation30_spill] sm:$0xff]  ;;  %vm683_vm12 = vcmp.eq.s32.totalorder %v4975_v27, %v3777_v30 }
 0x29b   : > { %v952_v18 = vadd.f32 %v3032_v39, %v840_v54  ;;  %v979_v63 = vpop.permute.xlu0 %978 }
 0x29c   : > { %v1174_v40 = vadd.f32 %v3062_v52, %v1062_v0  ;;  %v3017_v0 = vsel %vm793_vm5, 1.0, %v3642_v8  ;;  %vm1017_vm8 = vcmp.eq.s32.totalorder %v979_v63, %v3777_v30 }
 0x29d   : > { %v1064_v21 = vadd.f32 %v3048_v16, %v952_v18 }
 0x29e   : > { %1105 = vperm.xlu1 %3451, %v3981_v55   ;;  %v1085_v12 = vpop.permute.xlu1 %1084  ;;  %v1189_v10 = vpack.c.bf16 %v1174_v40, %v1173_v50  ;;  %v5725_v50 = vld [vmem:[#allocation21_spill] sm:$0xff] }
 0x29f   : > { %vm1127_vm13 = vcmp.eq.s32.totalorder %v1085_v12, %v3777_v30  ;;  %vm1129_vm10 = vcmp.eq.s32.totalorder %v5725_v50, %v3777_v30  ;;  %v5729_v50 = vld [vmem:[#allocation52_spill] sm:$0xff] }
 0x2a0   : > { %3256 = vmatprep.mubr.msk.bf16.mxu0 %vm1203_vm7, %v1189_v10  ;;  %v3063_v55 = vsel %vm1127_vm13, 1.0, %v3642_v8  ;;  %v3065_v54 = vsel %vm1129_vm10, 1.0, %v3642_v8  ;;  %vm912_vm10 = vcmp.eq.s32.totalorder %v4919_v61, %v3777_v30 }
 0x2a1   : > { %v1175_v37 = vadd.f32 %v3063_v55, %v1063_v38  ;;  %v988_v38 = vpop.permute.xlu0 %987 }
 0x2a2   : > { %3453 = vset.pattern.permute.xlu1 %v5611_v56  ;;  %v1088_v2 = vpop.permute.xlu1 %1087 }
 0x2a3   : > { %vm1128_vm15 = vcmp.eq.s32.totalorder %v1088_v2, %v3777_v30  ;;  %563 = vperm.xlu1 %3453, %v5721_v62  }
 0x2a4   : > { %v3064_v7 = vsel %vm1128_vm15, 1.0, %v3642_v8 }
 0x2a5   : > { %v1176_v33 = vadd.f32 %v3064_v7, %v1064_v21 }
 0x2a7   : > { %v1190_v15 = vpack.c.bf16 %v1176_v33, %v1175_v37  ;;  %3454 = vset.pattern.permute.xlu1 %v5603_v23  ;;  %v758_v56 = vpop.permute.xlu1 %757 }
 0x2a8   : > { %vm794_vm2 = vcmp.eq.s32.totalorder %v758_v56, %v3777_v30  ;;  %672 = vperm.xlu1 %3454, %v5723_v31  }
 0x2a9   : > { %v3018_v5 = vsel %vm794_vm2, 1.0, %v3642_v8  ;;  %3257 = vmatmul.mubr.msk.bf16.vlgmr.msra.gmra.mrb[0].mxu0 %vm1203_vm7, %v1190_v15  ;;  %v5727_v15 = vld [vmem:[#allocation23_spill] sm:$0xff] }
 0x2aa   : > { %v842_v25 = vadd.f32 %v3018_v5, %v730_v57  ;;  %vm1131_vm5 = vcmp.eq.s32.totalorder %v5727_v15, %v3777_v30 }
 0x2ab   : > { %v5031_v3 = vpop.permute.xlu1 %760 }
 0x2ac   : > { %3456 = vset.pattern.permute.xlu1 %v5607_v11  ;;  %v954_v23 = vadd.f32 %v3034_v20, %v842_v25  ;;  %vm795_vm14 = vcmp.eq.s32.totalorder %v5031_v3, %v3777_v30  ;;  %v3067_v25 = vsel %vm1131_vm5, 1.0, %v3642_v8 }
 0x2ad   : > { %1108 = vperm.xlu1 %3456, %v4359_v48   ;;  %v5724_v48 = vld [vmem:[#allocation50_spill] sm:$0xff]  ;;  %v3019_v53 = vsel %vm795_vm14, 1.0, %v3642_v8 }
 0x2ae   : > { %vm569_vm4 = vcmp.eq.s32.totalorder %v5724_v48, %v3777_v30 }
 0x2b0   : > { %v867_v45 = vpop.permute.xlu1 %866 }
 0x2b1   : > { %1111 = vperm.xlu1 %3456, %v5697_v28   ;;  %v3001_v28 = vsel %vm681_vm3, 1.0, %v3642_v8  ;;  %vm905_vm6 = vcmp.eq.s32.totalorder %v867_v45, %v3777_v30 }
 0x2b2   : > { %v3033_v4 = vsel %vm905_vm6, 1.0, %v3642_v8 }
 0x2b4   : > { %v5036_v6 = vpop.permute.xlu1 %872 }
 0x2b5   : > { %3457 = vset.pattern.permute.xlu1 %v5708_v34  ;;  %vm907_vm0 = vcmp.eq.s32.totalorder %v5036_v6, %v3777_v30 }
 0x2b6   : > { %781 = vperm.xlu1 %3457, %v5717_v36   ;;  %v3035_v21 = vsel %vm907_vm0, 1.0, %v3642_v8 }
 0x2b8   : > { %v5040_v9 = vpop.permute.xlu1 %875 }
 0x2b9   : > { %vm908_vm1 = vcmp.eq.s32.totalorder %v5040_v9, %v3777_v30  ;;  %v5728_v9 = vld [vmem:[#allocation54_spill] sm:$0xff] }
 0x2ba   : > { %784 = vperm.xlu1 %3457, %v5723_v31  }
 0x2bd   : > { %v982_v29 = vpop.permute.xlu1 %981 }
 0x2be   : > { %3459 = vset.pattern.permute.xlu1 %v5711_v60  ;;  %v2985_v60 = vsel %vm569_vm4, 1.0, %v3642_v8  ;;  %vm1018_vm9 = vcmp.eq.s32.totalorder %v982_v29, %v3777_v30  ;;  %vm1020_vm4 = vcmp.eq.s32.totalorder %v988_v38, %v3777_v30 }
 0x2bf   : > { %890 = vperm.xlu1 %3459, %v5720_v51   ;;  %v729_v35 = vadd.f32 %v3001_v28, %v2985_v60  ;;  %v3050_v39 = vsel %vm1018_vm9, 1.0, %v3642_v8  ;;  %v3052_v57 = vsel %vm1020_vm4, 1.0, %v3642_v8  ;;  %vm576_vm9 = vcmp.eq.s32.totalorder %v5728_v9, %v3777_v30 }
 0x2c0   : > { %v1066_v24 = vadd.f32 %v3050_v39, %v954_v23 }
 0x2c1   : > { %v5045_v59 = vpop.permute.xlu1 %984  ;;  %v841_v52 = vadd.f32 %v3017_v0, %v729_v35  ;;  %v3040_v0 = vsel %vm912_vm10, 1.0, %v3642_v8  ;;  %vm804_vm10 = vcmp.eq.s32.totalorder %v4889_v1, %v3777_v30 }
 0x2c2   : > { %vm1019_vm3 = vcmp.eq.s32.totalorder %v5045_v59, %v3777_v30  ;;  %v2992_v59 = vsel %vm576_vm9, 1.0, %v3642_v8 }
 0x2c3   : > { %896 = vperm.xlu1 %3459, %v5723_v31   ;;  %v953_v47 = vadd.f32 %v3033_v4, %v841_v52  ;;  %v3051_v37 = vsel %vm1019_vm3, 1.0, %v3642_v8  ;;  %vm909_vm3 = vcmp.eq.s32.totalorder %v4908_v42, %v3777_v30 }
 0x2c6   : > { %v5053_v34 = vpop.permute.xlu1 %542 }
 0x2c7   : > { %899 = vperm.xlu1 %3459, %v5721_v62  }
 0x2cb   : > { %3461 = vset.pattern.permute.xlu1 %v5712_v13  ;;  %v5061_v22 = vpop.permute.xlu1 %654  ;;  %v3049_v13 = vsel %vm1017_vm8, 1.0, %v3642_v8 }
 0x2cc   : > { %1005 = vperm.xlu1 %3461, %v5717_v36   ;;  %v1065_v40 = vadd.f32 %v3049_v13, %v953_v47  ;;  %vm685_vm14 = vcmp.eq.s32.totalorder %v5061_v22, %v3777_v30 }
 0x2ce   : > { %v1177_v12 = vadd.f32 %v3065_v54, %v1065_v40 }
 0x2cf   : > { %v5068_v46 = vpop.permute.xlu1 %657 }
 0x2d0   : > { %1008 = vperm.xlu1 %3461, %v5723_v31  }
 0x2d4   : > { %3462 = vset.pattern.permute.xlu1 %v5607_v11  ;;  %v1094_v36 = vpop.permute.xlu1 %1093  ;;  %v5726_v11 = vld [vmem:[#allocation51_spill] sm:$0xff] }
 0x2d5   : > { %vm1130_vm11 = vcmp.eq.s32.totalorder %v1094_v36, %v3777_v30  ;;  %1114 = vperm.xlu1 %3462, %v5720_v51   ;;  %vm571_vm13 = vcmp.eq.s32.totalorder %v5726_v11, %v3777_v30  ;;  %v3003_v51 = vsel %vm683_vm12, 1.0, %v3642_v8  ;;  %vm686_vm12 = vcmp.eq.s32.totalorder %v5068_v46, %v3777_v30 }
 0x2d6   : > { %v3066_v41 = vsel %vm1130_vm11, 1.0, %v3642_v8  ;;  %v2987_v43 = vsel %vm571_vm13, 1.0, %v3642_v8  ;;  %vm574_vm13 = vcmp.eq.s32.totalorder %v5729_v50, %v3777_v30  ;;  %v3006_v40 = vsel %vm686_vm12, 1.0, %v3642_v8 }
 0x2d7   : > { %v1178_v10 = vadd.f32 %v3066_v41, %v1066_v24  ;;  %v731_v16 = vadd.f32 %v3003_v51, %v2987_v43  ;;  %v2990_v36 = vsel %vm574_vm13, 1.0, %v3642_v8  ;;  %v3005_v24 = vsel %vm685_vm14, 1.0, %v3642_v8 }
 0x2d8   : > { %v734_v46 = vadd.f32 %v3006_v40, %v2990_v36 }
 0x2d9   : > { %v1191_v44 = vpack.c.bf16 %v1178_v10, %v1177_v12  ;;  %1120 = vperm.xlu1 %3462, %v5723_v31   ;;  %v549_v18 = vpop.permute.xlu1 %548  ;;  %v843_v7 = vadd.f32 %v3019_v53, %v731_v16  ;;  %v994_v10 = vpop.permute.xlu0 %993 }
 0x2da   : > { %vm575_vm15 = vcmp.eq.s32.totalorder %v549_v18, %v3777_v30  ;;  %vm1022_vm5 = vcmp.eq.s32.totalorder %v994_v10, %v3777_v30 }
 0x2db   : > { %3260 = vmatprep.mubr.msk.bf16.mxu0 %vm1203_vm7, %v1191_v44  ;;  %v2991_v55 = vsel %vm575_vm15, 1.0, %v3642_v8  ;;  %v955_v33 = vadd.f32 %v3035_v21, %v843_v7  ;;  %vm573_vm15 = vcmp.eq.s32.totalorder %v5053_v34, %v3777_v30  ;;  %v3054_v16 = vsel %vm1022_vm5, 1.0, %v3642_v8 }
 0x2dc   : > { %v2989_v22 = vsel %vm573_vm15, 1.0, %v3642_v8 }
 0x2dd   : > { %1123 = vperm.xlu1 %3462, %v5721_v62   ;;  %v3036_v62 = vsel %vm908_vm1, 1.0, %v3642_v8  ;;  %v1067_v56 = vadd.f32 %v3051_v37, %v955_v33  ;;  %vm798_vm1 = vcmp.eq.s32.totalorder %v4874_v32, %v3777_v30  ;;  %v733_v12 = vadd.f32 %v3005_v24, %v2989_v22 }
 0x2de   : > { %v661_v27 = vpop.permute.xlu1 %660  ;;  %v956_v26 = vadd.f32 %v3036_v62, %v4977_v14  ;;  %v3022_v34 = vsel %vm798_vm1, 1.0, %v3642_v8 }
 0x2df   : > { %vm687_vm2 = vcmp.eq.s32.totalorder %v661_v27, %v3777_v30  ;;  %v1179_v3 = vadd.f32 %v3067_v25, %v1067_v56  ;;  %v846_v32 = vadd.f32 %v3022_v34, %v734_v46  ;;  %v3037_v27 = vsel %vm909_vm3, 1.0, %v3642_v8 }
 0x2e0   : > { %v3007_v2 = vsel %vm687_vm2, 1.0, %v3642_v8  ;;  %v1068_v5 = vadd.f32 %v3052_v57, %v956_v26  ;;  %v3028_v57 = vsel %vm804_vm10, 1.0, %v3642_v8 }
 0x2e1   : > { %v5104_v49 = vadd.f32 %v3007_v2, %v2991_v55 }
 0x2e2   : > { %v664_v19 = vpop.permute.xlu1 %663 }
 0x2e3   : > { %vm688_vm8 = vcmp.eq.s32.totalorder %v664_v19, %v3777_v30  ;;  %v5730_v19 = vld [vmem:[#allocation14_spill] sm:$0xff] }
 0x2e4   : > { %v3008_v29 = vsel %vm688_vm8, 1.0, %v3642_v8  ;;  %vm692_vm9 = vcmp.eq.s32.totalorder %v5730_v19, %v3777_v30 }
 0x2e5   : > { %v736_v28 = vadd.f32 %v3008_v29, %v2992_v59  ;;  %v3012_v26 = vsel %vm692_vm9, 1.0, %v3642_v8  ;;  %vm801_vm9 = vcmp.eq.s32.totalorder %v4884_v58, %v3777_v30 }
 0x2e7   : > { %v1100_v31 = vpop.permute.xlu1 %1099 }
 0x2e8   : > { %vm1132_vm6 = vcmp.eq.s32.totalorder %v1100_v31, %v3777_v30 }
 0x2e9   : > { %v3068_v20 = vsel %vm1132_vm6, 1.0, %v3642_v8 }
 0x2ea   : > { %v1180_v23 = vadd.f32 %v3068_v20, %v1068_v5 }
 0x2ec   : > { %v1192_v45 = vpack.c.bf16 %v1180_v23, %v1179_v3  ;;  %v767_v6 = vpop.permute.xlu1 %766 }
 0x2ed   : > { %vm797_vm0 = vcmp.eq.s32.totalorder %v767_v6, %v3777_v30  ;;  %v3505_v6 = vld [vmem:[%s5551_s5] sm:$0xff]  }
 0x2ee   : > { %3261 = vmatmul.mubr.msk.bf16.gmra.mrb[4].mxu0 %vm1203_vm7, %v1192_v45  ;;  %v3021_v41 = vsel %vm797_vm0, 1.0, %v3642_v8  ;;  %3290 = vmatprep.subr.bf16.mxu0 %v3505_v6 }
 0x2ef   : > { %v845_v18 = vadd.f32 %v3021_v41, %v733_v12  ;;  %3291 = vmatpush3.bf16.msra.mxu0 %v3505_v6 }
 0x2f0   : > { %v5117_v14 = vpop.permute.xlu1 %772 }
 0x2f1   : > { %v957_v53 = vadd.f32 %v3037_v27, %v845_v18  ;;  %vm799_vm12 = vcmp.eq.s32.totalorder %v5117_v14, %v3777_v30  ;;  %v1003_v27 = vpop.permute.xlu0 %1002 }
 0x2f2   : > { %v3023_v1 = vsel %vm799_vm12, 1.0, %v3642_v8  ;;  %vm1025_vm12 = vcmp.eq.s32.totalorder %v1003_v27, %v3777_v30 }
 0x2f3   : > { %v847_v3 = vadd.f32 %v3023_v1, %v5104_v49 }
 0x2f4   : > { %v776_v48 = vpop.permute.xlu1 %775 }
 0x2f5   : > { %vm800_vm11 = vcmp.eq.s32.totalorder %v776_v48, %v3777_v30  ;;  %v5731_v48 = vld [vmem:[#allocation12_spill] sm:$0xff]  ;;  %v1012_v19 = vpop.permute.xlu0 %1011 }
 0x2f6   : > { %v3024_v60 = vsel %vm800_vm11, 1.0, %v3642_v8  ;;  %vm690_vm3 = vcmp.eq.s32.totalorder %v5731_v48, %v3777_v30 }
 0x2f7   : > { %v848_v35 = vadd.f32 %v3024_v60, %v736_v28 }
 0x2f9   : > { %v882_v63 = vpop.permute.xlu1 %881  ;;  %v5128_v4 = vadd.f32 %v3040_v0, %v848_v35 }
 0x2fa   : > { %vm910_vm2 = vcmp.eq.s32.totalorder %v882_v63, %v3777_v30  ;;  %v3010_v63 = vsel %vm690_vm3, 1.0, %v3642_v8 }
 0x2fb   : > { %v3038_v44 = vsel %vm910_vm2, 1.0, %v3642_v8 }
 0x2fc   : > { %v958_v51 = vadd.f32 %v3038_v44, %v846_v32 }
 0x2fd   : > { %v885_v52 = vpop.permute.xlu1 %884 }
 0x2fe   : > { %v1070_v38 = vadd.f32 %v3054_v16, %v958_v51  ;;  %vm911_vm13 = vcmp.eq.s32.totalorder %v885_v52, %v3777_v30 }
 0x2ff   : > { %v3039_v25 = vsel %vm911_vm13, 1.0, %v3642_v8 }
 0x300   : > { %v959_v14 = vadd.f32 %v3039_v25, %v847_v3 }
 0x302   : > { %v991_v47 = vpop.permute.xlu1 %990 }
 0x303   : > { %vm1021_vm4 = vcmp.eq.s32.totalorder %v991_v47, %v3777_v30 }
 0x304   : > { %v3053_v43 = vsel %vm1021_vm4, 1.0, %v3642_v8  ;;  %vm914_vm4 = vcmp.eq.s32.totalorder %v4942_v17, %v3777_v30 }
 0x305   : > { %v1069_v2 = vadd.f32 %v3053_v43, %v957_v53  ;;  %v3042_v46 = vsel %vm914_vm4, 1.0, %v3642_v8 }
 0x306   : > { %v5130_v13 = vpop.permute.xlu1 %996 }
 0x307   : > { %vm1023_vm14 = vcmp.eq.s32.totalorder %v5130_v13, %v3777_v30 }
 0x308   : > { %v3055_v23 = vsel %vm1023_vm14, 1.0, %v3642_v8 }
 0x309   : > { %v1071_v59 = vadd.f32 %v3055_v23, %v959_v14  ;;  %v5733_v14 = vld [vmem:[#allocation57_spill] sm:$0xff] }
 0x30a   : > { %v5132_v39 = vpop.permute.xlu1 %999  ;;  %vm579_vm14 = vcmp.eq.s32.totalorder %v5733_v14, %v3777_v30  ;;  %v3506_v14 = vld [vmem:[%s5553_s7] sm:$0xff]  }
 0x30b   : > { %vm1024_vm15 = vcmp.eq.s32.totalorder %v5132_v39, %v3777_v30  ;;  %3308 = vmatprep.subr.bf16.mxu1 %v3506_v14 }
 0x30c   : > { %v3056_v45 = vsel %vm1024_vm15, 1.0, %v3642_v8  ;;  %3309 = vmatpush3.bf16.msra.mxu1 %v3506_v14 }
 0x30d   : > { %v1072_v49 = vadd.f32 %v3056_v45, %v5128_v4 }
 0x30f   : > { %v5136_v61 = vpop.permute.xlu1 %557 }
 0x310   : > { %vm578_vm1 = vcmp.eq.s32.totalorder %v5136_v61, %v3777_v30 }
 0x311   : > { %v2994_v60 = vsel %vm578_vm1, 1.0, %v3642_v8 }
 0x312   : > { %v738_v4 = vadd.f32 %v3010_v63, %v2994_v60 }
 0x314   : > { %v5151_v54 = vpop.permute.xlu1 %666 }
 0x319   : > { %v1103_v11 = vpop.permute.xlu1 %1102 }
 0x31a   : > { %vm1133_vm6 = vcmp.eq.s32.totalorder %v1103_v11, %v3777_v30 }
 0x31b   : > { %v3069_v55 = vsel %vm1133_vm6, 1.0, %v3642_v8  ;;  %vm689_vm6 = vcmp.eq.s32.totalorder %v5151_v54, %v3777_v30 }
 0x31c   : > { %v1181_v62 = vadd.f32 %v3069_v55, %v1069_v2  ;;  %v5732_v55 = vld [vmem:[#allocation56_spill] sm:$0xff]  ;;  %v3009_v2 = vsel %vm689_vm6, 1.0, %v3642_v8 }
 0x31d   : > { %v1106_v42 = vpop.permute.xlu1 %1105 }
 0x31e   : > { %vm1134_vm8 = vcmp.eq.s32.totalorder %v1106_v42, %v3777_v30 }
 0x31f   : > { %v3070_v21 = vsel %vm1134_vm8, 1.0, %v3642_v8  ;;  %vm577_vm8 = vcmp.eq.s32.totalorder %v5732_v55, %v3777_v30 }
 0x320   : > { %v1182_v7 = vadd.f32 %v3070_v21, %v1070_v38 }
 0x322   : > { %v1193_v37 = vpack.c.bf16 %v1182_v7, %v1181_v62  ;;  %v564_v33 = vpop.permute.xlu1 %563  ;;  %v2993_v7 = vsel %vm577_vm8, 1.0, %v3642_v8 }
 0x323   : > { %vm580_vm11 = vcmp.eq.s32.totalorder %v564_v33, %v3777_v30  ;;  %v737_v54 = vadd.f32 %v3009_v2, %v2993_v7 }
 0x324   : > { %v2996_v15 = vsel %vm580_vm11, 1.0, %v3642_v8  ;;  %3264 = vmatprep.mubr.msk.bf16.mxu0 %vm1203_vm7, %v1193_v37 }
 0x325   : > { %v740_v56 = vadd.f32 %v3012_v26, %v2996_v15  ;;  %v3025_v26 = vsel %vm801_vm9, 1.0, %v3642_v8  ;;  %vm2302_vm9 = vcmask 64512  }
 0x327   : > { %v5179_v31 = vpop.permute.xlu1 %672  ;;  %v5181_v5 = vadd.f32 %v3028_v57, %v740_v56  ;;  %v849_v57 = vadd.f32 %v3025_v26, %v737_v54 }
 0x328   : > { %vm691_vm13 = vcmp.eq.s32.totalorder %v5179_v31, %v3777_v30 }
 0x329   : > { %v3011_v31 = vsel %vm691_vm13, 1.0, %v3642_v8  ;;  %vm2542_vm13 = vcmask 261120  }
 0x32c   : > { %v1109_v20 = vpop.permute.xlu1 %1108 }
 0x32d   : > { %vm1135_vm0 = vcmp.eq.s32.totalorder %v1109_v20, %v3777_v30  ;;  %v1118_v20 = vpop.permute.xlu0 %1117 }
 0x32e   : > { %v3071_v9 = vsel %vm1135_vm0, 1.0, %v3642_v8  ;;  %vm1138_vm15 = vcmp.eq.s32.totalorder %v1118_v20, %v3777_v30 }
 0x32f   : > { %v1183_v35 = vadd.f32 %v3071_v9, %v1071_v59 }
 0x330   : > { %v1112_v29 = vpop.permute.xlu1 %1111 }
 0x331   : > { %vm1136_vm2 = vcmp.eq.s32.totalorder %v1112_v29, %v3777_v30  ;;  %v3057_v29 = vsel %vm1025_vm12, 1.0, %v3642_v8 }
 0x332   : > { %v3072_v28 = vsel %vm1136_vm2, 1.0, %v3642_v8 }
 0x333   : > { %v1184_v0 = vadd.f32 %v3072_v28, %v1072_v49  ;;  %v2995_v49 = vsel %vm579_vm14, 1.0, %v3642_v8  ;;  %v3074_v28 = vsel %vm1138_vm15, 1.0, %v3642_v8 }
 0x334   : > { %v739_v63 = vadd.f32 %v3011_v31, %v2995_v49 }
 0x335   : > { %v1194_v52 = vpack.c.bf16 %v1184_v0, %v1183_v35  ;;  %v3276_v47 = vpop.f32.mrb[0].mxu1  ;;  %v782_v13 = vpop.permute.xlu1 %781 }
 0x336   : > { %vm802_vm5 = vcmp.eq.s32.totalorder %v782_v13, %v3777_v30  ;;  %v2175_v39 = vpop.f32.mrb[1].mxu1 }
 0x337   : > { %v3026_v61 = vsel %vm802_vm5, 1.0, %v3642_v8  ;;  %3265 = vmatmul.mubr.msk.bf16.gmra.mrb[8].mxu0 %vm1203_vm7, %v1194_v52  ;;  %v3277_v50 = vpop.f32.mrb[2].mxu1  ;;  %vm1028_vm5 = vcmp.eq.s32.totalorder %v1012_v19, %v3777_v30 }
 0x338   : > { %v850_v40 = vadd.f32 %v3026_v61, %v738_v4  ;;  %v3469_v36 = vpack.i.bf16 %v3277_v50, %v3276_v47  ;;  %v2178_v24 = vpop.f32.mrb[3].mxu1 }
 0x339   : > { %v3464_v22 = vpack.i.bf16 %v2178_v24, %v2175_v39  ;;  %v5213_v41 = vpop.permute.xlu1 %784  ;;  %v3060_v24 = vsel %vm1028_vm5, 1.0, %v3642_v8 }
 0x33a   : > { %3470 = vrot.lane.b32.xlu1 %v3469_v36, %s3643_s27  ;;  %v962_v17 = vadd.f32 %v3042_v46, %v850_v40  ;;  %vm803_vm0 = vcmp.eq.s32.totalorder %v5213_v41, %v3777_v30 }
 0x33b   : > { %3465 = vrot.lane.b32.xlu0 %v3464_v22, %s3643_s27  ;;  %v3027_v60 = vsel %vm803_vm0, 1.0, %v3642_v8 }
 0x33c   : > { %v851_v39 = vadd.f32 %v3027_v60, %v739_v63  ;;  %v3507_v63 = vld [vmem:[%s5553_s7 + $0x8] sm:$0xff]  }
 0x33d   : > { %v3280_v12 = vpop.f32.mrb[4].mxu1  ;;  %3310 = vmatprep.subr.bf16.mxu1 %v3507_v63 }
 0x33e   : > { %v2191_v34 = vpop.f32.mrb[5].mxu1  ;;  %v891_v10 = vpop.permute.xlu1 %890  ;;  %3311 = vmatpush3.bf16.msra.mxu1 %v3507_v63 }
 0x33f   : > { %v3281_v44 = vpop.f32.mrb[6].mxu1  ;;  %vm913_vm10 = vcmp.eq.s32.totalorder %v891_v10, %v3777_v30 }
 0x340   : > { %v3479_v18 = vpack.i.bf16 %v3281_v44, %v3280_v12  ;;  %v2194_v32 = vpop.f32.mrb[7].mxu1  ;;  %v3041_v15 = vsel %vm913_vm10, 1.0, %v3642_v8 }
 0x341   : > { %v3474_v11 = vpack.i.bf16 %v2194_v32, %v2191_v34  ;;  %v961_v45 = vadd.f32 %v3041_v15, %v849_v57 }
 0x342   : > { %3480 = vrot.lane.b32.xlu1 %v3479_v18, %s3643_s27  ;;  %v897_v51 = vpop.permute.xlu1 %896 }
 0x343   : > { %3475 = vrot.lane.b32.xlu0 %v3474_v11, %s3643_s27  ;;  %vm915_vm2 = vcmp.eq.s32.totalorder %v897_v51, %v3777_v30  ;;  %v1073_v48 = vadd.f32 %v3057_v29, %v961_v45 }
 0x344   : > { %v3043_v13 = vsel %vm915_vm2, 1.0, %v3642_v8 }
 0x345   : > { %v3284_v43 = vpop.f32.mrb[8].mxu1  ;;  %v963_v36 = vadd.f32 %v3043_v13, %v851_v39 }
 0x346   : > { %v2207_v53 = vpop.f32.mrb[9].mxu1  ;;  %v900_v16 = vpop.permute.xlu1 %899 }
 0x347   : > { %v3285_v42 = vpop.f32.mrb[10].mxu1  ;;  %vm916_vm1 = vcmp.eq.s32.totalorder %v900_v16, %v3777_v30 }
 0x348   : > { %v3489_v38 = vpack.i.bf16 %v3285_v42, %v3284_v43  ;;  %v2210_v21 = vpop.f32.mrb[11].mxu1  ;;  %v3044_v35 = vsel %vm916_vm1, 1.0, %v3642_v8 }
 0x349   : > { %v3484_v62 = vpack.i.bf16 %v2210_v21, %v2207_v53  ;;  %v964_v61 = vadd.f32 %v3044_v35, %v5181_v5 }
 0x34a   : > { %3490 = vrot.lane.b32.xlu1 %v3489_v38, %s3643_s27 }
 0x34b   : > { %3485 = vrot.lane.b32.xlu0 %v3484_v62, %s3643_s27  ;;  %v1006_v37 = vpop.permute.xlu1 %1005 }
 0x34c   : > { %vm1026_vm11 = vcmp.eq.s32.totalorder %v1006_v37, %v3777_v30 }
 0x34d   : > { %v3288_v33 = vpop.f32.mrb[12].mxu1  ;;  %v3058_v58 = vsel %vm1026_vm11, 1.0, %v3642_v8 }
 0x34e   : > { %v2223_v56 = vpop.f32.mrb[13].mxu1  ;;  %v1074_v9 = vadd.f32 %v3058_v58, %v962_v17  ;;  %v1076_v17 = vadd.f32 %v3060_v24, %v964_v61 }
 0x34f   : > { %v3289_v1 = vpop.f32.mrb[14].mxu1  ;;  %v1009_v25 = vpop.permute.xlu1 %1008 }
 0x350   : > { %v3499_v3 = vpack.i.bf16 %v3289_v1, %v3288_v33  ;;  %v2226_v23 = vpop.f32.mrb[15].mxu1  ;;  %v1186_v52 = vadd.f32 %v3074_v28, %v1074_v9  ;;  %vm1027_vm4 = vcmp.eq.s32.totalorder %v1009_v25, %v3777_v30 }
 0x351   : > { %v3494_v6 = vpack.i.bf16 %v2226_v23, %v2223_v56  ;;  %v3059_v40 = vsel %vm1027_vm4, 1.0, %v3642_v8 }
 0x352   : > { %3500 = vrot.lane.b32.xlu1 %v3499_v3, %s3643_s27  ;;  %v1075_v41 = vadd.f32 %v3059_v40, %v963_v36 }
 0x353   : > { %3495 = vrot.lane.b32.xlu0 %v3494_v6, %s3643_s27 }
 0x354   : > { %v1115_v59 = vpop.permute.xlu1 %1114 }
 0x355   : > { %vm1137_vm3 = vcmp.eq.s32.totalorder %v1115_v59, %v3777_v30 }
 0x356   : > { %v3073_v0 = vsel %vm1137_vm3, 1.0, %v3642_v8 }
 0x357   : > { %v1185_v47 = vadd.f32 %v3073_v0, %v1073_v48 }
 0x358   : > { %v1121_v4 = vpop.permute.xlu1 %1120 }
 0x359   : > { %v1195_v50 = vpack.c.bf16 %v1186_v52, %v1185_v47  ;;  %vm1139_vm6 = vcmp.eq.s32.totalorder %v1121_v4, %v3777_v30 }
 0x35a   : > { %v3075_v46 = vsel %vm1139_vm6, 1.0, %v3642_v8 }
 0x35b   : > { %3268 = vmatprep.mubr.msk.bf16.mxu0 %vm1203_vm7, %v1195_v50  ;;  %v1187_v5 = vadd.f32 %v3075_v46, %v1075_v41 }
 0x35c   : > { %v1124_v22 = vpop.permute.xlu1 %1123 }
 0x35d   : > { %vm1140_vm8 = vcmp.eq.s32.totalorder %v1124_v22, %v3777_v30 }
 0x35e   : > { %v3076_v12 = vsel %vm1140_vm8, 1.0, %v3642_v8 }
 0x35f   : > { %v1188_v34 = vadd.f32 %v3076_v12, %v1076_v17 }
 0x361   : > { %v1196_v10 = vpack.c.bf16 %v1188_v34, %v1187_v5 }
 0x363   : > { %3269 = vmatmul.mubr.msk.bf16.gmra.mrb[12].mxu0 %vm1203_vm7, %v1196_v10 }
 0x37c   : > { %v3258_v44 = vpop.f32.mrb[0].mxu0 }
 0x37d   : > { %v1262_v18 = vpop.f32.mrb[1].mxu0 }
 0x37e   : > { %v3259_v32 = vpop.f32.mrb[2].mxu0 }
 0x37f   : > { %v1265_v11 = vpop.f32.mrb[3].mxu0 }
 0x3ac   : > { %v3471_v51 = vpop.permute.xlu1 %3470 }
 0x3ad   : > { %v3473_v27 = vunpack.i.h.bf16 %v3471_v51  ;;  %v3472_v43 = vunpack.i.l.bf16 %v3471_v51  ;;  %v3466_v53 = vpop.permute.xlu0 %3465 }
 0x3ae   : > { %v3468_v16 = vunpack.i.h.bf16 %v3466_v53  ;;  %v3467_v55 = vunpack.i.l.bf16 %v3466_v53 }
 0x3af   : > { %v2306_v30 = vsel %vm2302_vm9, %v3259_v32, %v3473_v27  ;;  %v2305_v8 = vsel %vm2302_vm9, %v3258_v44, %v3472_v43  ;;  %v5299_v32 = vld [vmem:[%s5552_s6] ss:$0 sm:$0xff] }
 0x3b0   : > { %v2320_v42 = vpack.c.bf16 %v2306_v30, %v2305_v8  ;;  %v2303_v2 = vsel %vm2302_vm9, %v1262_v18, %v3467_v55  ;;  %v2304_v38 = vsel %vm2302_vm9, %v1265_v11, %v3468_v16 }
 0x3b1   : > { %v2319_v21 = vpack.c.bf16 %v2304_v38, %v2303_v2 }
 0x3b3   : > { %3292 = vmatprep.mubr.msk.bf16.mxu0 %vm1203_vm7, %v2319_v21 }
 0x3b4   : > { %3293 = vmatmul.mubr.msk.bf16.vlgmr.msra.gmra.mrb[16].mxu0 %vm1203_vm7, %v2320_v42  ;;  %v3481_v62 = vpop.permute.xlu1 %3480 }
 0x3b5   : > { %v3476_v7 = vpop.permute.xlu0 %3475  ;;  %v3483_v54 = vunpack.i.h.bf16 %v3481_v62  ;;  %v3482_v37 = vunpack.i.l.bf16 %v3481_v62 }
 0x3b6   : > { %v3478_v26 = vunpack.i.h.bf16 %v3476_v7  ;;  %v3477_v15 = vunpack.i.l.bf16 %v3476_v7 }
 0x3bc   : > { %v3491_v45 = vpop.permute.xlu1 %3490 }
 0x3bd   : > { %v3486_v6 = vpop.permute.xlu0 %3485  ;;  %v3493_v29 = vunpack.i.h.bf16 %v3491_v45  ;;  %v3492_v31 = vunpack.i.l.bf16 %v3491_v45 }
 0x3be   : > { %v3488_v49 = vunpack.i.h.bf16 %v3486_v6  ;;  %v3487_v48 = vunpack.i.l.bf16 %v3486_v6 }
 0x3c1   : > { %v3262_v19 = vpop.f32.mrb[4].mxu0 }
 0x3c2   : > { %v1278_v33 = vpop.f32.mrb[5].mxu0  ;;  %v2309_v57 = vsel %vm2302_vm9, %v3262_v19, %v3482_v37 }
 0x3c3   : > { %v3263_v56 = vpop.f32.mrb[6].mxu0  ;;  %v2307_v20 = vsel %vm2302_vm9, %v1278_v33, %v3477_v15 }
 0x3c4   : > { %v2310_v1 = vsel %vm2302_vm9, %v3263_v56, %v3483_v54  ;;  %v1281_v25 = vpop.f32.mrb[7].mxu0  ;;  %v3501_v39 = vpop.permute.xlu1 %3500 }
 0x3c5   : > { %v2322_v58 = vpack.c.bf16 %v2310_v1, %v2309_v57  ;;  %v2308_v3 = vsel %vm2302_vm9, %v1281_v25, %v3478_v26  ;;  %v3496_v61 = vpop.permute.xlu0 %3495  ;;  %v3503_v40 = vunpack.i.h.bf16 %v3501_v39  ;;  %v3502_v36 = vunpack.i.l.bf16 %v3501_v39 }
 0x3c6   : > { %v2321_v23 = vpack.c.bf16 %v2308_v3, %v2307_v20  ;;  %v3498_v46 = vunpack.i.h.bf16 %v3496_v61  ;;  %v3497_v22 = vunpack.i.l.bf16 %v3496_v61 }
 0x3c8   : > { %3296 = vmatprep.mubr.msk.bf16.mxu0 %vm1203_vm7, %v2321_v23 }
 0x3c9   : > { %3297 = vmatmul.mubr.msk.bf16.gmra.mrb[20].mxu0 %vm1203_vm7, %v2322_v58 }
 0x40a   : > { %v3266_v9 = vpop.f32.mrb[8].mxu0 }
 0x40b   : > { %v1294_v59 = vpop.f32.mrb[9].mxu0  ;;  %v2313_v60 = vsel %vm2302_vm9, %v3266_v9, %v3492_v31 }
 0x40c   : > { %v3267_v28 = vpop.f32.mrb[10].mxu0  ;;  %v2311_v52 = vsel %vm2302_vm9, %v1294_v59, %v3487_v48 }
 0x40d   : > { %v2314_v35 = vsel %vm2302_vm9, %v3267_v28, %v3493_v29  ;;  %v1297_v0 = vpop.f32.mrb[11].mxu0 }
 0x40e   : > { %v2324_v47 = vpack.c.bf16 %v2314_v35, %v2313_v60  ;;  %v2312_v13 = vsel %vm2302_vm9, %v1297_v0, %v3488_v49 }
 0x40f   : > { %v2323_v4 = vpack.c.bf16 %v2312_v13, %v2311_v52 }
 0x411   : > { %3300 = vmatprep.mubr.msk.bf16.mxu0 %vm1203_vm7, %v2323_v4 }
 0x412   : > { %3301 = vmatmul.mubr.msk.bf16.gmra.mrb[24].mxu0 %vm1203_vm7, %v2324_v47 }
 0x436   : > { %v3270_v50 = vpop.f32.mrb[12].mxu0 }
 0x437   : > { %v1310_v24 = vpop.f32.mrb[13].mxu0  ;;  %v2317_v17 = vsel %vm2302_vm9, %v3270_v50, %v3502_v36 }
 0x438   : > { %v3271_v41 = vpop.f32.mrb[14].mxu0  ;;  %v2315_v34 = vsel %vm2302_vm9, %v1310_v24, %v3497_v22 }
 0x439   : > { %v2318_v12 = vsel %vm2302_vm9, %v3271_v41, %v3503_v40  ;;  %v1313_v5 = vpop.f32.mrb[15].mxu0 }
 0x43a   : > { %v2326_v10 = vpack.c.bf16 %v2318_v12, %v2317_v17  ;;  %v2316_v44 = vsel %vm2302_vm9, %v1313_v5, %v3498_v46 }
 0x43b   : > { %v2325_v18 = vpack.c.bf16 %v2316_v44, %v2315_v34 }
 0x43d   : > { %3304 = vmatprep.mubr.msk.bf16.mxu0 %vm1203_vm7, %v2325_v18 }
 0x43e   : > { %3305 = vmatmul.mubr.msk.bf16.gmra.mrb[28].mxu0 %vm1203_vm7, %v2326_v10 }
 0x487   : > { %v3294_v11 = vpop.f32.mrb[16].mxu0 }
 0x488   : > { %v2409_v51 = vadd.f32 %v3294_v11, %v5299_v32  ;;  %v2400_v27 = vpop.f32.mrb[17].mxu0 }
 0x489   : > { %v2401_v43 = vadd.f32 %v5299_v32, %v2400_v27  ;;  %v3295_v53 = vpop.f32.mrb[18].mxu0 }
 0x48a   : > { %v2481_v16 = vmul.f32 0.01, %v2409_v51  ;;  %v2412_v55 = vadd.f32 %v3295_v53, %v5299_v32  ;;  %v2403_v30 = vpop.f32.mrb[19].mxu0  ;;  %vm2465_vm10 = vcmp.gt.f32.partialorder %v2409_v51, 0.0 }
 0x48b   : > { %v2479_v8 = vmul.f32 0.01, %v2401_v43  ;;  %v2404_v42 = vadd.f32 %v5299_v32, %v2403_v30  ;;  %vm2463_vm7 = vcmp.gt.f32.partialorder %v2401_v43, 0.0 }
 0x48c   : > { %vm2466_vm11 = vcmp.gt.f32.partialorder %v2412_v55, 0.0  ;;  %v2482_v2 = vmul.f32 0.01, %v2412_v55  ;;  %v2497_v21 = vsel %vm2465_vm10, %v2409_v51, %v2481_v16 }
 0x48d   : > { %vm2464_vm12 = vcmp.gt.f32.partialorder %v2404_v42, 0.0  ;;  %v2480_v38 = vmul.f32 0.01, %v2404_v42  ;;  %v2495_v7 = vsel %vm2463_vm7, %v2401_v43, %v2479_v8 }
 0x48e   : > { %v2498_v62 = vsel %vm2466_vm11, %v2412_v55, %v2482_v2 }
 0x48f   : > { %v2512_v19 = vpack.c.bf16 %v2498_v62, %v2497_v21  ;;  %v2496_v54 = vsel %vm2464_vm12, %v2404_v42, %v2480_v38  ;;  %v3200_v42 = vld [vmem:[%s5554_s8] ss:$0 sm:$0xff] }
 0x490   : > { %v2511_v37 = vpack.c.bf16 %v2496_v54, %v2495_v7 }
 0x492   : > { %3312 = vmatprep.mubr.msk.bf16.mxu1 %vm2542_vm13, %v2511_v37 }
 0x493   : > { %3313 = vmatmul.mubr.msk.bf16.vlgmr.msra.gmra.mrb[16].mxu1 %vm2542_vm13, %v2512_v19 }
 0x49c   : > { %v3298_v33 = vpop.f32.mrb[20].mxu0 }
 0x49d   : > { %v2425_v26 = vadd.f32 %v3298_v33, %v5299_v32  ;;  %v2416_v15 = vpop.f32.mrb[21].mxu0 }
 0x49e   : > { %v2417_v56 = vadd.f32 %v5299_v32, %v2416_v15  ;;  %v3299_v57 = vpop.f32.mrb[22].mxu0 }
 0x49f   : > { %v2485_v1 = vmul.f32 0.01, %v2425_v26  ;;  %v2428_v25 = vadd.f32 %v3299_v57, %v5299_v32  ;;  %v2419_v20 = vpop.f32.mrb[23].mxu0  ;;  %vm2469_vm14 = vcmp.gt.f32.partialorder %v2425_v26, 0.0 }
 0x4a0   : > { %v2483_v58 = vmul.f32 0.01, %v2417_v56  ;;  %v2420_v3 = vadd.f32 %v5299_v32, %v2419_v20  ;;  %vm2467_vm15 = vcmp.gt.f32.partialorder %v2417_v56, 0.0 }
 0x4a1   : > { %vm2470_vm0 = vcmp.gt.f32.partialorder %v2428_v25, 0.0  ;;  %v2486_v23 = vmul.f32 0.01, %v2428_v25  ;;  %v2501_v6 = vsel %vm2469_vm14, %v2425_v26, %v2485_v1 }
 0x4a2   : > { %vm2468_vm1 = vcmp.gt.f32.partialorder %v2420_v3, 0.0  ;;  %v2484_v45 = vmul.f32 0.01, %v2420_v3  ;;  %v2499_v9 = vsel %vm2467_vm15, %v2417_v56, %v2483_v58 }
 0x4a3   : > { %v2502_v14 = vsel %vm2470_vm0, %v2428_v25, %v2486_v23 }
 0x4a4   : > { %v2514_v29 = vpack.c.bf16 %v2502_v14, %v2501_v6  ;;  %v2500_v31 = vsel %vm2468_vm1, %v2420_v3, %v2484_v45 }
 0x4a5   : > { %v2513_v59 = vpack.c.bf16 %v2500_v31, %v2499_v9 }
 0x4a7   : > { %3316 = vmatprep.mubr.msk.bf16.mxu1 %vm2542_vm13, %v2513_v59 }
 0x4a8   : > { %3317 = vmatmul.mubr.msk.bf16.gmra.mrb[20].mxu1 %vm2542_vm13, %v2514_v29 }
 0x4e5   : > { %v3302_v49 = vpop.f32.mrb[24].mxu0 }
 0x4e6   : > { %v2441_v48 = vadd.f32 %v3302_v49, %v5299_v32  ;;  %v2432_v28 = vpop.f32.mrb[25].mxu0 }
 0x4e7   : > { %v2433_v60 = vadd.f32 %v5299_v32, %v2432_v28  ;;  %v3303_v35 = vpop.f32.mrb[26].mxu0 }
 0x4e8   : > { %v2489_v0 = vmul.f32 0.01, %v2441_v48  ;;  %v2444_v63 = vadd.f32 %v3303_v35, %v5299_v32  ;;  %v2435_v52 = vpop.f32.mrb[27].mxu0  ;;  %vm2473_vm2 = vcmp.gt.f32.partialorder %v2441_v48, 0.0 }
 0x4e9   : > { %v2487_v47 = vmul.f32 0.01, %v2433_v60  ;;  %v2436_v13 = vadd.f32 %v5299_v32, %v2435_v52  ;;  %vm2471_vm3 = vcmp.gt.f32.partialorder %v2433_v60, 0.0 }
 0x4ea   : > { %vm2474_vm4 = vcmp.gt.f32.partialorder %v2444_v63, 0.0  ;;  %v2490_v4 = vmul.f32 0.01, %v2444_v63  ;;  %v2505_v61 = vsel %vm2473_vm2, %v2441_v48, %v2489_v0 }
 0x4eb   : > { %vm2472_vm5 = vcmp.gt.f32.partialorder %v2436_v13, 0.0  ;;  %v2488_v39 = vmul.f32 0.01, %v2436_v13  ;;  %v2503_v40 = vsel %vm2471_vm3, %v2433_v60, %v2487_v47 }
 0x4ec   : > { %v2506_v50 = vsel %vm2474_vm4, %v2444_v63, %v2490_v4 }
 0x4ed   : > { %v2516_v36 = vpack.c.bf16 %v2506_v50, %v2505_v61  ;;  %v2504_v24 = vsel %vm2472_vm5, %v2436_v13, %v2488_v39 }
 0x4ee   : > { %v2515_v46 = vpack.c.bf16 %v2504_v24, %v2503_v40 }
 0x4f0   : > { %3320 = vmatprep.mubr.msk.bf16.mxu1 %vm2542_vm13, %v2515_v46 }
 0x4f1   : > { %3321 = vmatmul.mubr.msk.bf16.gmra.mrb[24].mxu1 %vm2542_vm13, %v2516_v36 }
 0x511   : > { %v3306_v22 = vpop.f32.mrb[28].mxu0 }
 0x512   : > { %v2457_v41 = vadd.f32 %v3306_v22, %v5299_v32  ;;  %v2448_v17 = vpop.f32.mrb[29].mxu0 }
 0x513   : > { %v2449_v12 = vadd.f32 %v5299_v32, %v2448_v17  ;;  %v3307_v5 = vpop.f32.mrb[30].mxu0 }
 0x514   : > { %v2493_v34 = vmul.f32 0.01, %v2457_v41  ;;  %v2460_v10 = vadd.f32 %v3307_v5, %v5299_v32  ;;  %v2451_v44 = vpop.f32.mrb[31].mxu0  ;;  %vm2477_vm6 = vcmp.gt.f32.partialorder %v2457_v41, 0.0 }
 0x515   : > { %v2491_v18 = vmul.f32 0.01, %v2449_v12  ;;  %v2452_v11 = vadd.f32 %v5299_v32, %v2451_v44  ;;  %vm2475_vm8 = vcmp.gt.f32.partialorder %v2449_v12, 0.0 }
 0x516   : > { %vm2478_vm9 = vcmp.gt.f32.partialorder %v2460_v10, 0.0  ;;  %v2494_v51 = vmul.f32 0.01, %v2460_v10  ;;  %v2509_v43 = vsel %vm2477_vm6, %v2457_v41, %v2493_v34 }
 0x517   : > { %vm2476_vm10 = vcmp.gt.f32.partialorder %v2452_v11, 0.0  ;;  %v2492_v27 = vmul.f32 0.01, %v2452_v11  ;;  %v2507_v16 = vsel %vm2475_vm8, %v2449_v12, %v2491_v18 }
 0x518   : > { %v2510_v53 = vsel %vm2478_vm9, %v2460_v10, %v2494_v51 }
 0x519   : > { %v2518_v55 = vpack.c.bf16 %v2510_v53, %v2509_v43  ;;  %v2508_v30 = vsel %vm2476_vm10, %v2452_v11, %v2492_v27 }
 0x51a   : > { %v2517_v8 = vpack.c.bf16 %v2508_v30, %v2507_v16 }
 0x51c   : > { %3324 = vmatprep.mubr.msk.bf16.mxu1 %vm2542_vm13, %v2517_v8 }
 0x51d   : > { %3325 = vmatmul.mubr.msk.bf16.gmra.mrb[28].mxu1 %vm2542_vm13, %v2518_v55 }
 0x566   : > { %v3314_v32 = vpop.f32.mrb[16].mxu1 }
 0x567   : > { %v5328_v2 = vadd.f32 %v3314_v32, %v3200_v42  ;;  %v2601_v38 = vpop.f32.mrb[17].mxu1 }
 0x568   : > { %v3315_v21 = vpop.f32.mrb[18].mxu1  ;;  %v5333_v19 = vadd.f32 %v3200_v42, %v2601_v38 }
 0x569   : > { %2668 = vmax.xlane.f32.xlu0 %v5328_v2  ;;  %v2604_v62 = vpop.f32.mrb[19].mxu1  ;;  %v5337_v54 = vadd.f32 %v3315_v21, %v3200_v42 }
 0x56a   : > { %v5331_v7 = vadd.f32 %v3200_v42, %v2604_v62 }
 0x56c   : > { %2666 = vmax.xlane.f32.xlu1 %v5331_v7 }
 0x56d   : > { %2664 = vmax.xlane.f32.xlu0 %v5333_v19 }
 0x571   : > { %2670 = vmax.xlane.f32.xlu0 %v5337_v54 }
 0x57b   : > { %v3318_v37 = vpop.f32.mrb[20].mxu1 }
 0x57c   : > { %v5340_v33 = vadd.f32 %v3318_v37, %v3200_v42  ;;  %v2617_v26 = vpop.f32.mrb[21].mxu1 }
 0x57d   : > { %v3319_v15 = vpop.f32.mrb[22].mxu1  ;;  %v5345_v1 = vadd.f32 %v3200_v42, %v2617_v26 }
 0x57e   : > { %v5342_v56 = vadd.f32 %v3319_v15, %v3200_v42  ;;  %v2620_v57 = vpop.f32.mrb[23].mxu1  ;;  %2676 = vmax.xlane.f32.xlu1 %v5340_v33 }
 0x57f   : > { %v5348_v25 = vadd.f32 %v3200_v42, %v2620_v57 }
 0x580   : > { %2678 = vmax.xlane.f32.xlu0 %v5342_v56 }
 0x582   : > { %2672 = vmax.xlane.f32.xlu1 %v5345_v1 }
 0x584   : > { %2674 = vmax.xlane.f32.xlu0 %v5348_v25 }
 0x5c4   : > { %v3322_v20 = vpop.f32.mrb[24].mxu1 }
 0x5c5   : > { %v5352_v58 = vadd.f32 %v3322_v20, %v3200_v42  ;;  %v2633_v3 = vpop.f32.mrb[25].mxu1 }
 0x5c6   : > { %v3323_v23 = vpop.f32.mrb[26].mxu1  ;;  %v5357_v14 = vadd.f32 %v3200_v42, %v2633_v3 }
 0x5c7   : > { %v5354_v45 = vadd.f32 %v3323_v23, %v3200_v42  ;;  %v2636_v6 = vpop.f32.mrb[27].mxu1  ;;  %2684 = vmax.xlane.f32.xlu1 %v5352_v58 }
 0x5c8   : > { %v5360_v9 = vadd.f32 %v3200_v42, %v2636_v6 }
 0x5c9   : > { %2686 = vmax.xlane.f32.xlu0 %v5354_v45 }
 0x5cb   : > { %2680 = vmax.xlane.f32.xlu1 %v5357_v14 }
 0x5cd   : > { %2682 = vmax.xlane.f32.xlu0 %v5360_v9 }
 0x5f0   : > { %v3326_v29 = vpop.f32.mrb[28].mxu1 }
 0x5f1   : > { %v2649_v31 = vpop.f32.mrb[29].mxu1  ;;  %v5369_v60 = vadd.f32 %v3326_v29, %v3200_v42 }
 0x5f2   : > { %v5364_v59 = vadd.f32 %v3200_v42, %v2649_v31  ;;  %v3327_v49 = vpop.f32.mrb[30].mxu1 }
 0x5f3   : > { %v2652_v48 = vpop.f32.mrb[31].mxu1  ;;  %v5376_v63 = vadd.f32 %v3327_v49, %v3200_v42 }
 0x5f4   : > { %v5366_v28 = vadd.f32 %v3200_v42, %v2652_v48  ;;  %2688 = vmax.xlane.f32.xlu1 %v5364_v59 }
 0x5f6   : > { %v5371_v35 = vpop.xlane.xlu0 %2668  ;;  %2690 = vmax.xlane.f32.xlu0 %v5366_v28 }
 0x5f7   : > { %v2698_v0 = vsub.f32 %v5328_v2, %v5371_v35 }
 0x5f8   : > { %2692 = vmax.xlane.f32.xlu1 %v5369_v60 }
 0x5f9   : > { %v2716_v52 = vmul.f32 1.442695, %v2698_v0  ;;  %v5384_v4 = vpop.xlane.xlu1 %2666 }
 0x5fa   : > { %2694 = vmax.xlane.f32.xlu0 %v5376_v63  ;;  %v5380_v47 = vpop.xlane.xlu0 %2664  ;;  %v2697_v50 = vsub.f32 %v5331_v7, %v5384_v4 }
 0x5fb   : > { %3508 = vpow2.f32 %v2716_v52  ;;  %v2696_v13 = vsub.f32 %v5333_v19, %v5380_v47 }
 0x5fc   : > { %v2714_v24 = vmul.f32 1.442695, %v2697_v50 }
 0x5fd   : > { %v2712_v39 = vmul.f32 1.442695, %v2696_v13 }
 0x5fe   : > { %v5386_v61 = vpop.xlane.xlu0 %2670 }
 0x5ff   : > { %3510 = vpow2.f32 %v2712_v39  ;;  %v2699_v40 = vsub.f32 %v5337_v54, %v5386_v61 }
 0x601   : > { %v2718_v36 = vmul.f32 1.442695, %v2699_v40 }
 0x603   : > { %3512 = vpow2.f32 %v2718_v36 }
 0x604   : > { %3514 = vpow2.f32 %v2714_v24 }
 0x605   : > { %v3509_v46 = vpop.eup %3508 }
 0x606   : > { %2748 = vadd.xlane.f32.xlu1 %v3509_v46 }
 0x609   : > { %v3511_v22 = vpop.eup %3510 }
 0x60a   : > { %2744 = vadd.xlane.f32.xlu1 %v3511_v22 }
 0x60b   : > { %v5392_v41 = vpop.xlane.xlu1 %2676 }
 0x60c   : > { %v2702_v17 = vsub.f32 %v5340_v33, %v5392_v41 }
 0x60d   : > { %v3513_v12 = vpop.eup %3512  ;;  %v5396_v5 = vpop.xlane.xlu0 %2678 }
 0x60e   : > { %v2724_v34 = vmul.f32 1.442695, %v2702_v17  ;;  %v2703_v10 = vsub.f32 %v5342_v56, %v5396_v5  ;;  %2750 = vadd.xlane.f32.xlu0 %v3513_v12  ;;  %v3515_v51 = vpop.eup %3514 }
 0x60f   : > { %v5400_v44 = vpop.xlane.xlu1 %2672 }
 0x610   : > { %3516 = vpow2.f32 %v2724_v34  ;;  %v2726_v18 = vmul.f32 1.442695, %v2703_v10  ;;  %v2700_v11 = vsub.f32 %v5345_v1, %v5400_v44 }
 0x611   : > { %v5404_v27 = vpop.xlane.xlu0 %2674 }
 0x612   : > { %3518 = vpow2.f32 %v2726_v18  ;;  %v2720_v43 = vmul.f32 1.442695, %v2700_v11  ;;  %v2701_v53 = vsub.f32 %v5348_v25, %v5404_v27  ;;  %2746 = vadd.xlane.f32.xlu0 %v3515_v51 }
 0x614   : > { %3520 = vpow2.f32 %v2720_v43  ;;  %v2722_v16 = vmul.f32 1.442695, %v2701_v53 }
 0x616   : > { %3522 = vpow2.f32 %v2722_v16 }
 0x61a   : > { %v3517_v55 = vpop.eup %3516 }
 0x61b   : > { %2756 = vadd.xlane.f32.xlu1 %v3517_v55 }
 0x61c   : > { %v3519_v30 = vpop.eup %3518 }
 0x61d   : > { %2758 = vadd.xlane.f32.xlu0 %v3519_v30 }
 0x61e   : > { %v3521_v8 = vpop.eup %3520 }
 0x61f   : > { %2752 = vadd.xlane.f32.xlu1 %v3521_v8 }
 0x620   : > { %v3523_v42 = vpop.eup %3522 }
 0x621   : > { %2754 = vadd.xlane.f32.xlu0 %v3523_v42 }
 0x654   : > { %v5408_v32 = vpop.xlane.xlu1 %2684 }
 0x655   : > { %v2706_v38 = vsub.f32 %v5352_v58, %v5408_v32 }
 0x656   : > { %v5412_v21 = vpop.xlane.xlu0 %2686 }
 0x657   : > { %v2732_v62 = vmul.f32 1.442695, %v2706_v38  ;;  %v2707_v37 = vsub.f32 %v5354_v45, %v5412_v21 }
 0x658   : > { %v5416_v26 = vpop.xlane.xlu1 %2680 }
 0x659   : > { %3524 = vpow2.f32 %v2732_v62  ;;  %v2734_v15 = vmul.f32 1.442695, %v2707_v37  ;;  %v2704_v57 = vsub.f32 %v5357_v14, %v5416_v26 }
 0x65a   : > { %v5420_v20 = vpop.xlane.xlu0 %2682 }
 0x65b   : > { %3526 = vpow2.f32 %v2734_v15  ;;  %v2728_v3 = vmul.f32 1.442695, %v2704_v57  ;;  %v2705_v23 = vsub.f32 %v5360_v9, %v5420_v20 }
 0x65d   : > { %3528 = vpow2.f32 %v2728_v3  ;;  %v2730_v6 = vmul.f32 1.442695, %v2705_v23 }
 0x65f   : > { %3530 = vpow2.f32 %v2730_v6 }
 0x663   : > { %v3525_v29 = vpop.eup %3524 }
 0x664   : > { %2764 = vadd.xlane.f32.xlu1 %v3525_v29 }
 0x665   : > { %v3527_v31 = vpop.eup %3526 }
 0x666   : > { %2766 = vadd.xlane.f32.xlu0 %v3527_v31 }
 0x667   : > { %v3529_v49 = vpop.eup %3528 }
 0x668   : > { %2760 = vadd.xlane.f32.xlu1 %v3529_v49 }
 0x669   : > { %v3531_v48 = vpop.eup %3530 }
 0x66a   : > { %2762 = vadd.xlane.f32.xlu0 %v3531_v48 }
 0x681   : > { %v5424_v0 = vpop.xlane.xlu1 %2688 }
 0x682   : > { %v2708_v52 = vsub.f32 %v5364_v59, %v5424_v0 }
 0x683   : > { %v5428_v13 = vpop.xlane.xlu0 %2690 }
 0x684   : > { %v2736_v39 = vmul.f32 1.442695, %v2708_v52  ;;  %v2709_v50 = vsub.f32 %v5366_v28, %v5428_v13 }
 0x685   : > { %v5432_v40 = vpop.xlane.xlu1 %2692 }
 0x686   : > { %3532 = vpow2.f32 %v2736_v39  ;;  %v2738_v36 = vmul.f32 1.442695, %v2709_v50  ;;  %v2710_v24 = vsub.f32 %v5369_v60, %v5432_v40 }
 0x687   : > { %v5436_v46 = vpop.xlane.xlu0 %2694 }
 0x688   : > { %3534 = vpow2.f32 %v2738_v36  ;;  %v2740_v22 = vmul.f32 1.442695, %v2710_v24  ;;  %v2711_v17 = vsub.f32 %v5376_v63, %v5436_v46 }
 0x68a   : > { %3536 = vpow2.f32 %v2740_v22  ;;  %v2742_v12 = vmul.f32 1.442695, %v2711_v17 }
 0x68c   : > { %3538 = vpow2.f32 %v2742_v12 }
 0x690   : > { %v3533_v34 = vpop.eup %3532 }
 0x691   : > { %2768 = vadd.xlane.f32.xlu1 %v3533_v34 }
 0x692   : > { %v3535_v10 = vpop.eup %3534 }
 0x693   : > { %v2749_v18 = vpop.xlane.xlu1 %2748  ;;  %2770 = vadd.xlane.f32.xlu0 %v3535_v10 }
 0x694   : > { %v3537_v11 = vpop.eup %3536  ;;  %3540 = vlog2.f32 %v2749_v18 }
 0x695   : > { %2772 = vadd.xlane.f32.xlu1 %v3537_v11 }
 0x696   : > { %v3539_v51 = vpop.eup %3538 }
 0x697   : > { %v2745_v43 = vpop.xlane.xlu1 %2744  ;;  %2774 = vadd.xlane.f32.xlu0 %v3539_v51 }
 0x698   : > { %3542 = vlog2.f32 %v2745_v43 }
 0x69b   : > { %v2751_v53 = vpop.xlane.xlu0 %2750 }
 0x69c   : > { %3544 = vlog2.f32 %v2751_v53 }
 0x69e   : > { %v3541_v16 = vpop.eup %3540 }
 0x69f   : > { %v2781_v55 = vmul.f32 0.6931472, %v3541_v16  ;;  %v2747_v30 = vpop.xlane.xlu0 %2746 }
 0x6a0   : > { %3546 = vlog2.f32 %v2747_v30 }
 0x6a1   : > { %v2810_v8 = vadd.f32 %v2781_v55, %v5371_v35 }
 0x6a2   : > { %v3543_v42 = vpop.eup %3542 }
 0x6a3   : > { %v2826_v38 = vsub.f32 %v5328_v2, %v2810_v8  ;;  %v2777_v62 = vmul.f32 0.6931472, %v3543_v42 }
 0x6a5   : > { %2842 = vst [vmem:[%s5445_s26 + $0x10] sm:$0xff] %v2826_v38  ;;  %v2808_v37 = vadd.f32 %v2777_v62, %v5380_v47 }
 0x6a6   : > { %v3545_v15 = vpop.eup %3544 }
 0x6a7   : > { %v2824_v57 = vsub.f32 %v5333_v19, %v2808_v37  ;;  %v2783_v3 = vmul.f32 0.6931472, %v3545_v15 }
 0x6a8   : > { %v2757_v23 = vpop.xlane.xlu1 %2756 }
 0x6a9   : > { %2840 = vst [vmem:[%s5445_s26] sm:$0xff] %v2824_v57  ;;  %v2811_v35 = vadd.f32 %v2783_v3, %v5386_v61  ;;  %3548 = vlog2.f32 %v2757_v23 }
 0x6aa   : > { %v3547_v2 = vpop.eup %3546  ;;  %v2759_v6 = vpop.xlane.xlu0 %2758 }
 0x6ab   : > { %v2827_v29 = vsub.f32 %v5337_v54, %v2811_v35  ;;  %v2779_v31 = vmul.f32 0.6931472, %v3547_v2  ;;  %3550 = vlog2.f32 %v2759_v6 }
 0x6ac   : > { %v2753_v49 = vpop.xlane.xlu1 %2752 }
 0x6ad   : > { %2843 = vst [vmem:[%s5445_s26 + $0x18] sm:$0xff] %v2827_v29  ;;  %v2809_v47 = vadd.f32 %v2779_v31, %v5384_v4  ;;  %3552 = vlog2.f32 %v2753_v49 }
 0x6ae   : > { %v2755_v19 = vpop.xlane.xlu0 %2754 }
 0x6af   : > { %v2825_v48 = vsub.f32 %v5331_v7, %v2809_v47  ;;  %3554 = vlog2.f32 %v2755_v19 }
 0x6b1   : > { %2841 = vst [vmem:[%s5445_s26 + $0x8] sm:$0xff] %v2825_v48 }
 0x6b3   : > { %v3549_v61 = vpop.eup %3548 }
 0x6b4   : > { %v2789_v52 = vmul.f32 0.6931472, %v3549_v61 }
 0x6b5   : > { %v3551_v39 = vpop.eup %3550 }
 0x6b6   : > { %v2814_v54 = vadd.f32 %v2789_v52, %v5392_v41  ;;  %v2791_v50 = vmul.f32 0.6931472, %v3551_v39 }
 0x6b7   : > { %v3553_v36 = vpop.eup %3552 }
 0x6b8   : > { %v2830_v24 = vsub.f32 %v5340_v33, %v2814_v54  ;;  %v2815_v4 = vadd.f32 %v2791_v50, %v5396_v5  ;;  %v2785_v22 = vmul.f32 0.6931472, %v3553_v36 }
 0x6b9   : > { %v3555_v17 = vpop.eup %3554 }
 0x6ba   : > { %2846 = vst [vmem:[%s5445_s26 + $0x30] sm:$0xff] %v2830_v24  ;;  %v2831_v7 = vsub.f32 %v5342_v56, %v2815_v4  ;;  %v2812_v12 = vadd.f32 %v2785_v22, %v5400_v44  ;;  %v2787_v34 = vmul.f32 0.6931472, %v3555_v17 }
 0x6bc   : > { %2847 = vst [vmem:[%s5445_s26 + $0x38] sm:$0xff] %v2831_v7  ;;  %v2828_v10 = vsub.f32 %v5345_v1, %v2812_v12  ;;  %v2813_v41 = vadd.f32 %v2787_v34, %v5404_v27 }
 0x6be   : > { %2844 = vst [vmem:[%s5445_s26 + $0x20] sm:$0xff] %v2828_v10  ;;  %v2829_v18 = vsub.f32 %v5348_v25, %v2813_v41 }
 0x6c0   : > { %2845 = vst [vmem:[%s5445_s26 + $0x28] sm:$0xff] %v2829_v18 }
 0x6f1   : > { %v2765_v33 = vpop.xlane.xlu1 %2764 }
 0x6f2   : > { %3556 = vlog2.f32 %v2765_v33 }
 0x6f3   : > { %v2767_v5 = vpop.xlane.xlu0 %2766 }
 0x6f4   : > { %3558 = vlog2.f32 %v2767_v5 }
 0x6f5   : > { %v2761_v11 = vpop.xlane.xlu1 %2760 }
 0x6f6   : > { %3560 = vlog2.f32 %v2761_v11 }
 0x6f7   : > { %v2763_v56 = vpop.xlane.xlu0 %2762 }
 0x6f8   : > { %3562 = vlog2.f32 %v2763_v56 }
 0x6fc   : > { %v3557_v44 = vpop.eup %3556 }
 0x6fd   : > { %v2797_v51 = vmul.f32 0.6931472, %v3557_v44 }
 0x6fe   : > { %v3559_v1 = vpop.eup %3558 }
 0x6ff   : > { %v2818_v27 = vadd.f32 %v2797_v51, %v5408_v32  ;;  %v2799_v43 = vmul.f32 0.6931472, %v3559_v1 }
 0x700   : > { %v3561_v25 = vpop.eup %3560 }
 0x701   : > { %v2834_v53 = vsub.f32 %v5352_v58, %v2818_v27  ;;  %v2819_v16 = vadd.f32 %v2799_v43, %v5412_v21  ;;  %v2793_v55 = vmul.f32 0.6931472, %v3561_v25 }
 0x702   : > { %v3563_v30 = vpop.eup %3562 }
 0x703   : > { %2850 = vst [vmem:[%s5445_s26 + $0x50] sm:$0xff] %v2834_v53  ;;  %v2835_v8 = vsub.f32 %v5354_v45, %v2819_v16  ;;  %v2816_v42 = vadd.f32 %v2793_v55, %v5416_v26  ;;  %v2795_v38 = vmul.f32 0.6931472, %v3563_v30 }
 0x705   : > { %2851 = vst [vmem:[%s5445_s26 + $0x58] sm:$0xff] %v2835_v8  ;;  %v2832_v62 = vsub.f32 %v5357_v14, %v2816_v42  ;;  %v2817_v32 = vadd.f32 %v2795_v38, %v5420_v20 }
 0x707   : > { %2848 = vst [vmem:[%s5445_s26 + $0x40] sm:$0xff] %v2832_v62  ;;  %v2833_v37 = vsub.f32 %v5360_v9, %v2817_v32 }
 0x709   : > { %2849 = vst [vmem:[%s5445_s26 + $0x48] sm:$0xff] %v2833_v37 }
 0x71e   : > { %v2769_v58 = vpop.xlane.xlu1 %2768 }
 0x71f   : > { %3564 = vlog2.f32 %v2769_v58 }
 0x720   : > { %v2771_v21 = vpop.xlane.xlu0 %2770 }
 0x721   : > { %3566 = vlog2.f32 %v2771_v21 }
 0x722   : > { %v2773_v15 = vpop.xlane.xlu1 %2772 }
 0x723   : > { %3568 = vlog2.f32 %v2773_v15 }
 0x724   : > { %v2775_v45 = vpop.xlane.xlu0 %2774 }
 0x725   : > { %3570 = vlog2.f32 %v2775_v45 }
 0x729   : > { %v3565_v26 = vpop.eup %3564 }
 0x72a   : > { %v2801_v14 = vmul.f32 0.6931472, %v3565_v26 }
 0x72b   : > { %v3567_v57 = vpop.eup %3566 }
 0x72c   : > { %v2820_v20 = vadd.f32 %v2801_v14, %v5424_v0  ;;  %v2803_v3 = vmul.f32 0.6931472, %v3567_v57 }
 0x72d   : > { %v3569_v9 = vpop.eup %3568 }
 0x72e   : > { %v2836_v23 = vsub.f32 %v5364_v59, %v2820_v20  ;;  %v2821_v35 = vadd.f32 %v2803_v3, %v5428_v13  ;;  %v2805_v2 = vmul.f32 0.6931472, %v3569_v9 }
 0x72f   : > { %v3571_v6 = vpop.eup %3570 }
 0x730   : > { %2852 = vst [vmem:[%s5445_s26 + $0x60] sm:$0xff] %v2836_v23  ;;  %v2837_v29 = vsub.f32 %v5366_v28, %v2821_v35  ;;  %v2822_v31 = vadd.f32 %v2805_v2, %v5432_v40  ;;  %v2807_v49 = vmul.f32 0.6931472, %v3571_v6 }
 0x732   : > { %2853 = vst [vmem:[%s5445_s26 + $0x68] sm:$0xff] %v2837_v29  ;;  %v2838_v0 = vsub.f32 %v5369_v60, %v2822_v31  ;;  %v2823_v59 = vadd.f32 %v2807_v49, %v5436_v46 }
 0x734   : > { %2854 = vst [vmem:[%s5445_s26 + $0x70] sm:$0xff] %v2838_v0  ;;  %v2839_v13 = vsub.f32 %v5376_v63, %v2823_v59 }
 0x736   : > { %2855 = vst [vmem:[%s5445_s26 + $0x78] sm:$0xff] %v2839_v13 }
 0x737   : > { %3585 = shalt.err (!%p3582_p3)
}
 0x738   : > { %s3586_s24 = scalar_lea.hbm %s5495_s17, 2048  ;;  %s3590_s14 = scalar_lea.hbm %s5555_s9, 8192 }
 0x739   : > { %p3587_p4 = scmp.ne.s32.totalorder %s5495_s17, %s3586_s24  ;;  %p3591_p9 = scmp.lt.u32.totalorder %s5495_s17, %s5555_s9 }
 0x73a   : > { %p3592_p10 = scmp.lt.u32.totalorder %s3590_s14, %s3586_s24  ;;  %p3594_p12 = scmp.lt.u32.totalorder %s3586_s24, %s5495_s17 }
 0x73b   : > { %p3588_p7 = pnand %p3587_p4, %p3734_p5 }
 0x73c   : > { %p3593_p11 = por %p3592_p10, %p3591_p9 }
 0x73d   : > { %p3589_p8 = pneg %p3588_p7 }
 0x73e   : > { %p3595_p13 = por %p3594_p12, %p3593_p11 }
 0x740   : > { %p3596_p0 = pnand %p3595_p13, %p3589_p8 }
 0x742   : > { %3599 = shalt.err (!%p3596_p0)
}
 0x743   : > { %s3645_s21 = smov 128  }
 0x744   : > { %3328 = dma.vmem_to_hbm [thread:$0]  (%p3734_p5), %s5499_s29, 2048, %s5495_s17, %s5504_s13, %s3645_s21, %s3645_s21, %s3643_s27  }
 0x745 PF: > { %p3334_p1 = scmp.ge.s32.totalorder %s3634_s12, 2  ;;  %s2885_s22 = sand.u32 1, %s3622_s30  }
 0x746   : > { %s2886_s25 = scalar_lea.sflag [#allocation3], %s2885_s22 }
 0x747   : > { %p3331_p2 = pnand %p3334_p1, %p3738_p6 }
 0x749   : > { %3617 = dma.done.wait (!%p3331_p2), %s2886_s25, 2048  }
 0x74a   : > { %3619 = vsyncadd (!%p3331_p2), %s2886_s25, 4294965248  ;;  %p19_p3 = scmp.ge.s32.totalorder %s3721_s15, 6   ;;  %s5734_s30 = smov %s3626_s10 }
 0x74b   : > { %s5735_s10 = smov %s3630_s11  ;;  %s5736_s11 = smov %s3732_s18 }
 0x74c   : > { %s5737_s12 = smov %s3721_s15  ;;  %21 = sbr.rel (!%p19_p3) target bundleno = 3 (0x3), region = 100 }
 0x753   :  { %2891 = vsyncpa [#allocation3], 1 }
 0x754   :  { %2893 = vsyncpa [#allocation3 + $0x1], 1 }

</bundles_post_ra>
